<compile_context>
chip_gen: v6e
topology: v6e:2x2x1
jax: 0.10.0
libtpu: 0.0.40
codegen_flags: <defaults>
</compile_context>

<pallas_src>
import functools

import jax
import jax.numpy as jnp
from jax.experimental import pallas as pl
from jax.experimental.pallas import tpu as pltpu

_MASK_VALUE = -1e30


def _round_up(x, m):
    return (x + m - 1) // m * m


def _attention_text_kernel(xf_ref, xq_ref, wq_ref, wk_ref, wv_ref,
                           bq_ref, bk_ref, bv_ref, wo_ref, bo_ref,
                           o_ref, k_sc, v_sc, oh_sc,
                           *, num_heads, head_dim, n_valid):
    qi = pl.program_id(1)
    tq = xq_ref.shape[1]
    n_pad = k_sc.shape[0]
    c_pad = oh_sc.shape[1]
    H, d = num_heads, head_dim

    # ---- K / V for every head, computed once per batch with a single wide matmul
    #      each, kept resident (lane-dense, head-major) in VMEM scratch. ----
    @pl.when(qi == 0)
    def _():
        x_all = xf_ref[0]                                   # (N_pad, C_pad) bf16
        k_all = jnp.dot(x_all, wk_ref[...],
                        preferred_element_type=jnp.float32) + bk_ref[...]
        v_all = jnp.dot(x_all, wv_ref[...],
                        preferred_element_type=jnp.float32) + bv_ref[...]
        k_sc[...] = k_all.astype(k_sc.dtype)
        v_sc[...] = v_all.astype(v_sc.dtype)

    # ---- Q projection for the whole query tile, hoisted out of the head loop.
    #      Softmax scale is pre-folded into Wq / bq. ----
    xq = xq_ref[0]                                          # (TQ, C_pad) bf16
    q_all = (jnp.dot(xq, wq_ref[...], preferred_element_type=jnp.float32)
             + bq_ref[...]).astype(jnp.bfloat16)            # (TQ, C_pad)

    # Mask for padded key positions (only materialized if N was padded).
    if n_valid < n_pad:
        key_mask = jax.lax.broadcasted_iota(jnp.int32, (tq, n_pad), 1) < n_valid
    else:
        key_mask = None

    if H * d < c_pad:
        oh_sc[...] = jnp.zeros_like(oh_sc)   # keep padded head lanes exactly zero

    # ---- Per-head attention.  Static Python loop -> static lane slices. ----
    for h in range(H):
        lo, hi = h * d, (h + 1) * d
        q_h = q_all[:, lo:hi]                               # (TQ, d) bf16
        k_h = k_sc[:, lo:hi]                                # (N_pad, d) bf16
        # scores = q @ k^T (contract last dims of both); fp32 softmax math.
        s = jax.lax.dot_general(q_h, k_h, (((1,), (1,)), ((), ())),
                                preferred_element_type=jnp.float32)  # (TQ, N_pad)
        if key_mask is not None:
            s = jnp.where(key_mask, s, _MASK_VALUE)
        m = jnp.max(s, axis=-1, keepdims=True)
        p = jnp.exp(s - m)                                  # unnormalized probs
        row_sum = jnp.sum(p, axis=-1, keepdims=True)
        o_h = jnp.dot(p.astype(jnp.bfloat16), v_sc[:, lo:hi],
                      preferred_element_type=jnp.float32)   # (TQ, d)
        # Deferred softmax normalization on the small (TQ, d) result.
        o_h = o_h * pl.reciprocal(row_sum, approx=True)
        oh_sc[:, lo:hi] = o_h.astype(oh_sc.dtype)

    # ---- Fused head-merge + output projection: one deep matmul + bias. ----
    y = jnp.dot(oh_sc[...], wo_ref[...],
                preferred_element_type=jnp.float32) + bo_ref[...]
    o_ref[0] = y.astype(o_ref.dtype)


def attention_text_pallas(x, in_proj_weight, in_proj_bias, out_proj_weight,
                          out_proj_bias, *, num_heads, qk_scale=None):
    orig_dtype = x.dtype
    B, N, C = x.shape
    assert C % num_heads == 0, "C must be divisible by num_heads"
    H = num_heads
    d = C // H
    scale = float(qk_scale) if qk_scale is not None else float(d) ** (-0.5)

    f32, bf16 = jnp.float32, jnp.bfloat16

    # Physical VMEM (v5e/v6e: 128 MiB, v7x: 64 MiB); never request more than this.
    try:
        vmem_cap = int(pltpu.get_tpu_info().vmem_capacity_bytes)
    except Exception:
        vmem_cap = 64 * 1024 * 1024

    # ---- Padded / tiled geometry (lane-dense last dims, bf16-friendly sublanes). --
    C_pad = _round_up(C, 128)
    if N >= 256:
        # Smaller query tile on small-VMEM chips (v7x) at long sequence length.
        TQ = 128 if (vmem_cap <= 64 * 1024 * 1024 and N >= 2048) else 256
        N_pad = _round_up(N, TQ)
    else:
        N_pad = _round_up(N, 16)
        TQ = N_pad
    num_q_tiles = N_pad // TQ

    # TODO(synk): flash-style KV-tiled (online-softmax) fallback for sequences whose
    #             all-heads K/V scratch no longer fits VMEM (notably v7x at large N*C).

    # ---- Fused, head-major weight preparation (done once in the wrapper). ----
    w = in_proj_weight.astype(f32)                          # (3C, C) torch (out, in)

    def pad_w(a):                                           # (C, C) -> (C_pad, C_pad)
        return jnp.pad(a, ((0, C_pad - C), (0, C_pad - C))).astype(bf16)

    wq = pad_w(w[0:C].T * scale)                            # softmax scale folded in
    wk = pad_w(w[C:2 * C].T)
    wv = pad_w(w[2 * C:3 * C].T)
    wo = pad_w(out_proj_weight.astype(f32).T)

    b_all = in_proj_bias.astype(f32)

    def pad_b(a):                                           # (C,) -> (1, C_pad) f32
        return jnp.pad(a.reshape(1, C), ((0, 0), (0, C_pad - C)))

    bq = pad_b(b_all[0:C] * scale)
    bk = pad_b(b_all[C:2 * C])
    bv = pad_b(b_all[2 * C:3 * C])
    bo = pad_b(out_proj_bias.astype(f32))

    # bf16 activations into the kernel; fp32 accumulation inside.
    x_p = jnp.pad(x.astype(bf16), ((0, 0), (0, N_pad - N), (0, C_pad - C)))

    # ---- VMEM budget: resident blocks + scratch + matmul/softmax transients. ----
    out_b = jnp.dtype(orig_dtype).itemsize
    vmem_est = (
        N_pad * C_pad * 2                          # x full-seq block (single-buffered)
        + 2 * TQ * C_pad * 2                       # x query-tile block
        + 4 * C_pad * C_pad * 2 + 4 * C_pad * 4    # fused weights / biases
        + 2 * N_pad * C_pad * 2                    # K, V scratch
        + TQ * C_pad * 2                           # concatenated head-output scratch
        + 2 * TQ * C_pad * out_b                   # output block
        + N_pad * C_pad * 4                        # KV-build f32 transient
        + 4 * TQ * N_pad * 4                       # score / prob transients
        + 2 * TQ * C_pad * 4                       # q_all / out-proj transients
    )
    vmem_limit = max(int(vmem_est * 1.3) + (2 << 20), 32 << 20)
    vmem_limit = max(min(vmem_limit, vmem_cap - (4 << 20)), 16 << 20)

    kernel = functools.partial(_attention_text_kernel,
                               num_heads=H, head_dim=d, n_valid=N)

    def make_in_specs(single_buffer):
        def inv(shape, index_map):
            # Grid-invariant / batch-only operands: one VMEM buffer is enough.
            if single_buffer:
                return pl.BlockSpec(shape, index_map, pipeline_mode=pl.Buffered(1))
            return pl.BlockSpec(shape, index_map)
        return [
            inv((1, N_pad, C_pad), lambda bi, qi: (bi, 0, 0)),         # x (full seq)
            pl.BlockSpec((1, TQ, C_pad), lambda bi, qi: (bi, qi, 0)),  # x (query tile)
            inv((C_pad, C_pad), lambda bi, qi: (0, 0)),                # Wq (scaled)
            inv((C_pad, C_pad), lambda bi, qi: (0, 0)),                # Wk
            inv((C_pad, C_pad), lambda bi, qi: (0, 0)),                # Wv
            inv((1, C_pad), lambda bi, qi: (0, 0)),                    # bq (scaled)
            inv((1, C_pad), lambda bi, qi: (0, 0)),                    # bk
            inv((1, C_pad), lambda bi, qi: (0, 0)),                    # bv
            inv((C_pad, C_pad), lambda bi, qi: (0, 0)),                # Wo
            inv((1, C_pad), lambda bi, qi: (0, 0)),                    # bo
        ]

    def run(single_buffer):
        fn = pl.pallas_call(
            kernel,
            out_shape=jax.ShapeDtypeStruct((B, N_pad, C_pad), orig_dtype),
            grid=(B, num_q_tiles),
            in_specs=make_in_specs(single_buffer),
            out_specs=pl.BlockSpec((1, TQ, C_pad), lambda bi, qi: (bi, qi, 0)),
            scratch_shapes=[
                pltpu.VMEM((N_pad, C_pad), bf16),   # K (all heads, head-major lanes)
                pltpu.VMEM((N_pad, C_pad), bf16),   # V (all heads, head-major lanes)
                pltpu.VMEM((TQ, C_pad), bf16),      # concatenated per-head outputs
            ],
            compiler_params=pltpu.CompilerParams(
                dimension_semantics=("parallel", "arbitrary"),
                vmem_limit_bytes=int(vmem_limit),
            ),
        )
        return fn(x_p, x_p, wq, wk, wv, bq, bk, bv, wo, bo)

    # TODO(synk): when B < number of TensorCores (v7x has 2), the query-tile axis
    #             could additionally be split across cores; not done here.
    if hasattr(pl, "Buffered"):
        try:
            y_pad = jax.block_until_ready(run(True))
        except Exception:
            y_pad = run(False)   # older jax: no pipeline_mode / Buffered(1) support
    else:
        y_pad = run(False)

    return y_pad[:, :N, :C]


def attention_text_reference(x, in_proj_weight, in_proj_bias, out_proj_weight,
                             out_proj_bias, *, num_heads, qk_scale=None):
    """Pure-JAX fp32 reference mirroring the PyTorch forward (prompt=None)."""
    B, N, C = x.shape
    d = C // num_heads
    scale = qk_scale if qk_scale is not None else d ** (-0.5)

    qkv = jnp.einsum('bnc,kc->bnk', x, in_proj_weight) + in_proj_bias
    qkv = qkv.reshape(B, N, 3, num_heads, d).transpose(2, 0, 3, 1, 4)
    q, k, v = qkv[0], qkv[1], qkv[2]                          # (B, H, N, d)
    attn = jnp.einsum('bhnd,bhmd->bhnm', q, k) * scale
    attn = jax.nn.softmax(attn, axis=-1)
    out = jnp.einsum('bhnm,bhmd->bhnd', attn, v)              # (B, H, N, d)
    out = out.transpose(0, 2, 1, 3).reshape(B, N, C)
    return jnp.einsum('bnc,kc->bnk', out, out_proj_weight) + out_proj_bias


if __name__ == "__main__":
    B, N, C = 2, 8, 32
    num_heads = 8

    key = jax.random.PRNGKey(0)
    kx, kw1, kb1, kw2, kb2 = jax.random.split(key, 5)

    x = jax.random.normal(kx, (B, N, C), dtype=jnp.float32)
    in_proj_weight = jax.random.normal(kw1, (3 * C, C), dtype=jnp.float32) * 0.05
    in_proj_bias = jax.random.normal(kb1, (3 * C,), dtype=jnp.float32) * 0.02
    out_proj_weight = jax.random.normal(kw2, (C, C), dtype=jnp.float32) * 0.05
    out_proj_bias = jax.random.normal(kb2, (C,), dtype=jnp.float32) * 0.02

    y = attention_text_pallas(x, in_proj_weight, in_proj_bias,
                              out_proj_weight, out_proj_bias,
                              num_heads=num_heads)
    y = jax.block_until_ready(y)

    y_ref = attention_text_reference(x, in_proj_weight, in_proj_bias,
                                     out_proj_weight, out_proj_bias,
                                     num_heads=num_heads)

    assert y.shape == (B, N, C)
    max_err = float(jnp.max(jnp.abs(y - y_ref)))
    # bf16 MXU operands + fp32 accumulation + approx reciprocal -> relaxed tolerance.
    assert jnp.allclose(y, y_ref, atol=2e-2, rtol=2e-2), f"max abs err = {max_err}"

    print("KERNEL_OK")
</pallas_src>

<mosaic_0001>
module attributes {stable_mosaic.version = 11 : i64} {
  func.func @_attention_text_kernel(%arg0: i32, %arg1: i32, %arg2: memref<1x16x128xbf16, #tpu.memory_space<vmem>>, %arg3: memref<1x16x128xbf16, #tpu.memory_space<vmem>>, %arg4: memref<128x128xbf16, #tpu.memory_space<vmem>>, %arg5: memref<128x128xbf16, #tpu.memory_space<vmem>>, %arg6: memref<128x128xbf16, #tpu.memory_space<vmem>>, %arg7: memref<1x128xf32, #tpu.memory_space<vmem>>, %arg8: memref<1x128xf32, #tpu.memory_space<vmem>>, %arg9: memref<1x128xf32, #tpu.memory_space<vmem>>, %arg10: memref<128x128xbf16, #tpu.memory_space<vmem>>, %arg11: memref<1x128xf32, #tpu.memory_space<vmem>>, %arg12: memref<1x16x128xf32, #tpu.memory_space<vmem>>, %arg13: memref<16x128xbf16, #tpu.memory_space<vmem>>, %arg14: memref<16x128xbf16, #tpu.memory_space<vmem>>, %arg15: memref<16x128xbf16, #tpu.memory_space<vmem>>) attributes {dimension_semantics = [#tpu.dimension_semantics<parallel>, #tpu.dimension_semantics<arbitrary>], iteration_bounds = array<i64: 2, 1>, scalar_prefetch = 0 : i64, scratch_operands = 3 : i64, tpu.core_type = #tpu.core_type<tc>, window_params = [{pipeline_mode = #tpu.pipeline_mode<synchronous>, transform_indices = @transform_0, window_bounds = array<i64: 1, 16, 128>}, {transform_indices = @transform_1, window_bounds = array<i64: 1, 16, 128>}, {pipeline_mode = #tpu.pipeline_mode<synchronous>, transform_indices = @transform_2, window_bounds = array<i64: 128, 128>}, {pipeline_mode = #tpu.pipeline_mode<synchronous>, transform_indices = @transform_3, window_bounds = array<i64: 128, 128>}, {pipeline_mode = #tpu.pipeline_mode<synchronous>, transform_indices = @transform_4, window_bounds = array<i64: 128, 128>}, {pipeline_mode = #tpu.pipeline_mode<synchronous>, transform_indices = @transform_5, window_bounds = array<i64: 1, 128>}, {pipeline_mode = #tpu.pipeline_mode<synchronous>, transform_indices = @transform_6, window_bounds = array<i64: 1, 128>}, {pipeline_mode = #tpu.pipeline_mode<synchronous>, transform_indices = @transform_7, window_bounds = array<i64: 1, 128>}, {pipeline_mode = #tpu.pipeline_mode<synchronous>, transform_indices = @transform_8, window_bounds = array<i64: 128, 128>}, {pipeline_mode = #tpu.pipeline_mode<synchronous>, transform_indices = @transform_9, window_bounds = array<i64: 1, 128>}, {transform_indices = @transform_10, window_bounds = array<i64: 1, 16, 128>}]} {
    %c0_i32 = arith.constant 0 : i32
    %0 = arith.cmpi eq, %arg1, %c0_i32 : i32
    %1 = arith.extui %0 : i1 to i32
    %c0_i32_0 = arith.constant 0 : i32
    %2 = arith.cmpi ne, %1, %c0_i32_0 : i32
    scf.if %2 {
      %c0_101 = arith.constant 0 : index
      %c0_102 = arith.constant 0 : index
      %c0_103 = arith.constant 0 : index
      %185 = vector.load %arg2[%c0_101, %c0_102, %c0_103] : memref<1x16x128xbf16, #tpu.memory_space<vmem>>, vector<1x16x128xbf16>
      %186 = vector.shape_cast %185 : vector<1x16x128xbf16> to vector<16x128xbf16>
      %c0_104 = arith.constant 0 : index
      %c0_105 = arith.constant 0 : index
      %187 = vector.load %arg5[%c0_104, %c0_105] : memref<128x128xbf16, #tpu.memory_space<vmem>>, vector<128x128xbf16>
      %cst_106 = arith.constant dense<0.000000e+00> : vector<16x128xf32>
      %188 = tpu.matmul %186, %187, %cst_106 {dimension_numbers = #tpu.dot_dimension_numbers<[1], [0], [0], [1], [0, 0, 1, 1], [], []>} : vector<16x128xbf16>, vector<128x128xbf16>, vector<16x128xf32> -> vector<16x128xf32>
      %c0_107 = arith.constant 0 : index
      %c0_108 = arith.constant 0 : index
      %189 = vector.load %arg8[%c0_107, %c0_108] : memref<1x128xf32, #tpu.memory_space<vmem>>, vector<1x128xf32>
      %190 = vector.broadcast %189 : vector<1x128xf32> to vector<16x128xf32>
      %191 = arith.addf %188, %190 : vector<16x128xf32>
      %c0_109 = arith.constant 0 : index
      %c0_110 = arith.constant 0 : index
      %192 = vector.load %arg6[%c0_109, %c0_110] : memref<128x128xbf16, #tpu.memory_space<vmem>>, vector<128x128xbf16>
      %cst_111 = arith.constant dense<0.000000e+00> : vector<16x128xf32>
      %193 = tpu.matmul %186, %192, %cst_111 {dimension_numbers = #tpu.dot_dimension_numbers<[1], [0], [0], [1], [0, 0, 1, 1], [], []>} : vector<16x128xbf16>, vector<128x128xbf16>, vector<16x128xf32> -> vector<16x128xf32>
      %c0_112 = arith.constant 0 : index
      %c0_113 = arith.constant 0 : index
      %194 = vector.load %arg9[%c0_112, %c0_113] : memref<1x128xf32, #tpu.memory_space<vmem>>, vector<1x128xf32>
      %195 = vector.broadcast %194 : vector<1x128xf32> to vector<16x128xf32>
      %196 = arith.addf %193, %195 : vector<16x128xf32>
      %197 = arith.truncf %191 : vector<16x128xf32> to vector<16x128xbf16>
      %c0_114 = arith.constant 0 : index
      %c0_115 = arith.constant 0 : index
      %198 = vector.load %arg13[%c0_114, %c0_115] : memref<16x128xbf16, #tpu.memory_space<vmem>>, vector<16x128xbf16>
      tpu.vector_store %arg13[%c0_114, %c0_115], %197 {strides = array<i32>} : memref<16x128xbf16, #tpu.memory_space<vmem>>, vector<16x128xbf16>,
      %199 = arith.truncf %196 : vector<16x128xf32> to vector<16x128xbf16>
      %c0_116 = arith.constant 0 : index
      %c0_117 = arith.constant 0 : index
      %200 = vector.load %arg14[%c0_116, %c0_117] : memref<16x128xbf16, #tpu.memory_space<vmem>>, vector<16x128xbf16>
      tpu.vector_store %arg14[%c0_116, %c0_117], %199 {strides = array<i32>} : memref<16x128xbf16, #tpu.memory_space<vmem>>, vector<16x128xbf16>,
    } else {
    }
    %c0 = arith.constant 0 : index
    %c0_1 = arith.constant 0 : index
    %c0_2 = arith.constant 0 : index
    %3 = vector.load %arg3[%c0, %c0_1, %c0_2] : memref<1x16x128xbf16, #tpu.memory_space<vmem>>, vector<1x16x128xbf16>
    %4 = vector.shape_cast %3 : vector<1x16x128xbf16> to vector<16x128xbf16>
    %c0_3 = arith.constant 0 : index
    %c0_4 = arith.constant 0 : index
    %5 = vector.load %arg4[%c0_3, %c0_4] : memref<128x128xbf16, #tpu.memory_space<vmem>>, vector<128x128xbf16>
    %cst = arith.constant dense<0.000000e+00> : vector<16x128xf32>
    %6 = tpu.matmul %4, %5, %cst {dimension_numbers = #tpu.dot_dimension_numbers<[1], [0], [0], [1], [0, 0, 1, 1], [], []>} : vector<16x128xbf16>, vector<128x128xbf16>, vector<16x128xf32> -> vector<16x128xf32>
    %c0_5 = arith.constant 0 : index
    %c0_6 = arith.constant 0 : index
    %7 = vector.load %arg7[%c0_5, %c0_6] : memref<1x128xf32, #tpu.memory_space<vmem>>, vector<1x128xf32>
    %8 = vector.broadcast %7 : vector<1x128xf32> to vector<16x128xf32>
    %9 = arith.addf %6, %8 : vector<16x128xf32>
    %10 = arith.truncf %9 : vector<16x128xf32> to vector<16x128xbf16>
    %11 = tpu.iota {dimensions = array<i32: 1>} : vector<16x16xi32>
    %c8_i32 = arith.constant 8 : i32
    %12 = vector.broadcast %c8_i32 : i32 to vector<16x16xi32>
    %13 = arith.cmpi slt, %11, %12 : vector<16x16xi32>
    %cst_7 = arith.constant 0.000000e+00 : bf16
    %14 = vector.broadcast %cst_7 : bf16 to vector<16x128xbf16>
    %c0_8 = arith.constant 0 : index
    %c0_9 = arith.constant 0 : index
    %15 = vector.load %arg15[%c0_8, %c0_9] : memref<16x128xbf16, #tpu.memory_space<vmem>>, vector<16x128xbf16>
    tpu.vector_store %arg15[%c0_8, %c0_9], %14 {strides = array<i32>} : memref<16x128xbf16, #tpu.memory_space<vmem>>, vector<16x128xbf16>,
    %16 = vector.extract_strided_slice %10 {offsets = [0, 0], sizes = [16, 4], strides = [1, 1]} : vector<16x128xbf16> to vector<16x4xbf16>
    %c0_10 = arith.constant 0 : index
    %c0_11 = arith.constant 0 : index
    %17 = vector.load %arg13[%c0_10, %c0_11] : memref<16x128xbf16, #tpu.memory_space<vmem>>, vector<16x4xbf16>
    %cst_12 = arith.constant dense<0.000000e+00> : vector<16x16xf32>
    %18 = tpu.matmul %16, %17, %cst_12 {dimension_numbers = #tpu.dot_dimension_numbers<[1], [1], [0], [0], [0, 0, 1, 0], [], []>} : vector<16x4xbf16>, vector<16x4xbf16>, vector<16x16xf32> -> vector<16x16xf32>
    %cst_13 = arith.constant -1.000000e+30 : f32
    %19 = vector.broadcast %cst_13 : f32 to vector<16x16xf32>
    %20 = arith.select %13, %18, %19 : vector<16x16xi1>, vector<16x16xf32>
    %cst_14 = arith.constant dense<0xFF800000> : vector<16xf32>
    %21 = vector.multi_reduction <maximumf>, %20, %cst_14 [1] : vector<16x16xf32> to vector<16xf32>
    %22 = vector.shape_cast %21 : vector<16xf32> to vector<16x1xf32>
    %23 = vector.broadcast %22 : vector<16x1xf32> to vector<16x16xf32>
    %24 = arith.subf %20, %23 : vector<16x16xf32>
    %25 = math.exp %24 : vector<16x16xf32>
    %cst_15 = arith.constant dense<0.000000e+00> : vector<16xf32>
    %26 = vector.multi_reduction <add>, %25, %cst_15 [1] : vector<16x16xf32> to vector<16xf32>
    %27 = vector.shape_cast %26 : vector<16xf32> to vector<16x1xf32>
    %28 = arith.truncf %25 : vector<16x16xf32> to vector<16x16xbf16>
    %c0_16 = arith.constant 0 : index
    %c0_17 = arith.constant 0 : index
    %29 = vector.load %arg14[%c0_16, %c0_17] : memref<16x128xbf16, #tpu.memory_space<vmem>>, vector<16x4xbf16>
    %cst_18 = arith.constant dense<0.000000e+00> : vector<16x4xf32>
    %30 = tpu.matmul %28, %29, %cst_18 {dimension_numbers = #tpu.dot_dimension_numbers<[1], [0], [0], [1], [0, 0, 1, 1], [], []>} : vector<16x16xbf16>, vector<16x4xbf16>, vector<16x4xf32> -> vector<16x4xf32>
    %31 = tpu.reciprocal %27 {approx = true} : vector<16x1xf32> -> vector<16x1xf32>
    %32 = vector.broadcast %31 : vector<16x1xf32> to vector<16x4xf32>
    %33 = arith.mulf %30, %32 : vector<16x4xf32>
    %34 = arith.truncf %33 : vector<16x4xf32> to vector<16x4xbf16>
    %c0_19 = arith.constant 0 : index
    %c0_20 = arith.constant 0 : index
    %35 = vector.load %arg15[%c0_19, %c0_20] : memref<16x128xbf16, #tpu.memory_space<vmem>>, vector<16x4xbf16>
    tpu.vector_store %arg15[%c0_19, %c0_20], %34 {strides = array<i32>} : memref<16x128xbf16, #tpu.memory_space<vmem>>, vector<16x4xbf16>,
    %36 = vector.extract_strided_slice %10 {offsets = [0, 4], sizes = [16, 4], strides = [1, 1]} : vector<16x128xbf16> to vector<16x4xbf16>
    %c0_21 = arith.constant 0 : index
    %c4 = arith.constant 4 : index
    %37 = vector.load %arg13[%c0_21, %c4] : memref<16x128xbf16, #tpu.memory_space<vmem>>, vector<16x4xbf16>
    %cst_22 = arith.constant dense<0.000000e+00> : vector<16x16xf32>
    %38 = tpu.matmul %36, %37, %cst_22 {dimension_numbers = #tpu.dot_dimension_numbers<[1], [1], [0], [0], [0, 0, 1, 0], [], []>} : vector<16x4xbf16>, vector<16x4xbf16>, vector<16x16xf32> -> vector<16x16xf32>
    %cst_23 = arith.constant -1.000000e+30 : f32
    %39 = vector.broadcast %cst_23 : f32 to vector<16x16xf32>
    %40 = arith.select %13, %38, %39 : vector<16x16xi1>, vector<16x16xf32>
    %cst_24 = arith.constant dense<0xFF800000> : vector<16xf32>
    %41 = vector.multi_reduction <maximumf>, %40, %cst_24 [1] : vector<16x16xf32> to vector<16xf32>
    %42 = vector.shape_cast %41 : vector<16xf32> to vector<16x1xf32>
    %43 = vector.broadcast %42 : vector<16x1xf32> to vector<16x16xf32>
    %44 = arith.subf %40, %43 : vector<16x16xf32>
    %45 = math.exp %44 : vector<16x16xf32>
    %cst_25 = arith.constant dense<0.000000e+00> : vector<16xf32>
    %46 = vector.multi_reduction <add>, %45, %cst_25 [1] : vector<16x16xf32> to vector<16xf32>
    %47 = vector.shape_cast %46 : vector<16xf32> to vector<16x1xf32>
    %48 = arith.truncf %45 : vector<16x16xf32> to vector<16x16xbf16>
    %c0_26 = arith.constant 0 : index
    %c4_27 = arith.constant 4 : index
    %49 = vector.load %arg14[%c0_26, %c4_27] : memref<16x128xbf16, #tpu.memory_space<vmem>>, vector<16x4xbf16>
    %cst_28 = arith.constant dense<0.000000e+00> : vector<16x4xf32>
    %50 = tpu.matmul %48, %49, %cst_28 {dimension_numbers = #tpu.dot_dimension_numbers<[1], [0], [0], [1], [0, 0, 1, 1], [], []>} : vector<16x16xbf16>, vector<16x4xbf16>, vector<16x4xf32> -> vector<16x4xf32>
    %51 = tpu.reciprocal %47 {approx = true} : vector<16x1xf32> -> vector<16x1xf32>
    %52 = vector.broadcast %51 : vector<16x1xf32> to vector<16x4xf32>
    %53 = arith.mulf %50, %52 : vector<16x4xf32>
    %54 = arith.truncf %53 : vector<16x4xf32> to vector<16x4xbf16>
    %c0_29 = arith.constant 0 : index
    %c4_30 = arith.constant 4 : index
    %55 = vector.load %arg15[%c0_29, %c4_30] : memref<16x128xbf16, #tpu.memory_space<vmem>>, vector<16x4xbf16>
    tpu.vector_store %arg15[%c0_29, %c4_30], %54 {strides = array<i32>} : memref<16x128xbf16, #tpu.memory_space<vmem>>, vector<16x4xbf16>,
    %56 = vector.extract_strided_slice %10 {offsets = [0, 8], sizes = [16, 4], strides = [1, 1]} : vector<16x128xbf16> to vector<16x4xbf16>
    %c0_31 = arith.constant 0 : index
    %c8 = arith.constant 8 : index
    %57 = vector.load %arg13[%c0_31, %c8] : memref<16x128xbf16, #tpu.memory_space<vmem>>, vector<16x4xbf16>
    %cst_32 = arith.constant dense<0.000000e+00> : vector<16x16xf32>
    %58 = tpu.matmul %56, %57, %cst_32 {dimension_numbers = #tpu.dot_dimension_numbers<[1], [1], [0], [0], [0, 0, 1, 0], [], []>} : vector<16x4xbf16>, vector<16x4xbf16>, vector<16x16xf32> -> vector<16x16xf32>
    %cst_33 = arith.constant -1.000000e+30 : f32
    %59 = vector.broadcast %cst_33 : f32 to vector<16x16xf32>
    %60 = arith.select %13, %58, %59 : vector<16x16xi1>, vector<16x16xf32>
    %cst_34 = arith.constant dense<0xFF800000> : vector<16xf32>
    %61 = vector.multi_reduction <maximumf>, %60, %cst_34 [1] : vector<16x16xf32> to vector<16xf32>
    %62 = vector.shape_cast %61 : vector<16xf32> to vector<16x1xf32>
    %63 = vector.broadcast %62 : vector<16x1xf32> to vector<16x16xf32>
    %64 = arith.subf %60, %63 : vector<16x16xf32>
    %65 = math.exp %64 : vector<16x16xf32>
    %cst_35 = arith.constant dense<0.000000e+00> : vector<16xf32>
    %66 = vector.multi_reduction <add>, %65, %cst_35 [1] : vector<16x16xf32> to vector<16xf32>
    %67 = vector.shape_cast %66 : vector<16xf32> to vector<16x1xf32>
    %68 = arith.truncf %65 : vector<16x16xf32> to vector<16x16xbf16>
    %c0_36 = arith.constant 0 : index
    %c8_37 = arith.constant 8 : index
    %69 = vector.load %arg14[%c0_36, %c8_37] : memref<16x128xbf16, #tpu.memory_space<vmem>>, vector<16x4xbf16>
    %cst_38 = arith.constant dense<0.000000e+00> : vector<16x4xf32>
    %70 = tpu.matmul %68, %69, %cst_38 {dimension_numbers = #tpu.dot_dimension_numbers<[1], [0], [0], [1], [0, 0, 1, 1], [], []>} : vector<16x16xbf16>, vector<16x4xbf16>, vector<16x4xf32> -> vector<16x4xf32>
    %71 = tpu.reciprocal %67 {approx = true} : vector<16x1xf32> -> vector<16x1xf32>
    %72 = vector.broadcast %71 : vector<16x1xf32> to vector<16x4xf32>
    %73 = arith.mulf %70, %72 : vector<16x4xf32>
    %74 = arith.truncf %73 : vector<16x4xf32> to vector<16x4xbf16>
    %c0_39 = arith.constant 0 : index
    %c8_40 = arith.constant 8 : index
    %75 = vector.load %arg15[%c0_39, %c8_40] : memref<16x128xbf16, #tpu.memory_space<vmem>>, vector<16x4xbf16>
    tpu.vector_store %arg15[%c0_39, %c8_40], %74 {strides = array<i32>} : memref<16x128xbf16, #tpu.memory_space<vmem>>, vector<16x4xbf16>,
    %76 = vector.extract_strided_slice %10 {offsets = [0, 12], sizes = [16, 4], strides = [1, 1]} : vector<16x128xbf16> to vector<16x4xbf16>
    %c0_41 = arith.constant 0 : index
    %c12 = arith.constant 12 : index
    %77 = vector.load %arg13[%c0_41, %c12] : memref<16x128xbf16, #tpu.memory_space<vmem>>, vector<16x4xbf16>
    %cst_42 = arith.constant dense<0.000000e+00> : vector<16x16xf32>
    %78 = tpu.matmul %76, %77, %cst_42 {dimension_numbers = #tpu.dot_dimension_numbers<[1], [1], [0], [0], [0, 0, 1, 0], [], []>} : vector<16x4xbf16>, vector<16x4xbf16>, vector<16x16xf32> -> vector<16x16xf32>
    %cst_43 = arith.constant -1.000000e+30 : f32
    %79 = vector.broadcast %cst_43 : f32 to vector<16x16xf32>
    %80 = arith.select %13, %78, %79 : vector<16x16xi1>, vector<16x16xf32>
    %cst_44 = arith.constant dense<0xFF800000> : vector<16xf32>
    %81 = vector.multi_reduction <maximumf>, %80, %cst_44 [1] : vector<16x16xf32> to vector<16xf32>
    %82 = vector.shape_cast %81 : vector<16xf32> to vector<16x1xf32>
    %83 = vector.broadcast %82 : vector<16x1xf32> to vector<16x16xf32>
    %84 = arith.subf %80, %83 : vector<16x16xf32>
    %85 = math.exp %84 : vector<16x16xf32>
    %cst_45 = arith.constant dense<0.000000e+00> : vector<16xf32>
    %86 = vector.multi_reduction <add>, %85, %cst_45 [1] : vector<16x16xf32> to vector<16xf32>
    %87 = vector.shape_cast %86 : vector<16xf32> to vector<16x1xf32>
    %88 = arith.truncf %85 : vector<16x16xf32> to vector<16x16xbf16>
    %c0_46 = arith.constant 0 : index
    %c12_47 = arith.constant 12 : index
    %89 = vector.load %arg14[%c0_46, %c12_47] : memref<16x128xbf16, #tpu.memory_space<vmem>>, vector<16x4xbf16>
    %cst_48 = arith.constant dense<0.000000e+00> : vector<16x4xf32>
    %90 = tpu.matmul %88, %89, %cst_48 {dimension_numbers = #tpu.dot_dimension_numbers<[1], [0], [0], [1], [0, 0, 1, 1], [], []>} : vector<16x16xbf16>, vector<16x4xbf16>, vector<16x4xf32> -> vector<16x4xf32>
    %91 = tpu.reciprocal %87 {approx = true} : vector<16x1xf32> -> vector<16x1xf32>
    %92 = vector.broadcast %91 : vector<16x1xf32> to vector<16x4xf32>
    %93 = arith.mulf %90, %92 : vector<16x4xf32>
    %94 = arith.truncf %93 : vector<16x4xf32> to vector<16x4xbf16>
    %c0_49 = arith.constant 0 : index
    %c12_50 = arith.constant 12 : index
    %95 = vector.load %arg15[%c0_49, %c12_50] : memref<16x128xbf16, #tpu.memory_space<vmem>>, vector<16x4xbf16>
    tpu.vector_store %arg15[%c0_49, %c12_50], %94 {strides = array<i32>} : memref<16x128xbf16, #tpu.memory_space<vmem>>, vector<16x4xbf16>,
    %96 = vector.extract_strided_slice %10 {offsets = [0, 16], sizes = [16, 4], strides = [1, 1]} : vector<16x128xbf16> to vector<16x4xbf16>
    %c0_51 = arith.constant 0 : index
    %c16 = arith.constant 16 : index
    %97 = vector.load %arg13[%c0_51, %c16] : memref<16x128xbf16, #tpu.memory_space<vmem>>, vector<16x4xbf16>
    %cst_52 = arith.constant dense<0.000000e+00> : vector<16x16xf32>
    %98 = tpu.matmul %96, %97, %cst_52 {dimension_numbers = #tpu.dot_dimension_numbers<[1], [1], [0], [0], [0, 0, 1, 0], [], []>} : vector<16x4xbf16>, vector<16x4xbf16>, vector<16x16xf32> -> vector<16x16xf32>
    %cst_53 = arith.constant -1.000000e+30 : f32
    %99 = vector.broadcast %cst_53 : f32 to vector<16x16xf32>
    %100 = arith.select %13, %98, %99 : vector<16x16xi1>, vector<16x16xf32>
    %cst_54 = arith.constant dense<0xFF800000> : vector<16xf32>
    %101 = vector.multi_reduction <maximumf>, %100, %cst_54 [1] : vector<16x16xf32> to vector<16xf32>
    %102 = vector.shape_cast %101 : vector<16xf32> to vector<16x1xf32>
    %103 = vector.broadcast %102 : vector<16x1xf32> to vector<16x16xf32>
    %104 = arith.subf %100, %103 : vector<16x16xf32>
    %105 = math.exp %104 : vector<16x16xf32>
    %cst_55 = arith.constant dense<0.000000e+00> : vector<16xf32>
    %106 = vector.multi_reduction <add>, %105, %cst_55 [1] : vector<16x16xf32> to vector<16xf32>
    %107 = vector.shape_cast %106 : vector<16xf32> to vector<16x1xf32>
    %108 = arith.truncf %105 : vector<16x16xf32> to vector<16x16xbf16>
    %c0_56 = arith.constant 0 : index
    %c16_57 = arith.constant 16 : index
    %109 = vector.load %arg14[%c0_56, %c16_57] : memref<16x128xbf16, #tpu.memory_space<vmem>>, vector<16x4xbf16>
    %cst_58 = arith.constant dense<0.000000e+00> : vector<16x4xf32>
    %110 = tpu.matmul %108, %109, %cst_58 {dimension_numbers = #tpu.dot_dimension_numbers<[1], [0], [0], [1], [0, 0, 1, 1], [], []>} : vector<16x16xbf16>, vector<16x4xbf16>, vector<16x4xf32> -> vector<16x4xf32>
    %111 = tpu.reciprocal %107 {approx = true} : vector<16x1xf32> -> vector<16x1xf32>
    %112 = vector.broadcast %111 : vector<16x1xf32> to vector<16x4xf32>
    %113 = arith.mulf %110, %112 : vector<16x4xf32>
    %114 = arith.truncf %113 : vector<16x4xf32> to vector<16x4xbf16>
    %c0_59 = arith.constant 0 : index
    %c16_60 = arith.constant 16 : index
    %115 = vector.load %arg15[%c0_59, %c16_60] : memref<16x128xbf16, #tpu.memory_space<vmem>>, vector<16x4xbf16>
    tpu.vector_store %arg15[%c0_59, %c16_60], %114 {strides = array<i32>} : memref<16x128xbf16, #tpu.memory_space<vmem>>, vector<16x4xbf16>,
    %116 = vector.extract_strided_slice %10 {offsets = [0, 20], sizes = [16, 4], strides = [1, 1]} : vector<16x128xbf16> to vector<16x4xbf16>
    %c0_61 = arith.constant 0 : index
    %c20 = arith.constant 20 : index
    %117 = vector.load %arg13[%c0_61, %c20] : memref<16x128xbf16, #tpu.memory_space<vmem>>, vector<16x4xbf16>
    %cst_62 = arith.constant dense<0.000000e+00> : vector<16x16xf32>
    %118 = tpu.matmul %116, %117, %cst_62 {dimension_numbers = #tpu.dot_dimension_numbers<[1], [1], [0], [0], [0, 0, 1, 0], [], []>} : vector<16x4xbf16>, vector<16x4xbf16>, vector<16x16xf32> -> vector<16x16xf32>
    %cst_63 = arith.constant -1.000000e+30 : f32
    %119 = vector.broadcast %cst_63 : f32 to vector<16x16xf32>
    %120 = arith.select %13, %118, %119 : vector<16x16xi1>, vector<16x16xf32>
    %cst_64 = arith.constant dense<0xFF800000> : vector<16xf32>
    %121 = vector.multi_reduction <maximumf>, %120, %cst_64 [1] : vector<16x16xf32> to vector<16xf32>
    %122 = vector.shape_cast %121 : vector<16xf32> to vector<16x1xf32>
    %123 = vector.broadcast %122 : vector<16x1xf32> to vector<16x16xf32>
    %124 = arith.subf %120, %123 : vector<16x16xf32>
    %125 = math.exp %124 : vector<16x16xf32>
    %cst_65 = arith.constant dense<0.000000e+00> : vector<16xf32>
    %126 = vector.multi_reduction <add>, %125, %cst_65 [1] : vector<16x16xf32> to vector<16xf32>
    %127 = vector.shape_cast %126 : vector<16xf32> to vector<16x1xf32>
    %128 = arith.truncf %125 : vector<16x16xf32> to vector<16x16xbf16>
    %c0_66 = arith.constant 0 : index
    %c20_67 = arith.constant 20 : index
    %129 = vector.load %arg14[%c0_66, %c20_67] : memref<16x128xbf16, #tpu.memory_space<vmem>>, vector<16x4xbf16>
    %cst_68 = arith.constant dense<0.000000e+00> : vector<16x4xf32>
    %130 = tpu.matmul %128, %129, %cst_68 {dimension_numbers = #tpu.dot_dimension_numbers<[1], [0], [0], [1], [0, 0, 1, 1], [], []>} : vector<16x16xbf16>, vector<16x4xbf16>, vector<16x4xf32> -> vector<16x4xf32>
    %131 = tpu.reciprocal %127 {approx = true} : vector<16x1xf32> -> vector<16x1xf32>
    %132 = vector.broadcast %131 : vector<16x1xf32> to vector<16x4xf32>
    %133 = arith.mulf %130, %132 : vector<16x4xf32>
    %134 = arith.truncf %133 : vector<16x4xf32> to vector<16x4xbf16>
    %c0_69 = arith.constant 0 : index
    %c20_70 = arith.constant 20 : index
    %135 = vector.load %arg15[%c0_69, %c20_70] : memref<16x128xbf16, #tpu.memory_space<vmem>>, vector<16x4xbf16>
    tpu.vector_store %arg15[%c0_69, %c20_70], %134 {strides = array<i32>} : memref<16x128xbf16, #tpu.memory_space<vmem>>, vector<16x4xbf16>,
    %136 = vector.extract_strided_slice %10 {offsets = [0, 24], sizes = [16, 4], strides = [1, 1]} : vector<16x128xbf16> to vector<16x4xbf16>
    %c0_71 = arith.constant 0 : index
    %c24 = arith.constant 24 : index
    %137 = vector.load %arg13[%c0_71, %c24] : memref<16x128xbf16, #tpu.memory_space<vmem>>, vector<16x4xbf16>
    %cst_72 = arith.constant dense<0.000000e+00> : vector<16x16xf32>
    %138 = tpu.matmul %136, %137, %cst_72 {dimension_numbers = #tpu.dot_dimension_numbers<[1], [1], [0], [0], [0, 0, 1, 0], [], []>} : vector<16x4xbf16>, vector<16x4xbf16>, vector<16x16xf32> -> vector<16x16xf32>
    %cst_73 = arith.constant -1.000000e+30 : f32
    %139 = vector.broadcast %cst_73 : f32 to vector<16x16xf32>
    %140 = arith.select %13, %138, %139 : vector<16x16xi1>, vector<16x16xf32>
    %cst_74 = arith.constant dense<0xFF800000> : vector<16xf32>
    %141 = vector.multi_reduction <maximumf>, %140, %cst_74 [1] : vector<16x16xf32> to vector<16xf32>
    %142 = vector.shape_cast %141 : vector<16xf32> to vector<16x1xf32>
    %143 = vector.broadcast %142 : vector<16x1xf32> to vector<16x16xf32>
    %144 = arith.subf %140, %143 : vector<16x16xf32>
    %145 = math.exp %144 : vector<16x16xf32>
    %cst_75 = arith.constant dense<0.000000e+00> : vector<16xf32>
    %146 = vector.multi_reduction <add>, %145, %cst_75 [1] : vector<16x16xf32> to vector<16xf32>
    %147 = vector.shape_cast %146 : vector<16xf32> to vector<16x1xf32>
    %148 = arith.truncf %145 : vector<16x16xf32> to vector<16x16xbf16>
    %c0_76 = arith.constant 0 : index
    %c24_77 = arith.constant 24 : index
    %149 = vector.load %arg14[%c0_76, %c24_77] : memref<16x128xbf16, #tpu.memory_space<vmem>>, vector<16x4xbf16>
    %cst_78 = arith.constant dense<0.000000e+00> : vector<16x4xf32>
    %150 = tpu.matmul %148, %149, %cst_78 {dimension_numbers = #tpu.dot_dimension_numbers<[1], [0], [0], [1], [0, 0, 1, 1], [], []>} : vector<16x16xbf16>, vector<16x4xbf16>, vector<16x4xf32> -> vector<16x4xf32>
    %151 = tpu.reciprocal %147 {approx = true} : vector<16x1xf32> -> vector<16x1xf32>
    %152 = vector.broadcast %151 : vector<16x1xf32> to vector<16x4xf32>
    %153 = arith.mulf %150, %152 : vector<16x4xf32>
    %154 = arith.truncf %153 : vector<16x4xf32> to vector<16x4xbf16>
    %c0_79 = arith.constant 0 : index
    %c24_80 = arith.constant 24 : index
    %155 = vector.load %arg15[%c0_79, %c24_80] : memref<16x128xbf16, #tpu.memory_space<vmem>>, vector<16x4xbf16>
    tpu.vector_store %arg15[%c0_79, %c24_80], %154 {strides = array<i32>} : memref<16x128xbf16, #tpu.memory_space<vmem>>, vector<16x4xbf16>,
    %156 = vector.extract_strided_slice %10 {offsets = [0, 28], sizes = [16, 4], strides = [1, 1]} : vector<16x128xbf16> to vector<16x4xbf16>
    %c0_81 = arith.constant 0 : index
    %c28 = arith.constant 28 : index
    %157 = vector.load %arg13[%c0_81, %c28] : memref<16x128xbf16, #tpu.memory_space<vmem>>, vector<16x4xbf16>
    %cst_82 = arith.constant dense<0.000000e+00> : vector<16x16xf32>
    %158 = tpu.matmul %156, %157, %cst_82 {dimension_numbers = #tpu.dot_dimension_numbers<[1], [1], [0], [0], [0, 0, 1, 0], [], []>} : vector<16x4xbf16>, vector<16x4xbf16>, vector<16x16xf32> -> vector<16x16xf32>
    %cst_83 = arith.constant -1.000000e+30 : f32
    %159 = vector.broadcast %cst_83 : f32 to vector<16x16xf32>
    %160 = arith.select %13, %158, %159 : vector<16x16xi1>, vector<16x16xf32>
    %cst_84 = arith.constant dense<0xFF800000> : vector<16xf32>
    %161 = vector.multi_reduction <maximumf>, %160, %cst_84 [1] : vector<16x16xf32> to vector<16xf32>
    %162 = vector.shape_cast %161 : vector<16xf32> to vector<16x1xf32>
    %163 = vector.broadcast %162 : vector<16x1xf32> to vector<16x16xf32>
    %164 = arith.subf %160, %163 : vector<16x16xf32>
    %165 = math.exp %164 : vector<16x16xf32>
    %cst_85 = arith.constant dense<0.000000e+00> : vector<16xf32>
    %166 = vector.multi_reduction <add>, %165, %cst_85 [1] : vector<16x16xf32> to vector<16xf32>
    %167 = vector.shape_cast %166 : vector<16xf32> to vector<16x1xf32>
    %168 = arith.truncf %165 : vector<16x16xf32> to vector<16x16xbf16>
    %c0_86 = arith.constant 0 : index
    %c28_87 = arith.constant 28 : index
    %169 = vector.load %arg14[%c0_86, %c28_87] : memref<16x128xbf16, #tpu.memory_space<vmem>>, vector<16x4xbf16>
    %cst_88 = arith.constant dense<0.000000e+00> : vector<16x4xf32>
    %170 = tpu.matmul %168, %169, %cst_88 {dimension_numbers = #tpu.dot_dimension_numbers<[1], [0], [0], [1], [0, 0, 1, 1], [], []>} : vector<16x16xbf16>, vector<16x4xbf16>, vector<16x4xf32> -> vector<16x4xf32>
    %171 = tpu.reciprocal %167 {approx = true} : vector<16x1xf32> -> vector<16x1xf32>
    %172 = vector.broadcast %171 : vector<16x1xf32> to vector<16x4xf32>
    %173 = arith.mulf %170, %172 : vector<16x4xf32>
    %174 = arith.truncf %173 : vector<16x4xf32> to vector<16x4xbf16>
    %c0_89 = arith.constant 0 : index
    %c28_90 = arith.constant 28 : index
    %175 = vector.load %arg15[%c0_89, %c28_90] : memref<16x128xbf16, #tpu.memory_space<vmem>>, vector<16x4xbf16>
    tpu.vector_store %arg15[%c0_89, %c28_90], %174 {strides = array<i32>} : memref<16x128xbf16, #tpu.memory_space<vmem>>, vector<16x4xbf16>,
    %c0_91 = arith.constant 0 : index
    %c0_92 = arith.constant 0 : index
    %176 = vector.load %arg15[%c0_91, %c0_92] : memref<16x128xbf16, #tpu.memory_space<vmem>>, vector<16x128xbf16>
    %c0_93 = arith.constant 0 : index
    %c0_94 = arith.constant 0 : index
    %177 = vector.load %arg10[%c0_93, %c0_94] : memref<128x128xbf16, #tpu.memory_space<vmem>>, vector<128x128xbf16>
    %cst_95 = arith.constant dense<0.000000e+00> : vector<16x128xf32>
    %178 = tpu.matmul %176, %177, %cst_95 {dimension_numbers = #tpu.dot_dimension_numbers<[1], [0], [0], [1], [0, 0, 1, 1], [], []>} : vector<16x128xbf16>, vector<128x128xbf16>, vector<16x128xf32> -> vector<16x128xf32>
    %c0_96 = arith.constant 0 : index
    %c0_97 = arith.constant 0 : index
    %179 = vector.load %arg11[%c0_96, %c0_97] : memref<1x128xf32, #tpu.memory_space<vmem>>, vector<1x128xf32>
    %180 = vector.broadcast %179 : vector<1x128xf32> to vector<16x128xf32>
    %181 = arith.addf %178, %180 : vector<16x128xf32>
    %c0_98 = arith.constant 0 : index
    %c0_99 = arith.constant 0 : index
    %c0_100 = arith.constant 0 : index
    %182 = vector.load %arg12[%c0_98, %c0_99, %c0_100] : memref<1x16x128xf32, #tpu.memory_space<vmem>>, vector<1x16x128xf32>
    %183 = vector.shape_cast %182 : vector<1x16x128xf32> to vector<16x128xf32>
    %184 = vector.shape_cast %181 : vector<16x128xf32> to vector<1x16x128xf32>
    tpu.vector_store %arg12[%c0_98, %c0_99, %c0_100], %184 {strides = array<i32>} : memref<1x16x128xf32, #tpu.memory_space<vmem>>, vector<1x16x128xf32>,
    return
  }
  func.func @transform_0(%arg0: i32, %arg1: i32) -> (i32, i32, i32) {
    %c0_i32 = arith.constant 0 : i32
    %c0_i32_0 = arith.constant 0 : i32
    %c0_i32_1 = arith.constant 0 : i32
    return %arg0, %c0_i32, %c0_i32_0 : i32, i32, i32
  }
  func.func @transform_1(%arg0: i32, %arg1: i32) -> (i32, i32, i32) {
    %c0_i32 = arith.constant 0 : i32
    %c0_i32_0 = arith.constant 0 : i32
    return %arg0, %arg1, %c0_i32 : i32, i32, i32
  }
  func.func @transform_2(%arg0: i32, %arg1: i32) -> (i32, i32) {
    %c0_i32 = arith.constant 0 : i32
    %c0_i32_0 = arith.constant 0 : i32
    %c0_i32_1 = arith.constant 0 : i32
    return %c0_i32, %c0_i32_0 : i32, i32
  }
  func.func @transform_3(%arg0: i32, %arg1: i32) -> (i32, i32) {
    %c0_i32 = arith.constant 0 : i32
    %c0_i32_0 = arith.constant 0 : i32
    %c0_i32_1 = arith.constant 0 : i32
    return %c0_i32, %c0_i32_0 : i32, i32
  }
  func.func @transform_4(%arg0: i32, %arg1: i32) -> (i32, i32) {
    %c0_i32 = arith.constant 0 : i32
    %c0_i32_0 = arith.constant 0 : i32
    %c0_i32_1 = arith.constant 0 : i32
    return %c0_i32, %c0_i32_0 : i32, i32
  }
  func.func @transform_5(%arg0: i32, %arg1: i32) -> (i32, i32) {
    %c0_i32 = arith.constant 0 : i32
    %c0_i32_0 = arith.constant 0 : i32
    %c0_i32_1 = arith.constant 0 : i32
    return %c0_i32, %c0_i32_0 : i32, i32
  }
  func.func @transform_6(%arg0: i32, %arg1: i32) -> (i32, i32) {
    %c0_i32 = arith.constant 0 : i32
    %c0_i32_0 = arith.constant 0 : i32
    %c0_i32_1 = arith.constant 0 : i32
    return %c0_i32, %c0_i32_0 : i32, i32
  }
  func.func @transform_7(%arg0: i32, %arg1: i32) -> (i32, i32) {
    %c0_i32 = arith.constant 0 : i32
    %c0_i32_0 = arith.constant 0 : i32
    %c0_i32_1 = arith.constant 0 : i32
    return %c0_i32, %c0_i32_0 : i32, i32
  }
  func.func @transform_8(%arg0: i32, %arg1: i32) -> (i32, i32) {
    %c0_i32 = arith.constant 0 : i32
    %c0_i32_0 = arith.constant 0 : i32
    %c0_i32_1 = arith.constant 0 : i32
    return %c0_i32, %c0_i32_0 : i32, i32
  }
  func.func @transform_9(%arg0: i32, %arg1: i32) -> (i32, i32) {
    %c0_i32 = arith.constant 0 : i32
    %c0_i32_0 = arith.constant 0 : i32
    %c0_i32_1 = arith.constant 0 : i32
    return %c0_i32, %c0_i32_0 : i32, i32
  }
  func.func @transform_10(%arg0: i32, %arg1: i32) -> (i32, i32, i32) {
    %c0_i32 = arith.constant 0 : i32
    %c0_i32_0 = arith.constant 0 : i32
    return %arg0, %arg1, %c0_i32 : i32, i32, i32
  }
}

module attributes {stable_mosaic.version = 11 : i64} {
  func.func @_attention_text_kernel(%arg0: i32, %arg1: i32, %arg2: memref<1x16x128xbf16, #tpu.memory_space<vmem>>, %arg3: memref<1x16x128xbf16, #tpu.memory_space<vmem>>, %arg4: memref<128x128xbf16, #tpu.memory_space<vmem>>, %arg5: memref<128x128xbf16, #tpu.memory_space<vmem>>, %arg6: memref<128x128xbf16, #tpu.memory_space<vmem>>, %arg7: memref<1x128xf32, #tpu.memory_space<vmem>>, %arg8: memref<1x128xf32, #tpu.memory_space<vmem>>, %arg9: memref<1x128xf32, #tpu.memory_space<vmem>>, %arg10: memref<128x128xbf16, #tpu.memory_space<vmem>>, %arg11: memref<1x128xf32, #tpu.memory_space<vmem>>, %arg12: memref<1x16x128xf32, #tpu.memory_space<vmem>>, %arg13: memref<16x128xbf16, #tpu.memory_space<vmem>>, %arg14: memref<16x128xbf16, #tpu.memory_space<vmem>>, %arg15: memref<16x128xbf16, #tpu.memory_space<vmem>>) attributes {dimension_semantics = [#tpu.dimension_semantics<parallel>, #tpu.dimension_semantics<arbitrary>], iteration_bounds = array<i64: 2, 1>, scalar_prefetch = 0 : i64, scratch_operands = 3 : i64, tpu.core_type = #tpu.core_type<tc>, window_params = [{transform_indices = @transform_0, window_bounds = array<i64: 1, 16, 128>}, {transform_indices = @transform_1, window_bounds = array<i64: 1, 16, 128>}, {pipeline_mode = #tpu.pipeline_mode<synchronous>, transform_indices = @transform_2, window_bounds = array<i64: 128, 128>}, {pipeline_mode = #tpu.pipeline_mode<synchronous>, transform_indices = @transform_3, window_bounds = array<i64: 128, 128>}, {pipeline_mode = #tpu.pipeline_mode<synchronous>, transform_indices = @transform_4, window_bounds = array<i64: 128, 128>}, {pipeline_mode = #tpu.pipeline_mode<synchronous>, transform_indices = @transform_5, window_bounds = array<i64: 1, 128>}, {pipeline_mode = #tpu.pipeline_mode<synchronous>, transform_indices = @transform_6, window_bounds = array<i64: 1, 128>}, {pipeline_mode = #tpu.pipeline_mode<synchronous>, transform_indices = @transform_7, window_bounds = array<i64: 1, 128>}, {pipeline_mode = #tpu.pipeline_mode<synchronous>, transform_indices = @transform_8, window_bounds = array<i64: 128, 128>}, {pipeline_mode = #tpu.pipeline_mode<synchronous>, transform_indices = @transform_9, window_bounds = array<i64: 1, 128>}, {transform_indices = @transform_10, window_bounds = array<i64: 1, 16, 128>}]} {
    %c0_i32 = arith.constant 0 : i32
    %0 = arith.cmpi eq, %arg1, %c0_i32 : i32
    %1 = arith.extui %0 : i1 to i32
    %c0_i32_0 = arith.constant 0 : i32
    %2 = arith.cmpi ne, %1, %c0_i32_0 : i32
    scf.if %2 {
      %c0_101 = arith.constant 0 : index
      %c0_102 = arith.constant 0 : index
      %c0_103 = arith.constant 0 : index
      %185 = vector.load %arg2[%c0_101, %c0_102, %c0_103] : memref<1x16x128xbf16, #tpu.memory_space<vmem>>, vector<1x16x128xbf16>
      %186 = vector.shape_cast %185 : vector<1x16x128xbf16> to vector<16x128xbf16>
      %c0_104 = arith.constant 0 : index
      %c0_105 = arith.constant 0 : index
      %187 = vector.load %arg5[%c0_104, %c0_105] : memref<128x128xbf16, #tpu.memory_space<vmem>>, vector<128x128xbf16>
      %cst_106 = arith.constant dense<0.000000e+00> : vector<16x128xf32>
      %188 = tpu.matmul %186, %187, %cst_106 {dimension_numbers = #tpu.dot_dimension_numbers<[1], [0], [0], [1], [0, 0, 1, 1], [], []>} : vector<16x128xbf16>, vector<128x128xbf16>, vector<16x128xf32> -> vector<16x128xf32>
      %c0_107 = arith.constant 0 : index
      %c0_108 = arith.constant 0 : index
      %189 = vector.load %arg8[%c0_107, %c0_108] : memref<1x128xf32, #tpu.memory_space<vmem>>, vector<1x128xf32>
      %190 = vector.broadcast %189 : vector<1x128xf32> to vector<16x128xf32>
      %191 = arith.addf %188, %190 : vector<16x128xf32>
      %c0_109 = arith.constant 0 : index
      %c0_110 = arith.constant 0 : index
      %192 = vector.load %arg6[%c0_109, %c0_110] : memref<128x128xbf16, #tpu.memory_space<vmem>>, vector<128x128xbf16>
      %cst_111 = arith.constant dense<0.000000e+00> : vector<16x128xf32>
      %193 = tpu.matmul %186, %192, %cst_111 {dimension_numbers = #tpu.dot_dimension_numbers<[1], [0], [0], [1], [0, 0, 1, 1], [], []>} : vector<16x128xbf16>, vector<128x128xbf16>, vector<16x128xf32> -> vector<16x128xf32>
      %c0_112 = arith.constant 0 : index
      %c0_113 = arith.constant 0 : index
      %194 = vector.load %arg9[%c0_112, %c0_113] : memref<1x128xf32, #tpu.memory_space<vmem>>, vector<1x128xf32>
      %195 = vector.broadcast %194 : vector<1x128xf32> to vector<16x128xf32>
      %196 = arith.addf %193, %195 : vector<16x128xf32>
      %197 = arith.truncf %191 : vector<16x128xf32> to vector<16x128xbf16>
      %c0_114 = arith.constant 0 : index
      %c0_115 = arith.constant 0 : index
      %198 = vector.load %arg13[%c0_114, %c0_115] : memref<16x128xbf16, #tpu.memory_space<vmem>>, vector<16x128xbf16>
      tpu.vector_store %arg13[%c0_114, %c0_115], %197 {strides = array<i32>} : memref<16x128xbf16, #tpu.memory_space<vmem>>, vector<16x128xbf16>,
      %199 = arith.truncf %196 : vector<16x128xf32> to vector<16x128xbf16>
      %c0_116 = arith.constant 0 : index
      %c0_117 = arith.constant 0 : index
      %200 = vector.load %arg14[%c0_116, %c0_117] : memref<16x128xbf16, #tpu.memory_space<vmem>>, vector<16x128xbf16>
      tpu.vector_store %arg14[%c0_116, %c0_117], %199 {strides = array<i32>} : memref<16x128xbf16, #tpu.memory_space<vmem>>, vector<16x128xbf16>,
    } else {
    }
    %c0 = arith.constant 0 : index
    %c0_1 = arith.constant 0 : index
    %c0_2 = arith.constant 0 : index
    %3 = vector.load %arg3[%c0, %c0_1, %c0_2] : memref<1x16x128xbf16, #tpu.memory_space<vmem>>, vector<1x16x128xbf16>
    %4 = vector.shape_cast %3 : vector<1x16x128xbf16> to vector<16x128xbf16>
    %c0_3 = arith.constant 0 : index
    %c0_4 = arith.constant 0 : index
    %5 = vector.load %arg4[%c0_3, %c0_4] : memref<128x128xbf16, #tpu.memory_space<vmem>>, vector<128x128xbf16>
    %cst = arith.constant dense<0.000000e+00> : vector<16x128xf32>
    %6 = tpu.matmul %4, %5, %cst {dimension_numbers = #tpu.dot_dimension_numbers<[1], [0], [0], [1], [0, 0, 1, 1], [], []>} : vector<16x128xbf16>, vector<128x128xbf16>, vector<16x128xf32> -> vector<16x128xf32>
    %c0_5 = arith.constant 0 : index
    %c0_6 = arith.constant 0 : index
    %7 = vector.load %arg7[%c0_5, %c0_6] : memref<1x128xf32, #tpu.memory_space<vmem>>, vector<1x128xf32>
    %8 = vector.broadcast %7 : vector<1x128xf32> to vector<16x128xf32>
    %9 = arith.addf %6, %8 : vector<16x128xf32>
    %10 = arith.truncf %9 : vector<16x128xf32> to vector<16x128xbf16>
    %11 = tpu.iota {dimensions = array<i32: 1>} : vector<16x16xi32>
    %c8_i32 = arith.constant 8 : i32
    %12 = vector.broadcast %c8_i32 : i32 to vector<16x16xi32>
    %13 = arith.cmpi slt, %11, %12 : vector<16x16xi32>
    %cst_7 = arith.constant 0.000000e+00 : bf16
    %14 = vector.broadcast %cst_7 : bf16 to vector<16x128xbf16>
    %c0_8 = arith.constant 0 : index
    %c0_9 = arith.constant 0 : index
    %15 = vector.load %arg15[%c0_8, %c0_9] : memref<16x128xbf16, #tpu.memory_space<vmem>>, vector<16x128xbf16>
    tpu.vector_store %arg15[%c0_8, %c0_9], %14 {strides = array<i32>} : memref<16x128xbf16, #tpu.memory_space<vmem>>, vector<16x128xbf16>,
    %16 = vector.extract_strided_slice %10 {offsets = [0, 0], sizes = [16, 4], strides = [1, 1]} : vector<16x128xbf16> to vector<16x4xbf16>
    %c0_10 = arith.constant 0 : index
    %c0_11 = arith.constant 0 : index
    %17 = vector.load %arg13[%c0_10, %c0_11] : memref<16x128xbf16, #tpu.memory_space<vmem>>, vector<16x4xbf16>
    %cst_12 = arith.constant dense<0.000000e+00> : vector<16x16xf32>
    %18 = tpu.matmul %16, %17, %cst_12 {dimension_numbers = #tpu.dot_dimension_numbers<[1], [1], [0], [0], [0, 0, 1, 0], [], []>} : vector<16x4xbf16>, vector<16x4xbf16>, vector<16x16xf32> -> vector<16x16xf32>
    %cst_13 = arith.constant -1.000000e+30 : f32
    %19 = vector.broadcast %cst_13 : f32 to vector<16x16xf32>
    %20 = arith.select %13, %18, %19 : vector<16x16xi1>, vector<16x16xf32>
    %cst_14 = arith.constant dense<0xFF800000> : vector<16xf32>
    %21 = vector.multi_reduction <maximumf>, %20, %cst_14 [1] : vector<16x16xf32> to vector<16xf32>
    %22 = vector.shape_cast %21 : vector<16xf32> to vector<16x1xf32>
    %23 = vector.broadcast %22 : vector<16x1xf32> to vector<16x16xf32>
    %24 = arith.subf %20, %23 : vector<16x16xf32>
    %25 = math.exp %24 : vector<16x16xf32>
    %cst_15 = arith.constant dense<0.000000e+00> : vector<16xf32>
    %26 = vector.multi_reduction <add>, %25, %cst_15 [1] : vector<16x16xf32> to vector<16xf32>
    %27 = vector.shape_cast %26 : vector<16xf32> to vector<16x1xf32>
    %28 = arith.truncf %25 : vector<16x16xf32> to vector<16x16xbf16>
    %c0_16 = arith.constant 0 : index
    %c0_17 = arith.constant 0 : index
    %29 = vector.load %arg14[%c0_16, %c0_17] : memref<16x128xbf16, #tpu.memory_space<vmem>>, vector<16x4xbf16>
    %cst_18 = arith.constant dense<0.000000e+00> : vector<16x4xf32>
    %30 = tpu.matmul %28, %29, %cst_18 {dimension_numbers = #tpu.dot_dimension_numbers<[1], [0], [0], [1], [0, 0, 1, 1], [], []>} : vector<16x16xbf16>, vector<16x4xbf16>, vector<16x4xf32> -> vector<16x4xf32>
    %31 = tpu.reciprocal %27 {approx = true} : vector<16x1xf32> -> vector<16x1xf32>
    %32 = vector.broadcast %31 : vector<16x1xf32> to vector<16x4xf32>
    %33 = arith.mulf %30, %32 : vector<16x4xf32>
    %34 = arith.truncf %33 : vector<16x4xf32> to vector<16x4xbf16>
    %c0_19 = arith.constant 0 : index
    %c0_20 = arith.constant 0 : index
    %35 = vector.load %arg15[%c0_19, %c0_20] : memref<16x128xbf16, #tpu.memory_space<vmem>>, vector<16x4xbf16>
    tpu.vector_store %arg15[%c0_19, %c0_20], %34 {strides = array<i32>} : memref<16x128xbf16, #tpu.memory_space<vmem>>, vector<16x4xbf16>,
    %36 = vector.extract_strided_slice %10 {offsets = [0, 4], sizes = [16, 4], strides = [1, 1]} : vector<16x128xbf16> to vector<16x4xbf16>
    %c0_21 = arith.constant 0 : index
    %c4 = arith.constant 4 : index
    %37 = vector.load %arg13[%c0_21, %c4] : memref<16x128xbf16, #tpu.memory_space<vmem>>, vector<16x4xbf16>
    %cst_22 = arith.constant dense<0.000000e+00> : vector<16x16xf32>
    %38 = tpu.matmul %36, %37, %cst_22 {dimension_numbers = #tpu.dot_dimension_numbers<[1], [1], [0], [0], [0, 0, 1, 0], [], []>} : vector<16x4xbf16>, vector<16x4xbf16>, vector<16x16xf32> -> vector<16x16xf32>
    %cst_23 = arith.constant -1.000000e+30 : f32
    %39 = vector.broadcast %cst_23 : f32 to vector<16x16xf32>
    %40 = arith.select %13, %38, %39 : vector<16x16xi1>, vector<16x16xf32>
    %cst_24 = arith.constant dense<0xFF800000> : vector<16xf32>
    %41 = vector.multi_reduction <maximumf>, %40, %cst_24 [1] : vector<16x16xf32> to vector<16xf32>
    %42 = vector.shape_cast %41 : vector<16xf32> to vector<16x1xf32>
    %43 = vector.broadcast %42 : vector<16x1xf32> to vector<16x16xf32>
    %44 = arith.subf %40, %43 : vector<16x16xf32>
    %45 = math.exp %44 : vector<16x16xf32>
    %cst_25 = arith.constant dense<0.000000e+00> : vector<16xf32>
    %46 = vector.multi_reduction <add>, %45, %cst_25 [1] : vector<16x16xf32> to vector<16xf32>
    %47 = vector.shape_cast %46 : vector<16xf32> to vector<16x1xf32>
    %48 = arith.truncf %45 : vector<16x16xf32> to vector<16x16xbf16>
    %c0_26 = arith.constant 0 : index
    %c4_27 = arith.constant 4 : index
    %49 = vector.load %arg14[%c0_26, %c4_27] : memref<16x128xbf16, #tpu.memory_space<vmem>>, vector<16x4xbf16>
    %cst_28 = arith.constant dense<0.000000e+00> : vector<16x4xf32>
    %50 = tpu.matmul %48, %49, %cst_28 {dimension_numbers = #tpu.dot_dimension_numbers<[1], [0], [0], [1], [0, 0, 1, 1], [], []>} : vector<16x16xbf16>, vector<16x4xbf16>, vector<16x4xf32> -> vector<16x4xf32>
    %51 = tpu.reciprocal %47 {approx = true} : vector<16x1xf32> -> vector<16x1xf32>
    %52 = vector.broadcast %51 : vector<16x1xf32> to vector<16x4xf32>
    %53 = arith.mulf %50, %52 : vector<16x4xf32>
    %54 = arith.truncf %53 : vector<16x4xf32> to vector<16x4xbf16>
    %c0_29 = arith.constant 0 : index
    %c4_30 = arith.constant 4 : index
    %55 = vector.load %arg15[%c0_29, %c4_30] : memref<16x128xbf16, #tpu.memory_space<vmem>>, vector<16x4xbf16>
    tpu.vector_store %arg15[%c0_29, %c4_30], %54 {strides = array<i32>} : memref<16x128xbf16, #tpu.memory_space<vmem>>, vector<16x4xbf16>,
    %56 = vector.extract_strided_slice %10 {offsets = [0, 8], sizes = [16, 4], strides = [1, 1]} : vector<16x128xbf16> to vector<16x4xbf16>
    %c0_31 = arith.constant 0 : index
    %c8 = arith.constant 8 : index
    %57 = vector.load %arg13[%c0_31, %c8] : memref<16x128xbf16, #tpu.memory_space<vmem>>, vector<16x4xbf16>
    %cst_32 = arith.constant dense<0.000000e+00> : vector<16x16xf32>
    %58 = tpu.matmul %56, %57, %cst_32 {dimension_numbers = #tpu.dot_dimension_numbers<[1], [1], [0], [0], [0, 0, 1, 0], [], []>} : vector<16x4xbf16>, vector<16x4xbf16>, vector<16x16xf32> -> vector<16x16xf32>
    %cst_33 = arith.constant -1.000000e+30 : f32
    %59 = vector.broadcast %cst_33 : f32 to vector<16x16xf32>
    %60 = arith.select %13, %58, %59 : vector<16x16xi1>, vector<16x16xf32>
    %cst_34 = arith.constant dense<0xFF800000> : vector<16xf32>
    %61 = vector.multi_reduction <maximumf>, %60, %cst_34 [1] : vector<16x16xf32> to vector<16xf32>
    %62 = vector.shape_cast %61 : vector<16xf32> to vector<16x1xf32>
    %63 = vector.broadcast %62 : vector<16x1xf32> to vector<16x16xf32>
    %64 = arith.subf %60, %63 : vector<16x16xf32>
    %65 = math.exp %64 : vector<16x16xf32>
    %cst_35 = arith.constant dense<0.000000e+00> : vector<16xf32>
    %66 = vector.multi_reduction <add>, %65, %cst_35 [1] : vector<16x16xf32> to vector<16xf32>
    %67 = vector.shape_cast %66 : vector<16xf32> to vector<16x1xf32>
    %68 = arith.truncf %65 : vector<16x16xf32> to vector<16x16xbf16>
    %c0_36 = arith.constant 0 : index
    %c8_37 = arith.constant 8 : index
    %69 = vector.load %arg14[%c0_36, %c8_37] : memref<16x128xbf16, #tpu.memory_space<vmem>>, vector<16x4xbf16>
    %cst_38 = arith.constant dense<0.000000e+00> : vector<16x4xf32>
    %70 = tpu.matmul %68, %69, %cst_38 {dimension_numbers = #tpu.dot_dimension_numbers<[1], [0], [0], [1], [0, 0, 1, 1], [], []>} : vector<16x16xbf16>, vector<16x4xbf16>, vector<16x4xf32> -> vector<16x4xf32>
    %71 = tpu.reciprocal %67 {approx = true} : vector<16x1xf32> -> vector<16x1xf32>
    %72 = vector.broadcast %71 : vector<16x1xf32> to vector<16x4xf32>
    %73 = arith.mulf %70, %72 : vector<16x4xf32>
    %74 = arith.truncf %73 : vector<16x4xf32> to vector<16x4xbf16>
    %c0_39 = arith.constant 0 : index
    %c8_40 = arith.constant 8 : index
    %75 = vector.load %arg15[%c0_39, %c8_40] : memref<16x128xbf16, #tpu.memory_space<vmem>>, vector<16x4xbf16>
    tpu.vector_store %arg15[%c0_39, %c8_40], %74 {strides = array<i32>} : memref<16x128xbf16, #tpu.memory_space<vmem>>, vector<16x4xbf16>,
    %76 = vector.extract_strided_slice %10 {offsets = [0, 12], sizes = [16, 4], strides = [1, 1]} : vector<16x128xbf16> to vector<16x4xbf16>
    %c0_41 = arith.constant 0 : index
    %c12 = arith.constant 12 : index
    %77 = vector.load %arg13[%c0_41, %c12] : memref<16x128xbf16, #tpu.memory_space<vmem>>, vector<16x4xbf16>
    %cst_42 = arith.constant dense<0.000000e+00> : vector<16x16xf32>
    %78 = tpu.matmul %76, %77, %cst_42 {dimension_numbers = #tpu.dot_dimension_numbers<[1], [1], [0], [0], [0, 0, 1, 0], [], []>} : vector<16x4xbf16>, vector<16x4xbf16>, vector<16x16xf32> -> vector<16x16xf32>
    %cst_43 = arith.constant -1.000000e+30 : f32
    %79 = vector.broadcast %cst_43 : f32 to vector<16x16xf32>
    %80 = arith.select %13, %78, %79 : vector<16x16xi1>, vector<16x16xf32>
    %cst_44 = arith.constant dense<0xFF800000> : vector<16xf32>
    %81 = vector.multi_reduction <maximumf>, %80, %cst_44 [1] : vector<16x16xf32> to vector<16xf32>
    %82 = vector.shape_cast %81 : vector<16xf32> to vector<16x1xf32>
    %83 = vector.broadcast %82 : vector<16x1xf32> to vector<16x16xf32>
    %84 = arith.subf %80, %83 : vector<16x16xf32>
    %85 = math.exp %84 : vector<16x16xf32>
    %cst_45 = arith.constant dense<0.000000e+00> : vector<16xf32>
    %86 = vector.multi_reduction <add>, %85, %cst_45 [1] : vector<16x16xf32> to vector<16xf32>
    %87 = vector.shape_cast %86 : vector<16xf32> to vector<16x1xf32>
    %88 = arith.truncf %85 : vector<16x16xf32> to vector<16x16xbf16>
    %c0_46 = arith.constant 0 : index
    %c12_47 = arith.constant 12 : index
    %89 = vector.load %arg14[%c0_46, %c12_47] : memref<16x128xbf16, #tpu.memory_space<vmem>>, vector<16x4xbf16>
    %cst_48 = arith.constant dense<0.000000e+00> : vector<16x4xf32>
    %90 = tpu.matmul %88, %89, %cst_48 {dimension_numbers = #tpu.dot_dimension_numbers<[1], [0], [0], [1], [0, 0, 1, 1], [], []>} : vector<16x16xbf16>, vector<16x4xbf16>, vector<16x4xf32> -> vector<16x4xf32>
    %91 = tpu.reciprocal %87 {approx = true} : vector<16x1xf32> -> vector<16x1xf32>
    %92 = vector.broadcast %91 : vector<16x1xf32> to vector<16x4xf32>
    %93 = arith.mulf %90, %92 : vector<16x4xf32>
    %94 = arith.truncf %93 : vector<16x4xf32> to vector<16x4xbf16>
    %c0_49 = arith.constant 0 : index
    %c12_50 = arith.constant 12 : index
    %95 = vector.load %arg15[%c0_49, %c12_50] : memref<16x128xbf16, #tpu.memory_space<vmem>>, vector<16x4xbf16>
    tpu.vector_store %arg15[%c0_49, %c12_50], %94 {strides = array<i32>} : memref<16x128xbf16, #tpu.memory_space<vmem>>, vector<16x4xbf16>,
    %96 = vector.extract_strided_slice %10 {offsets = [0, 16], sizes = [16, 4], strides = [1, 1]} : vector<16x128xbf16> to vector<16x4xbf16>
    %c0_51 = arith.constant 0 : index
    %c16 = arith.constant 16 : index
    %97 = vector.load %arg13[%c0_51, %c16] : memref<16x128xbf16, #tpu.memory_space<vmem>>, vector<16x4xbf16>
    %cst_52 = arith.constant dense<0.000000e+00> : vector<16x16xf32>
    %98 = tpu.matmul %96, %97, %cst_52 {dimension_numbers = #tpu.dot_dimension_numbers<[1], [1], [0], [0], [0, 0, 1, 0], [], []>} : vector<16x4xbf16>, vector<16x4xbf16>, vector<16x16xf32> -> vector<16x16xf32>
    %cst_53 = arith.constant -1.000000e+30 : f32
    %99 = vector.broadcast %cst_53 : f32 to vector<16x16xf32>
    %100 = arith.select %13, %98, %99 : vector<16x16xi1>, vector<16x16xf32>
    %cst_54 = arith.constant dense<0xFF800000> : vector<16xf32>
    %101 = vector.multi_reduction <maximumf>, %100, %cst_54 [1] : vector<16x16xf32> to vector<16xf32>
    %102 = vector.shape_cast %101 : vector<16xf32> to vector<16x1xf32>
    %103 = vector.broadcast %102 : vector<16x1xf32> to vector<16x16xf32>
    %104 = arith.subf %100, %103 : vector<16x16xf32>
    %105 = math.exp %104 : vector<16x16xf32>
    %cst_55 = arith.constant dense<0.000000e+00> : vector<16xf32>
    %106 = vector.multi_reduction <add>, %105, %cst_55 [1] : vector<16x16xf32> to vector<16xf32>
    %107 = vector.shape_cast %106 : vector<16xf32> to vector<16x1xf32>
    %108 = arith.truncf %105 : vector<16x16xf32> to vector<16x16xbf16>
    %c0_56 = arith.constant 0 : index
    %c16_57 = arith.constant 16 : index
    %109 = vector.load %arg14[%c0_56, %c16_57] : memref<16x128xbf16, #tpu.memory_space<vmem>>, vector<16x4xbf16>
    %cst_58 = arith.constant dense<0.000000e+00> : vector<16x4xf32>
    %110 = tpu.matmul %108, %109, %cst_58 {dimension_numbers = #tpu.dot_dimension_numbers<[1], [0], [0], [1], [0, 0, 1, 1], [], []>} : vector<16x16xbf16>, vector<16x4xbf16>, vector<16x4xf32> -> vector<16x4xf32>
    %111 = tpu.reciprocal %107 {approx = true} : vector<16x1xf32> -> vector<16x1xf32>
    %112 = vector.broadcast %111 : vector<16x1xf32> to vector<16x4xf32>
    %113 = arith.mulf %110, %112 : vector<16x4xf32>
    %114 = arith.truncf %113 : vector<16x4xf32> to vector<16x4xbf16>
    %c0_59 = arith.constant 0 : index
    %c16_60 = arith.constant 16 : index
    %115 = vector.load %arg15[%c0_59, %c16_60] : memref<16x128xbf16, #tpu.memory_space<vmem>>, vector<16x4xbf16>
    tpu.vector_store %arg15[%c0_59, %c16_60], %114 {strides = array<i32>} : memref<16x128xbf16, #tpu.memory_space<vmem>>, vector<16x4xbf16>,
    %116 = vector.extract_strided_slice %10 {offsets = [0, 20], sizes = [16, 4], strides = [1, 1]} : vector<16x128xbf16> to vector<16x4xbf16>
    %c0_61 = arith.constant 0 : index
    %c20 = arith.constant 20 : index
    %117 = vector.load %arg13[%c0_61, %c20] : memref<16x128xbf16, #tpu.memory_space<vmem>>, vector<16x4xbf16>
    %cst_62 = arith.constant dense<0.000000e+00> : vector<16x16xf32>
    %118 = tpu.matmul %116, %117, %cst_62 {dimension_numbers = #tpu.dot_dimension_numbers<[1], [1], [0], [0], [0, 0, 1, 0], [], []>} : vector<16x4xbf16>, vector<16x4xbf16>, vector<16x16xf32> -> vector<16x16xf32>
    %cst_63 = arith.constant -1.000000e+30 : f32
    %119 = vector.broadcast %cst_63 : f32 to vector<16x16xf32>
    %120 = arith.select %13, %118, %119 : vector<16x16xi1>, vector<16x16xf32>
    %cst_64 = arith.constant dense<0xFF800000> : vector<16xf32>
    %121 = vector.multi_reduction <maximumf>, %120, %cst_64 [1] : vector<16x16xf32> to vector<16xf32>
    %122 = vector.shape_cast %121 : vector<16xf32> to vector<16x1xf32>
    %123 = vector.broadcast %122 : vector<16x1xf32> to vector<16x16xf32>
    %124 = arith.subf %120, %123 : vector<16x16xf32>
    %125 = math.exp %124 : vector<16x16xf32>
    %cst_65 = arith.constant dense<0.000000e+00> : vector<16xf32>
    %126 = vector.multi_reduction <add>, %125, %cst_65 [1] : vector<16x16xf32> to vector<16xf32>
    %127 = vector.shape_cast %126 : vector<16xf32> to vector<16x1xf32>
    %128 = arith.truncf %125 : vector<16x16xf32> to vector<16x16xbf16>
    %c0_66 = arith.constant 0 : index
    %c20_67 = arith.constant 20 : index
    %129 = vector.load %arg14[%c0_66, %c20_67] : memref<16x128xbf16, #tpu.memory_space<vmem>>, vector<16x4xbf16>
    %cst_68 = arith.constant dense<0.000000e+00> : vector<16x4xf32>
    %130 = tpu.matmul %128, %129, %cst_68 {dimension_numbers = #tpu.dot_dimension_numbers<[1], [0], [0], [1], [0, 0, 1, 1], [], []>} : vector<16x16xbf16>, vector<16x4xbf16>, vector<16x4xf32> -> vector<16x4xf32>
    %131 = tpu.reciprocal %127 {approx = true} : vector<16x1xf32> -> vector<16x1xf32>
    %132 = vector.broadcast %131 : vector<16x1xf32> to vector<16x4xf32>
    %133 = arith.mulf %130, %132 : vector<16x4xf32>
    %134 = arith.truncf %133 : vector<16x4xf32> to vector<16x4xbf16>
    %c0_69 = arith.constant 0 : index
    %c20_70 = arith.constant 20 : index
    %135 = vector.load %arg15[%c0_69, %c20_70] : memref<16x128xbf16, #tpu.memory_space<vmem>>, vector<16x4xbf16>
    tpu.vector_store %arg15[%c0_69, %c20_70], %134 {strides = array<i32>} : memref<16x128xbf16, #tpu.memory_space<vmem>>, vector<16x4xbf16>,
    %136 = vector.extract_strided_slice %10 {offsets = [0, 24], sizes = [16, 4], strides = [1, 1]} : vector<16x128xbf16> to vector<16x4xbf16>
    %c0_71 = arith.constant 0 : index
    %c24 = arith.constant 24 : index
    %137 = vector.load %arg13[%c0_71, %c24] : memref<16x128xbf16, #tpu.memory_space<vmem>>, vector<16x4xbf16>
    %cst_72 = arith.constant dense<0.000000e+00> : vector<16x16xf32>
    %138 = tpu.matmul %136, %137, %cst_72 {dimension_numbers = #tpu.dot_dimension_numbers<[1], [1], [0], [0], [0, 0, 1, 0], [], []>} : vector<16x4xbf16>, vector<16x4xbf16>, vector<16x16xf32> -> vector<16x16xf32>
    %cst_73 = arith.constant -1.000000e+30 : f32
    %139 = vector.broadcast %cst_73 : f32 to vector<16x16xf32>
    %140 = arith.select %13, %138, %139 : vector<16x16xi1>, vector<16x16xf32>
    %cst_74 = arith.constant dense<0xFF800000> : vector<16xf32>
    %141 = vector.multi_reduction <maximumf>, %140, %cst_74 [1] : vector<16x16xf32> to vector<16xf32>
    %142 = vector.shape_cast %141 : vector<16xf32> to vector<16x1xf32>
    %143 = vector.broadcast %142 : vector<16x1xf32> to vector<16x16xf32>
    %144 = arith.subf %140, %143 : vector<16x16xf32>
    %145 = math.exp %144 : vector<16x16xf32>
    %cst_75 = arith.constant dense<0.000000e+00> : vector<16xf32>
    %146 = vector.multi_reduction <add>, %145, %cst_75 [1] : vector<16x16xf32> to vector<16xf32>
    %147 = vector.shape_cast %146 : vector<16xf32> to vector<16x1xf32>
    %148 = arith.truncf %145 : vector<16x16xf32> to vector<16x16xbf16>
    %c0_76 = arith.constant 0 : index
    %c24_77 = arith.constant 24 : index
    %149 = vector.load %arg14[%c0_76, %c24_77] : memref<16x128xbf16, #tpu.memory_space<vmem>>, vector<16x4xbf16>
    %cst_78 = arith.constant dense<0.000000e+00> : vector<16x4xf32>
    %150 = tpu.matmul %148, %149, %cst_78 {dimension_numbers = #tpu.dot_dimension_numbers<[1], [0], [0], [1], [0, 0, 1, 1], [], []>} : vector<16x16xbf16>, vector<16x4xbf16>, vector<16x4xf32> -> vector<16x4xf32>
    %151 = tpu.reciprocal %147 {approx = true} : vector<16x1xf32> -> vector<16x1xf32>
    %152 = vector.broadcast %151 : vector<16x1xf32> to vector<16x4xf32>
    %153 = arith.mulf %150, %152 : vector<16x4xf32>
    %154 = arith.truncf %153 : vector<16x4xf32> to vector<16x4xbf16>
    %c0_79 = arith.constant 0 : index
    %c24_80 = arith.constant 24 : index
    %155 = vector.load %arg15[%c0_79, %c24_80] : memref<16x128xbf16, #tpu.memory_space<vmem>>, vector<16x4xbf16>
    tpu.vector_store %arg15[%c0_79, %c24_80], %154 {strides = array<i32>} : memref<16x128xbf16, #tpu.memory_space<vmem>>, vector<16x4xbf16>,
    %156 = vector.extract_strided_slice %10 {offsets = [0, 28], sizes = [16, 4], strides = [1, 1]} : vector<16x128xbf16> to vector<16x4xbf16>
    %c0_81 = arith.constant 0 : index
    %c28 = arith.constant 28 : index
    %157 = vector.load %arg13[%c0_81, %c28] : memref<16x128xbf16, #tpu.memory_space<vmem>>, vector<16x4xbf16>
    %cst_82 = arith.constant dense<0.000000e+00> : vector<16x16xf32>
    %158 = tpu.matmul %156, %157, %cst_82 {dimension_numbers = #tpu.dot_dimension_numbers<[1], [1], [0], [0], [0, 0, 1, 0], [], []>} : vector<16x4xbf16>, vector<16x4xbf16>, vector<16x16xf32> -> vector<16x16xf32>
    %cst_83 = arith.constant -1.000000e+30 : f32
    %159 = vector.broadcast %cst_83 : f32 to vector<16x16xf32>
    %160 = arith.select %13, %158, %159 : vector<16x16xi1>, vector<16x16xf32>
    %cst_84 = arith.constant dense<0xFF800000> : vector<16xf32>
    %161 = vector.multi_reduction <maximumf>, %160, %cst_84 [1] : vector<16x16xf32> to vector<16xf32>
    %162 = vector.shape_cast %161 : vector<16xf32> to vector<16x1xf32>
    %163 = vector.broadcast %162 : vector<16x1xf32> to vector<16x16xf32>
    %164 = arith.subf %160, %163 : vector<16x16xf32>
    %165 = math.exp %164 : vector<16x16xf32>
    %cst_85 = arith.constant dense<0.000000e+00> : vector<16xf32>
    %166 = vector.multi_reduction <add>, %165, %cst_85 [1] : vector<16x16xf32> to vector<16xf32>
    %167 = vector.shape_cast %166 : vector<16xf32> to vector<16x1xf32>
    %168 = arith.truncf %165 : vector<16x16xf32> to vector<16x16xbf16>
    %c0_86 = arith.constant 0 : index
    %c28_87 = arith.constant 28 : index
    %169 = vector.load %arg14[%c0_86, %c28_87] : memref<16x128xbf16, #tpu.memory_space<vmem>>, vector<16x4xbf16>
    %cst_88 = arith.constant dense<0.000000e+00> : vector<16x4xf32>
    %170 = tpu.matmul %168, %169, %cst_88 {dimension_numbers = #tpu.dot_dimension_numbers<[1], [0], [0], [1], [0, 0, 1, 1], [], []>} : vector<16x16xbf16>, vector<16x4xbf16>, vector<16x4xf32> -> vector<16x4xf32>
    %171 = tpu.reciprocal %167 {approx = true} : vector<16x1xf32> -> vector<16x1xf32>
    %172 = vector.broadcast %171 : vector<16x1xf32> to vector<16x4xf32>
    %173 = arith.mulf %170, %172 : vector<16x4xf32>
    %174 = arith.truncf %173 : vector<16x4xf32> to vector<16x4xbf16>
    %c0_89 = arith.constant 0 : index
    %c28_90 = arith.constant 28 : index
    %175 = vector.load %arg15[%c0_89, %c28_90] : memref<16x128xbf16, #tpu.memory_space<vmem>>, vector<16x4xbf16>
    tpu.vector_store %arg15[%c0_89, %c28_90], %174 {strides = array<i32>} : memref<16x128xbf16, #tpu.memory_space<vmem>>, vector<16x4xbf16>,
    %c0_91 = arith.constant 0 : index
    %c0_92 = arith.constant 0 : index
    %176 = vector.load %arg15[%c0_91, %c0_92] : memref<16x128xbf16, #tpu.memory_space<vmem>>, vector<16x128xbf16>
    %c0_93 = arith.constant 0 : index
    %c0_94 = arith.constant 0 : index
    %177 = vector.load %arg10[%c0_93, %c0_94] : memref<128x128xbf16, #tpu.memory_space<vmem>>, vector<128x128xbf16>
    %cst_95 = arith.constant dense<0.000000e+00> : vector<16x128xf32>
    %178 = tpu.matmul %176, %177, %cst_95 {dimension_numbers = #tpu.dot_dimension_numbers<[1], [0], [0], [1], [0, 0, 1, 1], [], []>} : vector<16x128xbf16>, vector<128x128xbf16>, vector<16x128xf32> -> vector<16x128xf32>
    %c0_96 = arith.constant 0 : index
    %c0_97 = arith.constant 0 : index
    %179 = vector.load %arg11[%c0_96, %c0_97] : memref<1x128xf32, #tpu.memory_space<vmem>>, vector<1x128xf32>
    %180 = vector.broadcast %179 : vector<1x128xf32> to vector<16x128xf32>
    %181 = arith.addf %178, %180 : vector<16x128xf32>
    %c0_98 = arith.constant 0 : index
    %c0_99 = arith.constant 0 : index
    %c0_100 = arith.constant 0 : index
    %182 = vector.load %arg12[%c0_98, %c0_99, %c0_100] : memref<1x16x128xf32, #tpu.memory_space<vmem>>, vector<1x16x128xf32>
    %183 = vector.shape_cast %182 : vector<1x16x128xf32> to vector<16x128xf32>
    %184 = vector.shape_cast %181 : vector<16x128xf32> to vector<1x16x128xf32>
    tpu.vector_store %arg12[%c0_98, %c0_99, %c0_100], %184 {strides = array<i32>} : memref<1x16x128xf32, #tpu.memory_space<vmem>>, vector<1x16x128xf32>,
    return
  }
  func.func @transform_0(%arg0: i32, %arg1: i32) -> (i32, i32, i32) {
    %c0_i32 = arith.constant 0 : i32
    %c0_i32_0 = arith.constant 0 : i32
    %c0_i32_1 = arith.constant 0 : i32
    return %arg0, %c0_i32, %c0_i32_0 : i32, i32, i32
  }
  func.func @transform_1(%arg0: i32, %arg1: i32) -> (i32, i32, i32) {
    %c0_i32 = arith.constant 0 : i32
    %c0_i32_0 = arith.constant 0 : i32
    return %arg0, %arg1, %c0_i32 : i32, i32, i32
  }
  func.func @transform_2(%arg0: i32, %arg1: i32) -> (i32, i32) {
    %c0_i32 = arith.constant 0 : i32
    %c0_i32_0 = arith.constant 0 : i32
    %c0_i32_1 = arith.constant 0 : i32
    return %c0_i32, %c0_i32_0 : i32, i32
  }
  func.func @transform_3(%arg0: i32, %arg1: i32) -> (i32, i32) {
    %c0_i32 = arith.constant 0 : i32
    %c0_i32_0 = arith.constant 0 : i32
    %c0_i32_1 = arith.constant 0 : i32
    return %c0_i32, %c0_i32_0 : i32, i32
  }
  func.func @transform_4(%arg0: i32, %arg1: i32) -> (i32, i32) {
    %c0_i32 = arith.constant 0 : i32
    %c0_i32_0 = arith.constant 0 : i32
    %c0_i32_1 = arith.constant 0 : i32
    return %c0_i32, %c0_i32_0 : i32, i32
  }
  func.func @transform_5(%arg0: i32, %arg1: i32) -> (i32, i32) {
    %c0_i32 = arith.constant 0 : i32
    %c0_i32_0 = arith.constant 0 : i32
    %c0_i32_1 = arith.constant 0 : i32
    return %c0_i32, %c0_i32_0 : i32, i32
  }
  func.func @transform_6(%arg0: i32, %arg1: i32) -> (i32, i32) {
    %c0_i32 = arith.constant 0 : i32
    %c0_i32_0 = arith.constant 0 : i32
    %c0_i32_1 = arith.constant 0 : i32
    return %c0_i32, %c0_i32_0 : i32, i32
  }
  func.func @transform_7(%arg0: i32, %arg1: i32) -> (i32, i32) {
    %c0_i32 = arith.constant 0 : i32
    %c0_i32_0 = arith.constant 0 : i32
    %c0_i32_1 = arith.constant 0 : i32
    return %c0_i32, %c0_i32_0 : i32, i32
  }
  func.func @transform_8(%arg0: i32, %arg1: i32) -> (i32, i32) {
    %c0_i32 = arith.constant 0 : i32
    %c0_i32_0 = arith.constant 0 : i32
    %c0_i32_1 = arith.constant 0 : i32
    return %c0_i32, %c0_i32_0 : i32, i32
  }
  func.func @transform_9(%arg0: i32, %arg1: i32) -> (i32, i32) {
    %c0_i32 = arith.constant 0 : i32
    %c0_i32_0 = arith.constant 0 : i32
    %c0_i32_1 = arith.constant 0 : i32
    return %c0_i32, %c0_i32_0 : i32, i32
  }
  func.func @transform_10(%arg0: i32, %arg1: i32) -> (i32, i32, i32) {
    %c0_i32 = arith.constant 0 : i32
    %c0_i32_0 = arith.constant 0 : i32
    return %arg0, %arg1, %c0_i32 : i32, i32, i32
  }
}

</mosaic_0001>

<bundles_post_ra>
// kernel: tpu_custom_call.1
= control target key start
LH: loop header
LB: loop body
LE: loop exit
PB: predicated region body
PF: predicated region fallthrough
CT: control target
= control target key end

     0   :  { %s3913_s0 = inlined_call_operand.hbm [shape: bf16[2,16,128], index: 0, kind: input, shape index: {}]   ;;  %s3914_s1 = inlined_call_operand.hbm [shape: bf16[2,16,128], index: 1, kind: input, shape index: {}]   ;;  %s3915_s2 = inlined_call_operand.hbm [shape: bf16[128,128], index: 2, kind: input, shape index: {}]   ;;  %s3916_s3 = inlined_call_operand.hbm [shape: bf16[128,128], index: 3, kind: input, shape index: {}]   ;;  %s3917_s4 = inlined_call_operand.hbm [shape: bf16[128,128], index: 4, kind: input, shape index: {}]   ;;  %s3918_s5 = inlined_call_operand.vmem [shape: f32[1,128], index: 5, kind: input, shape index: {}]   ;;  %s3919_s6 = inlined_call_operand.vmem [shape: f32[1,128], index: 6, kind: input, shape index: {}]   ;;  %s3920_s7 = inlined_call_operand.vmem [shape: f32[1,128], index: 7, kind: input, shape index: {}]   ;;  %s3921_s8 = inlined_call_operand.hbm [shape: bf16[128,128], index: 8, kind: input, shape index: {}]   ;;  %s3922_s9 = inlined_call_operand.vmem [shape: f32[1,128], index: 9, kind: input, shape index: {}]   ;;  %s3923_s10 = inlined_call_operand.hbm [shape: f32[2,16,128], index: 10, kind: output, shape index: {}]  }
   0x1   :  { %3938 = sst [smem:[#allocation26_spill]] %s3913_s0 }
   0x2   :  { %3939 = sst [smem:[#allocation27_spill]] %s3915_s2 }
   0x3   :  { %3940 = sst [smem:[#allocation28_spill]] %s3916_s3 }
   0x4   :  { %3941 = sst [smem:[#allocation29_spill]] %s3917_s4 }
   0x5   :  { %3942 = sst [smem:[#allocation30_spill]] %s3921_s8 }
   0x6   :  { %15 = vsyncpa [#allocation6], 0 }
   0x7   :  { %16 = vsyncpa [#allocation9], 0 }
   0x8   :  { %18 = vsyncpa [#allocation9 + $0x1], 0 }
   0x9   :  { %19 = vsyncpa [#allocation12], 0 }
   0xa   :  { %20 = vsyncpa [#allocation15], 0 }
   0xb   :  { %21 = vsyncpa [#allocation7], 0 }
   0xc   :  { %23 = vsyncpa [#allocation7 + $0x1], 0  ;;  %s3325_s13 = smov 0   ;;  %s3327_s14 = smov 0  }
   0xd   :  { %s3329_s15 = smov 0   ;;  %s3331_s16 = smov 0  }
   0xe   :  { %s3333_s17 = smov 0   ;;  %s3335_s18 = smov 0  }
   0xf LB: > { %3943 = sst [smem:[#allocation23_spill]] %s3221_s13  ;;  %s3356_s19 = sadd.s32 4294967295, %s3241_s18   ;;  %s3241_s18 = sphi %s3335_s18, %s29_s18   ;;  %s3237_s17 = sphi %s3333_s17, %s3981_s17   ;;  %s3233_s16 = sphi %s3331_s16, %s3980_s16   ;;  %s3229_s15 = sphi %s3329_s15, %s3979_s15   ;;  %s3225_s14 = sphi %s3327_s14, %s3978_s14   ;;  %s3221_s13 = sphi %s3325_s13, %s3977_s13  }
  0x10   : > { %p2350_p0 = scmp.ge.s32.totalorder %s3241_s18, 1  ;;  %p3928_p1 = scmp.eq.s32.totalorder %s3356_s19, 0 }
  0x11   : > { %p296_p3 = scmp.lt.s32.totalorder %s3241_s18, 3  ;;  %s3243_s21 = smov [#allocation10]  }
  0x12   : > { %s324_s22 = sshll.u32 %s3243_s21, 4  ;;  %s3244_s23 = smov [#allocation11]   ;;  %s325_s22 = int_to_ptr.vmem [resolvable:$true] %s324_s22 }
  0x13   : > { %p3363_p5 = pnand %p2350_p0, %p296_p3  ;;  %s337_s24 = sshll.u32 %s3244_s23, 4  ;;  %s338_s24 = int_to_ptr.vmem [resolvable:$true] %s337_s24 }
  0x14   : > { %s2996_s26 = scalar_lea.vmem %s325_s22, 1024  ;;  %p3004_p12 = scmp.lt.s32.totalorder %s325_s22, %s325_s22 }
  0x15   : > { %s3944_s20 = scalar_select %p3363_p5, 1, 0 }
  0x16   : > { %p2763_p6 = pneg %p3363_p5  ;;  %p2997_p9 = scmp.ne.s32.totalorder %s325_s22, %s2996_s26 }
  0x17   : > { %p3005_p13 = scmp.lt.s32.totalorder %s2996_s26, %s2996_s26 }
  0x18   : > { %p3374_p7 = pnand %p2763_p6, %p3928_p1 }
  0x19   : > { %p3006_p0 = por %p3005_p13, %p3004_p12 }
  0x1a   : > { %s3945_s25 = scalar_select %p3374_p7, 1, 0 }
  0x1b   : > { %p3930_p8 = pneg %p3374_p7 }
  0x1d   : > { %p2999_p10 = pnand %p2997_p9, %p3930_p8 }
  0x1f   : > { %p3000_p11 = pneg %p2999_p10 }
  0x21   : > { %p3007_p3 = pnand %p3006_p0, %p3000_p11 }
  0x23   : > { %3010 = shalt.err (!%p3007_p3)
}
  0x24   : > { %s3924_s27 = smov 64   ;;  %s3926_s28 = smov 4  }
  0x25   : > { %s3946_s2 = sld [smem:[#allocation27_spill]]  ;;  %s3022_s11 = scalar_lea.vmem %s338_s24, 1024 }
  0x26   : > { %p3023_p9 = scmp.ne.s32.totalorder %s338_s24, %s3022_s11  ;;  %p3030_p11 = scmp.lt.s32.totalorder %s338_s24, %s338_s24 }
  0x27   : > { %p3031_p13 = scmp.lt.s32.totalorder %s3022_s11, %s3022_s11 }
  0x28   : > { %p3025_p10 = pnand %p3023_p9, %p3930_p8 }
  0x29   : > { %p3032_p0 = por %p3031_p13, %p3030_p11 }
  0x2a   : > { %p3026_p12 = pneg %p3025_p10 }
  0x2b   : > { %2769 = dma.hbm_to_vmem [thread:$0]  (!%p3374_p7), %s3946_s2, 1024, %s325_s22, [#allocation9], %s3924_s27, %s3924_s27, %s3926_s28  }
  0x2c   : > { %p3033_p3 = pnand %p3032_p0, %p3026_p12 }
  0x2e   : > { %3036 = shalt.err (!%p3033_p3)
}
  0x2f   : > { %s3947_s3 = sld [smem:[#allocation28_spill]]  ;;  %s2349_s22 = sadd.s32 4294967294, %s3241_s18  }
  0x30   : > { %p61_p9 = scmp.ne.s32.totalorder %s3225_s14, %s3221_s13  ;;  %p289_p10 = scmp.eq.s32.totalorder %s2349_s22, 1 }
  0x31   : > { %s2464_s23 = sshll.u32 %s3233_s16, 7  ;;  %s3951_s0 = sld [smem:[#allocation26_spill]] }
  0x32   : > { %p3408_p12 = por %p3928_p1, %p61_p9  ;;  %p3412_p11 = por %p289_p10, %p61_p9 }
  0x34   : > { %s3948_s26 = scalar_select %p3408_p12, 1, 0 }
  0x35   : > { %2772 = dma.hbm_to_vmem [thread:$0]  (!%p3374_p7), %s3947_s3, 1024, %s338_s24, [#allocation12], %s3924_s27, %s3924_s27, %s3926_s28  }
  0x36   : > { %s3949_s29 = scalar_select %p3412_p11, 1, 0 }
  0x37   : > { %s3419_s12 = scalar_lea.hbm %s3951_s0, %s2464_s23  ;;  %s3247_s24 = smov [#allocation5]  }
  0x38   : > { %3950 = sst [smem:[#allocation24_spill]] %s3949_s29  ;;  %s311_s21 = sshll.u32 %s3247_s24, 4  ;;  %s312_s21 = int_to_ptr.vmem [resolvable:$true] %s311_s21 }
  0x39   : > { %p3426_p13 = pnand %p2763_p6, %p3408_p12  ;;  %s3248_s27 = smov [#allocation13]  }
  0x3a   : > { %s350_s28 = sshll.u32 %s3248_s27, 4  ;;  %s3037_s2 = scalar_lea.hbm %s3419_s12, 128  ;;  %s351_s28 = int_to_ptr.vmem [resolvable:$true] %s350_s28 }
  0x3b   : > { %p3038_p0 = scmp.ne.s32.totalorder %s3419_s12, %s3037_s2  ;;  %p3039_p3 = pneg %p3426_p13 }
  0x3c   : > { %s3042_s11 = scalar_lea.hbm %s3951_s0, 256  ;;  %p3043_p6 = scmp.lt.s32.totalorder %s3419_s12, %s3951_s0 }
  0x3d   : > { %p3040_p9 = pnand %p3039_p3, %p3038_p0  ;;  %p3044_p4 = scmp.lt.s32.totalorder %s3042_s11, %s3037_s2 }
  0x3f   : > { %p3041_p10 = pneg %p3040_p9  ;;  %p3045_p1 = por %p3044_p4, %p3043_p6 }
  0x41   : > { %p3046_p2 = pnand %p3045_p1, %p3041_p10 }
  0x43   : > { %3049 = shalt.err (!%p3046_p2)
}
  0x44   : > { %s3050_s29 = scalar_lea.vmem %s312_s21, 128  ;;  %p3058_p5 = scmp.lt.s32.totalorder %s312_s21, %s312_s21 }
  0x45   : > { %p3051_p8 = scmp.ne.s32.totalorder %s312_s21, %s3050_s29  ;;  %p3059_p7 = scmp.lt.s32.totalorder %s3050_s29, %s3050_s29 }
  0x47   : > { %p3053_p11 = pnand %p3051_p8, %p3039_p3  ;;  %p3060_p0 = por %p3059_p7, %p3058_p5 }
  0x49   : > { %p3054_p12 = pneg %p3053_p11 }
  0x4b   : > { %p3061_p9 = pnand %p3060_p0, %p3054_p12 }
  0x4d   : > { %3064 = shalt.err (!%p3061_p9)
}
  0x4e   : > { %s3953_s27 = smov 4   ;;  %s3954_s23 = smov 64  }
  0x4f   : > { %2766 = dma.hbm_to_vmem [thread:$0]  (!%p3426_p13), %s3419_s12, 128, %s312_s21, [#allocation6], %s3954_s23, %s3954_s23, %s3953_s27  }
  0x50   : > { %s3249_s2 = smov [#allocation14]   ;;  %s3076_s30 = scalar_lea.vmem %s351_s28, 1024 }
  0x51   : > { %s372_s3 = sshll.u32 %s3249_s2, 4  ;;  %p3077_p1 = scmp.ne.s32.totalorder %s351_s28, %s3076_s30  ;;  %s373_s3 = int_to_ptr.vmem [resolvable:$true] %s372_s3 }
  0x52   : > { %p3955_p2 = scmp.ne.s32.totalorder %s3945_s25, 0  ;;  %p3084_p5 = scmp.lt.s32.totalorder %s351_s28, %s351_s28 }
  0x53   : > { %p3085_p7 = scmp.lt.s32.totalorder %s3076_s30, %s3076_s30 }
  0x54   : > { %p3956_p4 = pneg %p3955_p2 }
  0x55   : > { %p3086_p12 = por %p3085_p7, %p3084_p5 }
  0x56   : > { %p3079_p8 = pnand %p3077_p1, %p3956_p4 }
  0x58   : > { %p3080_p11 = pneg %p3079_p8 }
  0x5a   : > { %p3087_p3 = pnand %p3086_p12, %p3080_p11 }
  0x5c   : > { %3090 = shalt.err (!%p3087_p3)
}
  0x5d   : > { %s3957_s4 = sld [smem:[#allocation29_spill]]  ;;  %s3102_s21 = scalar_lea.vmem %s373_s3, 1024 }
  0x5e   : > { %p3103_p13 = scmp.ne.s32.totalorder %s373_s3, %s3102_s21  ;;  %p3958_p10 = pmov %p3956_p4 }
  0x5f   : > { %p3110_p9 = scmp.lt.s32.totalorder %s373_s3, %s373_s3  ;;  %p3111_p1 = scmp.lt.s32.totalorder %s3102_s21, %s3102_s21 }
  0x60   : > { %p3105_p6 = pnand %p3103_p13, %p3958_p10 }
  0x61   : > { %p3112_p4 = por %p3111_p1, %p3110_p9 }
  0x62   : > { %p3106_p0 = pneg %p3105_p6 }
  0x63   : > { %2775 = dma.hbm_to_vmem [thread:$0]  (!%p3955_p2), %s3957_s4, 1024, %s351_s28, [#allocation12], %s3954_s23, %s3954_s23, %s3953_s27  }
  0x64   : > { %p3113_p8 = pnand %p3112_p4, %p3106_p0 }
  0x66   : > { %3116 = shalt.err (!%p3113_p8)
}
  0x67   : > { %s3959_s8 = sld [smem:[#allocation30_spill]]  ;;  %s48_s25 = sadd.s32 1, %s3229_s15 }
  0x68   : > { %s41_s28 = sadd.s32 1, %s3237_s17  ;;  %p83_p11 = scmp.ne.s32.totalorder %s3229_s15, %s3225_s14 }
  0x69   : > { %p43_p5 = scmp.ge.s32.totalorder %s41_s28, 2  ;;  %p84_p7 = scmp.eq.s32.totalorder %s3241_s18, 0 }
  0x6a   : > { %p3960_p12 = scmp.eq.s32.totalorder %s3356_s19, 1  ;;  %p2791_p13 = scmp.lt.s32.totalorder %s3241_s18, 2 }
  0x6b   : > { %s3983_s28 = smov (%p43_p5, %s41_s28), 0  ;;  %p85_p10 = por %p84_p7, %p83_p11 }
  0x6c   : > { %p3476_p3 = por %p3960_p12, %p83_p11  ;;  %3962 = sst [smem:[#allocation25_spill]] %s3983_s28 }
  0x6d   : > { %2778 = dma.hbm_to_vmem [thread:$0]  (!%p3955_p2), %s3959_s8, 1024, %s373_s3, [#allocation15], %s3954_s23, %s3954_s23, %s3953_s27  }
  0x6e   : > { %s389_s2 = sand.u32 1, %s3241_s18   ;;  %s45_s30 = ssub.s32 %s3237_s17, %s3983_s28 }
  0x6f   : > { %p46_p2 = scmp.eq.s32.totalorder %s45_s30, 0  ;;  %s391_s3 = sand.u32 1, %s3229_s15  }
  0x70   : > { %s2358_s29 = sshll.u32 %s391_s3, 3  ;;  %s2465_s12 = sshll.u32 %s3237_s17, 7 }
  0x71   : > { %s3489_s21 = scalar_select %p46_p2, %s3229_s15, %s48_s25  }
  0x72   : > { %s401_s0 = scalar_lea.hbm %s3914_s1, %s2465_s12  ;;  %s393_s4 = scalar_lea.vmem [#allocation8], %s2358_s29 }
  0x73   : > { %s402_s8 = sshll.u32 %s393_s4, 4  ;;  %p3496_p6 = pnand %p2791_p13, %p85_p10  ;;  %s403_s8 = int_to_ptr.vmem [resolvable:$true] %s402_s8 }
  0x74   : > { %s390_s28 = scalar_lea.sflag [#allocation9], %s389_s2  ;;  %s3130_s30 = scalar_lea.vmem %s403_s8, 128 }
  0x75   : > { %p3119_p0 = pneg %p3496_p6  ;;  %p3131_p9 = scmp.ne.s32.totalorder %s403_s8, %s3130_s30 }
  0x76   : > { %s3250_s25 = smov [#allocation8]  }
  0x77   : > { %p3133_p1 = pnand %p3131_p9, %p3119_p0  ;;  %s3135_s3 = sshll.u32 %s3250_s25, 4  ;;  %s3136_s3 = int_to_ptr.vmem [resolvable:$false] %s3135_s3 }
  0x78   : > { %s3137_s12 = scalar_lea.vmem %s3136_s3, 256  ;;  %p3138_p8 = scmp.lt.s32.totalorder %s403_s8, %s3136_s3 }
  0x79   : > { %p3134_p4 = pneg %p3133_p1  ;;  %p3139_p11 = scmp.lt.s32.totalorder %s3137_s12, %s3130_s30 }
  0x7b   : > { %p3140_p5 = por %p3139_p11, %p3138_p8 }
  0x7d   : > { %p3141_p7 = pnand %p3140_p5, %p3134_p4 }
  0x7f   : > { %3144 = shalt.err (!%p3141_p7)
}
  0x80   : > { %2782 = dma.hbm_to_vmem [thread:$0]  (!%p3496_p6), %s401_s0, 128, %s403_s8, %s390_s28, %s3954_s23, %s3954_s23, %s3953_s27  }
  0x81   : > { %p3964_p12 = scmp.ne.s32.totalorder %s3944_s20, 0 }
  0x82   : > { %p3965_p13 = scmp.ne.s32.totalorder (!%p3964_p12), %s3948_s26, 0 }
  0x83   : > { %414 = sbr.rel (%p3964_p12) target bundleno = 2447 (0x98f), region = 60 }
  0x88   : > { %3196 = dma.done.wait (%p3965_p13), [#allocation6], 128  }
  0x89   : > { %3198 = vsyncadd (%p3965_p13), [#allocation6], 4294967168  ;;  %s420_s4 = sand.u32 1, %s3356_s19   ;;  %s3515_s2 = sand.u32 1, %s3225_s14  }
  0x8a   : > { %s2362_s13 = sshll.u32 %s3515_s2, 3  ;;  %s421_s29 = scalar_lea.sflag [#allocation9], %s420_s4 }
  0x8b   : > { %s3518_s22 = scalar_lea.vmem [#allocation8], %s2362_s13 }
  0x8c   : > { %3200 = dma.done.wait (%p3965_p13), %s421_s29, 128  }
  0x8d   : > { %3202 = vsyncadd (%p3965_p13), %s421_s29, 4294967168  ;;  %p3966_p10 = scmp.eq.s32.totalorder %s3356_s19, 0 }
  0x8f   : > { %3204 = dma.done.wait (%p3966_p10), [#allocation9], 1024   ;;  %p3967_p2 = pmov %p3966_p10 }
  0x91   : > { %3206 = vsyncadd (%p3967_p2), [#allocation9], 4294966272  ;;  %p3968_p6 = pmov %p3967_p2 }
  0x92   : > { %p3969_p0 = pmov %p3967_p2 }
  0x93   : > { %3208 = dma.done.wait (%p3968_p6), [#allocation12], 2048  }
  0x94   : > { %3210 = vsyncadd (%p3969_p0), [#allocation12], 4294965248  ;;  %p3970_p9 = pmov %p3969_p0 }
  0x95   : > { %p3971_p1 = pmov %p3969_p0 }
  0x96   : > { %3212 = dma.done.wait (%p3970_p9), [#allocation15], 1024  }
  0x97   : > { %3214 = vsyncadd (%p3971_p1), [#allocation15], 4294966272  ;;  %v3251_v0 = vmov 0.0   ;;  %vm3252_vm0 = vmmov 0   ;;  %v2870_v1 = vld [vmem:[#allocation11 + $0x38] sm:$0xff]   ;;  %v2871_v2 = vld [vmem:[#allocation11 + $0x30] sm:$0xff]   ;;  %v857_v55 = vlaneseq }
  0x98   : > { %2565 = vmatprep.subr.bf16.mxu0 %v3251_v0  ;;  %2581 = vmatprep.mubr.msk.bf16.mxu0 %vm3252_vm0, %v3251_v0  ;;  %v2872_v3 = vld [vmem:[#allocation11 + $0x28] sm:$0xff]   ;;  %v2873_v4 = vld [vmem:[#allocation11 + $0x20] sm:$0xff]   ;;  %v2874_v5 = vld [vmem:[#allocation11 + $0x18] sm:$0xff]   ;;  %vm869_vm1 = vcmask 31744   ;;  %s3253_s19 = smov 124   ;;  %vm919_vm3 = vcmask 130048  }
  0x99   : > { %2585 = vmatprep.subr.bf16.mxu1 %v3251_v0  ;;  %2601 = vmatprep.mubr.msk.bf16.mxu1 %vm3252_vm0, %v3251_v0  ;;  %v2875_v6 = vld [vmem:[#allocation11 + $0x10] sm:$0xff]   ;;  %v2888_v7 = vld [vmem:[#allocation13 + $0x38] sm:$0xff]   ;;  %v2876_v9 = vld [vmem:[#allocation11 + $0x8] sm:$0xff]   ;;  %v3594_v56 = vand.u32 127, %v857_v55  ;;  %s3254_s28 = smov 120   ;;  %s3255_s11 = smov 116  }
  0x9a   : > { %2566 = vmatpush3.bf16.msra.mxu0 %v2870_v1  ;;  %2586 = vmatpush3.bf16.msra.mxu1 %v2888_v7  ;;  %v2889_v8 = vld [vmem:[#allocation13 + $0x30] sm:$0xff]   ;;  %v2890_v10 = vld [vmem:[#allocation13 + $0x28] sm:$0xff]   ;;  %v2877_v11 = vld [vmem:[#allocation11] sm:$0xff]   ;;  %s3256_s30 = smov 112   ;;  %s3257_s25 = smov 100   ;;  %vm1003_vm4 = vcmask 27648  }
  0x9b   : > { %2567 = vmatprep.subr.bf16.mxu0 %v3251_v0  ;;  %2587 = vmatprep.subr.bf16.mxu1 %v3251_v0  ;;  %v2878_v12 = vld [vmem:[#allocation5] sm:$0xff]   ;;  %v2879_v13 = vld [vmem:[#allocation10 + $0x38] sm:$0xff]   ;;  %v2880_v14 = vld [vmem:[#allocation10 + $0x30] sm:$0xff]   ;;  %vm859_vm2 = vcmp.lt.s32.totalorder %v3594_v56, 8  ;;  %s3258_s3 = smov 108   ;;  %s3259_s12 = smov 104  }
  0x9c   : > { %v2881_v15 = vld [vmem:[#allocation10 + $0x28] sm:$0xff]   ;;  %v2882_v16 = vld [vmem:[#allocation10 + $0x20] sm:$0xff]   ;;  %v2883_v17 = vld [vmem:[#allocation10 + $0x18] sm:$0xff]   ;;  %s3261_s4 = smov 4   ;;  %s3262_s13 = smov 8   ;;  %vm1156_vm5 = vcmask 60448  }
  0x9d   : > { %v2884_v18 = vld [vmem:[#allocation10 + $0x10] sm:$0xff]   ;;  %v2885_v19 = vld [vmem:[#allocation10 + $0x8] sm:$0xff]   ;;  %v2886_v20 = vld [vmem:[#allocation10] sm:$0xff]   ;;  %vm1308_vm6 = vcmask 93248   ;;  %s3263_s29 = smov 12   ;;  %s3265_s0 = smov 20  }
  0x9e   : > { %2568 = vmatpush3.bf16.msra.mxu0 %v2871_v2  ;;  %2588 = vmatpush3.bf16.msra.mxu1 %v2889_v8  ;;  %v2887_v21 = vld [vmem:[%s3518_s22] sm:$0xff]   ;;  %v2891_v22 = vld [vmem:[#allocation13 + $0x20] sm:$0xff]   ;;  %v2894_v25 = vld [vmem:[#allocation13 + $0x8] sm:$0xff]   ;;  %s3264_s22 = smov 16   ;;  %s3266_s8 = smov 24   ;;  %vm1460_vm7 = vcmask 126048  }
  0x9f   : > { %2569 = vmatprep.subr.bf16.mxu0 %v3251_v0  ;;  %2589 = vmatprep.subr.bf16.mxu1 %v3251_v0  ;;  %v2892_v23 = vld [vmem:[#allocation13 + $0x18] sm:$0xff]   ;;  %v2893_v24 = vld [vmem:[#allocation13 + $0x10] sm:$0xff]   ;;  %v2895_v26 = vld [vmem:[#allocation13] sm:$0xff]   ;;  %vm1612_vm8 = vcmask 158848   ;;  %vm1764_vm9 = vcmask 191648   ;;  %vm1916_vm10 = vcmask 224448  }
  0xa0   : > { %v2368_v28 = vld [vmem:[%s3919_s6] ss:$0 sm:$0xff]  ;;  %vm2068_vm11 = vcmask 257248   ;;  %s2367_s20 = sshll.u32 %s3515_s2, 4 }
  0xa1   : > { %v2391_v39 = vld [vmem:[%s3918_s5] ss:$0 sm:$0xff]  ;;  %s476_s23 = scalar_lea.vmem [#allocation16], %s2367_s20 }
  0xa2   : > { %2570 = vmatpush3.bf16.msra.mxu0 %v2872_v3  ;;  %2590 = vmatpush3.bf16.msra.mxu1 %v2890_v10  ;;  %v2378_v46 = vld [vmem:[%s3920_s7] ss:$0 sm:$0xff] }
  0xa3   : > { %2571 = vmatprep.subr.bf16.mxu0 %v3251_v0  ;;  %2591 = vmatprep.subr.bf16.mxu1 %v3251_v0 }
  0xa6   : > { %2572 = vmatpush3.bf16.msra.mxu0 %v2873_v4  ;;  %2592 = vmatpush3.bf16.msra.mxu1 %v2891_v22 }
  0xa7   : > { %2573 = vmatprep.subr.bf16.mxu0 %v3251_v0  ;;  %2593 = vmatprep.subr.bf16.mxu1 %v3251_v0 }
  0xaa   : > { %2574 = vmatpush3.bf16.msra.mxu0 %v2874_v5  ;;  %2594 = vmatpush3.bf16.msra.mxu1 %v2892_v23 }
  0xab   : > { %2575 = vmatprep.subr.bf16.mxu0 %v3251_v0  ;;  %2595 = vmatprep.subr.bf16.mxu1 %v3251_v0 }
  0xae   : > { %2576 = vmatpush3.bf16.msra.mxu0 %v2875_v6  ;;  %2596 = vmatpush3.bf16.msra.mxu1 %v2893_v24 }
  0xaf   : > { %2577 = vmatprep.subr.bf16.mxu0 %v3251_v0  ;;  %2597 = vmatprep.subr.bf16.mxu1 %v3251_v0 }
  0xb2   : > { %2578 = vmatpush3.bf16.msra.mxu0 %v2876_v9  ;;  %2598 = vmatpush3.bf16.msra.mxu1 %v2894_v25 }
  0xb3   : > { %2579 = vmatprep.subr.bf16.mxu0 %v3251_v0  ;;  %2599 = vmatprep.subr.bf16.mxu1 %v3251_v0 }
  0xb6   : > { %2580 = vmatpush3.bf16.msra.mxu0 %v2877_v11  ;;  %2600 = vmatpush3.bf16.msra.mxu1 %v2895_v26 }
  0xb7   : > { %2605 = vmatprep.subr.bf16.mxu0 %v3251_v0  ;;  %2625 = vmatprep.subr.bf16.mxu1 %v3251_v0 }
  0xb9   : > { %2582 = vmatmul.mubr.bf16.vlgmr.msra.gmra.mxu0 %v2878_v12  ;;  %2602 = vmatmul.mubr.bf16.vlgmr.msra.gmra.mxu1 %v2878_v12 }
  0xba   : > { %2606 = vmatpush3.bf16.msra.mxu0 %v2879_v13  ;;  %2621 = vmatprep.mubr.msk.bf16.mxu0 %vm3252_vm0, %v3251_v0 }
  0xbb   : > { %2607 = vmatprep.subr.bf16.mxu0 %v3251_v0  ;;  %2627 = vmatprep.mubr.msk.bf16.mxu1 %vm3252_vm0, %v3251_v0 }
  0xbe   : > { %2608 = vmatpush3.bf16.msra.mxu0 %v2880_v14 }
  0xbf   : > { %2609 = vmatprep.subr.bf16.mxu0 %v3251_v0 }
  0xc2   : > { %2610 = vmatpush3.bf16.msra.mxu0 %v2881_v15 }
  0xc3   : > { %2611 = vmatprep.subr.bf16.mxu0 %v3251_v0 }
  0xc6   : > { %2612 = vmatpush3.bf16.msra.mxu0 %v2882_v16 }
  0xc7   : > { %2613 = vmatprep.subr.bf16.mxu0 %v3251_v0 }
  0xca   : > { %2614 = vmatpush3.bf16.msra.mxu0 %v2883_v17 }
  0xcb   : > { %2615 = vmatprep.subr.bf16.mxu0 %v3251_v0 }
  0xce   : > { %2616 = vmatpush3.bf16.msra.mxu0 %v2884_v18 }
  0xcf   : > { %2617 = vmatprep.subr.bf16.mxu0 %v3251_v0 }
  0xd2   : > { %2618 = vmatpush3.bf16.msra.mxu0 %v2885_v19 }
  0xd3   : > { %2619 = vmatprep.subr.bf16.mxu0 %v3251_v0 }
  0xd6   : > { %2620 = vmatpush3.bf16.msra.mxu0 %v2886_v20 }
  0xd7   : > { %2673 = vmatprep.subr.bf16.mxu0 %v3251_v0 }
  0xd9   : > { %2622 = vmatmul.mubr.bf16.vlgmr.msra.gmra.mxu0 %v2887_v21 }
  0xda   : > { %2675 = vmatprep.mubr.msk.bf16.mxu0 %vm3252_vm0, %v3251_v0 }
 0x179   : > { %v597_v27 = vpop.f32.mrf.mxu0  ;;  %v709_v47 = vpop.f32.mrf.mxu1 }
 0x17a   : > { %v598_v31 = vadd.f32 %v2368_v28, %v597_v27  ;;  %v710_v49 = vadd.f32 %v2378_v46, %v709_v47 }
 0x17b   : > { %v2583_v29 = vpop.f32.mrf.mxu0  ;;  %v2603_v48 = vpop.f32.mrf.mxu1 }
 0x17d   : > { %v600_v30 = vpop.f32.mrf.mxu0  ;;  %v712_v50 = vpop.f32.mrf.mxu1 }
 0x17e   : > { %v601_v32 = vadd.f32 %v2368_v28, %v600_v30  ;;  %v713_v51 = vadd.f32 %v2378_v46, %v712_v50 }
 0x17f   : > { %v2584_v33 = vpop.f32.mrf.mxu0  ;;  %v2604_v52 = vpop.f32.mrf.mxu1 }
 0x180   : > { %v2490_v34 = vpack.c.bf16 %v601_v32, %v598_v31  ;;  %v2495_v53 = vpack.c.bf16 %v713_v51, %v710_v49 }
 0x182   : > { %2491 = vst [vmem:[#allocation2] sm:$0xff] %v2490_v34   ;;  %2496 = vst [vmem:[#allocation3] sm:$0xff] %v2495_v53  }
 0x189   : > { %v2896_v35 = vld [vmem:[#allocation2] sm:$0xff]   ;;  %v2898_v54 = vld [vmem:[#allocation3] sm:$0xff]  }
 0x18a   : > { %v2897_v36 = vld [vmem:[#allocation2] sm:$0xff]   ;;  %1016 = vrot.lane.b32.xlu1 %v2896_v35, %s3253_s19  ;;  %v2899_v26 = vld [vmem:[#allocation3] sm:$0xff]  }
 0x18b   : > { %v874_v37 = vsel %vm869_vm1, %v2897_v36, 0  ;;  %v2900_v27 = vld [vmem:[#allocation3] sm:$0xff]   ;;  %v2901_v28 = vld [vmem:[#allocation2] sm:$0xff]  }
 0x18c   : > { %2626 = vmatpush3.bf16.xpose.msra.mxu1 %v874_v37  ;;  %v2911_v56 = vld [vmem:[#allocation3] sm:$0xff]  }
 0x18d   : > { %2631 = vmatprep.subr.bf16.mxu1 %v3251_v0 }
 0x199   : > { %v849_v38 = vpop.f32.mrf.mxu0 }
 0x19a   : > { %v850_v42 = vadd.f32 %v2391_v39, %v849_v38 }
 0x19b   : > { %v2623_v40 = vpop.f32.mrf.mxu0 }
 0x19d   : > { %v852_v41 = vpop.f32.mrf.mxu0 }
 0x19e   : > { %v853_v43 = vadd.f32 %v2391_v39, %v852_v41 }
 0x19f   : > { %v2624_v44 = vpop.f32.mrf.mxu0 }
 0x1a0   : > { %v3582_v45 = vpack.c.bf16 %v853_v43, %v850_v42 }
 0x1a2   : > { %1009 = vrot.lane.b32.xlu1 %v3582_v45, %s3253_s19  ;;  %2628 = vmatmul.mubr.msk.bf16.vlgmr.msra.gmra.mxu1 %vm869_vm1, %v3582_v45 }
 0x1a3   : > { %2633 = vmatprep.mubr.msk.bf16.mxu1 %vm3252_vm0, %v3251_v0  ;;  %2632 = vmatpush3.bf16.msra.mxu1 %v2898_v54 }
 0x1a4   : > { %2637 = vmatprep.subr.bf16.mxu1 %v3251_v0 }
 0x1fc   : > { %v1017_v10 = vpop.permute.xlu1 %1016 }
 0x1fd   : > { %v1022_v12 = vsel %vm869_vm1, %v1017_v10, 0 }
 0x214   : > { %v1010_v13 = vpop.permute.xlu1 %1009 }
 0x262   : > { %v910_v57 = vpop.f32.mrf.mxu1 }
 0x263   : > { %v917_v58 = vsel %vm859_vm2, %v910_v57, -1e+30  ;;  %v2902_v57 = vld [vmem:[#allocation2] sm:$0xff]  }
 0x264   : > { %v2629_v59 = vpop.f32.mrf.mxu1  ;;  %v920_v60 = vsel %vm919_vm3, %v917_v58, -inf }
 0x265   : > { %921 = vmax.xlane.f32.xlu0 %v920_v60  ;;  %v2904_v59 = vld [vmem:[#allocation2] sm:$0xff]  }
 0x266   : > { %v913_v61 = vpop.f32.mrf.mxu1  ;;  %v2905_v60 = vld [vmem:[#allocation2] sm:$0xff]  }
 0x267   : > { %v918_v62 = vsel %vm859_vm2, %v913_v61, -1e+30  ;;  %v2906_v61 = vld [vmem:[#allocation2] sm:$0xff]  }
 0x268   : > { %v2630_v63 = vpop.f32.mrf.mxu1  ;;  %v923_v1 = vsel %vm919_vm3, %v918_v62, -inf }
 0x269   : > { %924 = vmax.xlane.f32.xlu0 %v923_v1 }
 0x2ee   : > { %v922_v2 = vpop.xlane.xlu0 %921 }
 0x2ef   : > { %v926_v3 = vsub.f32 %v917_v58, %v922_v2  ;;  %v2903_v58 = vld [vmem:[#allocation2] sm:$0xff]  }
 0x2f1   : > { %v928_v4 = vmul.f32 1.442695, %v926_v3 }
 0x2f2   : > { %v925_v5 = vpop.xlane.xlu0 %924 }
 0x2f3   : > { %v927_v6 = vsub.f32 %v918_v62, %v925_v5  ;;  %2921 = vpow2.f32 %v928_v4 }
 0x2f5   : > { %v930_v7 = vmul.f32 1.442695, %v927_v6 }
 0x2f7   : > { %2923 = vpow2.f32 %v930_v7 }
 0x300   : > { %v3603_v8 = vpop.eup %2921 }
 0x304   : > { %v3605_v9 = vpop.eup %2923 }
 0x305   : > { %v938_v11 = vpack.c.bf16 %v3605_v9, %v3603_v8 }
 0x307   : > { %2634 = vmatmul.mubr.msk.bf16.vlgmr.msra.gmra.mxu1 %vm919_vm3, %v938_v11 }
 0x308   : > { %2638 = vmatpush3.bf16.xpose.msra.mxu1 %v1022_v12  ;;  %2639 = vmatprep.mubr.msk.bf16.mxu1 %vm3252_vm0, %v3251_v0 }
 0x309   : > { %2643 = vmatprep.subr.bf16.mxu1 %v3251_v0 }
 0x30f   : > { %2640 = vmatmul.mubr.msk.bf16.vlgmr.msra.gmra.mxu1 %vm869_vm1, %v1010_v13 }
 0x310   : > { %2645 = vmatprep.mubr.msk.bf16.mxu1 %vm3252_vm0, %v3251_v0 }
 0x3c7   : > { %v3617_v14 = vpop.f32.mrf.mxu1 }
 0x3c9   : > { %v2635_v15 = vpop.f32.mrf.mxu1 }
 0x3cb   : > { %v3619_v16 = vpop.f32.mrf.mxu1 }
 0x3cd   : > { %v2636_v17 = vpop.f32.mrf.mxu1 }
 0x3cf   : > { %v1058_v18 = vpop.f32.mrf.mxu1 }
 0x3d0   : > { %v1065_v19 = vsel %vm859_vm2, %v1058_v18, -1e+30 }
 0x3d1   : > { %v2641_v20 = vpop.f32.mrf.mxu1  ;;  %v1067_v21 = vsel %vm919_vm3, %v1065_v19, -inf }
 0x3d2   : > { %1068 = vmax.xlane.f32.xlu0 %v1067_v21 }
 0x3d3   : > { %v1061_v22 = vpop.f32.mrf.mxu1 }
 0x3d4   : > { %v1066_v23 = vsel %vm859_vm2, %v1061_v22, -1e+30 }
 0x3d5   : > { %v2642_v24 = vpop.f32.mrf.mxu1  ;;  %v1070_v25 = vsel %vm919_vm3, %v1066_v23, -inf }
 0x3d6   : > { %1071 = vmax.xlane.f32.xlu1 %v1070_v25 }
 0x3e7   : > { %1245 = vrot.lane.b32.xlu1 %v2899_v26, %s3254_s28 }
 0x3e8   : > { %1093 = vrot.lane.b32.xlu0 %v2900_v27, %s3253_s19  ;;  %s3267_s19 = smov 28  }
 0x3ec   : > { %1168 = vrot.lane.b32.xlu0 %v2901_v28, %s3254_s28 }
 0x3f0   : > { %1161 = vrot.lane.b32.xlu0 %v3582_v45, %s3254_s28  ;;  %s2209_s28 = sshll.u32 %s476_s23, 4  ;;  %s3859_s28 = int_to_ptr.vmem [resolvable:$true] %s2209_s28 }
 0x45b   : > { %v1069_v29 = vpop.xlane.xlu0 %1068 }
 0x45c   : > { %v1073_v30 = vsub.f32 %v1065_v19, %v1069_v29 }
 0x45e   : > { %v1075_v31 = vmul.f32 1.442695, %v1073_v30 }
 0x45f   : > { %v1094_v32 = vpop.permute.xlu0 %1093  ;;  %v1072_v33 = vpop.xlane.xlu1 %1071 }
 0x460   : > { %v1074_v34 = vsub.f32 %v1066_v23, %v1072_v33  ;;  %2644 = vmatpush3.bf16.msra.mxu1 %v1094_v32  ;;  %2925 = vpow2.f32 %v1075_v31 }
 0x461   : > { %2649 = vmatprep.subr.bf16.mxu1 %v3251_v0 }
 0x462   : > { %v1077_v35 = vmul.f32 1.442695, %v1074_v34 }
 0x463   : > { %v1169_v38 = vpop.permute.xlu0 %1168  ;;  %v1246_v42 = vpop.permute.xlu1 %1245 }
 0x464   : > { %2927 = vpow2.f32 %v1077_v35  ;;  %v1174_v40 = vsel %vm869_vm1, %v1169_v38, 0 }
 0x467   : > { %v1162_v41 = vpop.permute.xlu0 %1161 }
 0x46d   : > { %v3630_v36 = vpop.eup %2925 }
 0x471   : > { %v3632_v37 = vpop.eup %2927 }
 0x472   : > { %v1085_v39 = vpack.c.bf16 %v3632_v37, %v3630_v36 }
 0x474   : > { %2646 = vmatmul.mubr.msk.bf16.vlgmr.msra.gmra.mxu1 %vm919_vm3, %v1085_v39 }
 0x475   : > { %2650 = vmatpush3.bf16.xpose.msra.mxu1 %v1174_v40  ;;  %2651 = vmatprep.mubr.msk.bf16.mxu1 %vm3252_vm0, %v3251_v0 }
 0x476   : > { %2655 = vmatprep.subr.bf16.mxu1 %v3251_v0 }
 0x47c   : > { %2652 = vmatmul.mubr.msk.bf16.vlgmr.msra.gmra.mxu1 %vm869_vm1, %v1162_v41 }
 0x47d   : > { %2656 = vmatpush3.bf16.msra.mxu1 %v1246_v42  ;;  %2657 = vmatprep.mubr.msk.bf16.mxu1 %vm3252_vm0, %v3251_v0 }
 0x47e   : > { %2661 = vmatprep.subr.bf16.mxu1 %v3251_v0 }
 0x534   : > { %v3645_v43 = vpop.f32.mrf.mxu1 }
 0x536   : > { %v2647_v44 = vpop.f32.mrf.mxu1 }
 0x538   : > { %v3647_v46 = vpop.f32.mrf.mxu1 }
 0x53a   : > { %v2648_v47 = vpop.f32.mrf.mxu1 }
 0x53c   : > { %v1210_v48 = vpop.f32.mrf.mxu1 }
 0x53d   : > { %v1217_v49 = vsel %vm859_vm2, %v1210_v48, -1e+30 }
 0x53e   : > { %v2653_v50 = vpop.f32.mrf.mxu1  ;;  %v1219_v51 = vsel %vm919_vm3, %v1217_v49, -inf }
 0x53f   : > { %1220 = vmax.xlane.f32.xlu0 %v1219_v51 }
 0x540   : > { %v1213_v52 = vpop.f32.mrf.mxu1 }
 0x541   : > { %v1218_v53 = vsel %vm859_vm2, %v1213_v52, -1e+30 }
 0x542   : > { %v2654_v54 = vpop.f32.mrf.mxu1  ;;  %v1222_v55 = vsel %vm919_vm3, %v1218_v53, -inf }
 0x543   : > { %1223 = vmax.xlane.f32.xlu1 %v1222_v55 }
 0x554   : > { %1320 = vrot.lane.b32.xlu1 %v2902_v57, %s3255_s11 }
 0x555   : > { %1472 = vrot.lane.b32.xlu0 %v2903_v58, %s3256_s30 }
 0x558   : > { %1313 = vrot.lane.b32.xlu1 %v3582_v45, %s3255_s11 }
 0x559   : > { %1921 = vrot.lane.b32.xlu0 %v3582_v45, %s3257_s25 }
 0x55c   : > { %1465 = vrot.lane.b32.xlu1 %v3582_v45, %s3256_s30 }
 0x560   : > { %1624 = vrot.lane.b32.xlu1 %v2904_v59, %s3258_s3 }
 0x564   : > { %1617 = vrot.lane.b32.xlu1 %v3582_v45, %s3258_s3 }
 0x568   : > { %1776 = vrot.lane.b32.xlu1 %v2905_v60, %s3259_s12 }
 0x56c   : > { %1769 = vrot.lane.b32.xlu1 %v3582_v45, %s3259_s12 }
 0x570   : > { %1928 = vrot.lane.b32.xlu1 %v2906_v61, %s3257_s25 }
 0x5c8   : > { %v1221_v62 = vpop.xlane.xlu0 %1220 }
 0x5c9   : > { %v1225_v63 = vsub.f32 %v1217_v49, %v1221_v62 }
 0x5cb   : > { %v1227_v1 = vmul.f32 1.442695, %v1225_v63 }
 0x5cc   : > { %v1473_v2 = vpop.permute.xlu0 %1472  ;;  %v1224_v3 = vpop.xlane.xlu1 %1223 }
 0x5cd   : > { %v1478_v4 = vsel %vm869_vm1, %v1473_v2, 0  ;;  %v1226_v5 = vsub.f32 %v1218_v53, %v1224_v3  ;;  %2929 = vpow2.f32 %v1227_v1 }
 0x5ce   : > { %2674 = vmatpush3.bf16.xpose.msra.mxu0 %v1478_v4 }
 0x5cf   : > { %v1229_v6 = vmul.f32 1.442695, %v1226_v5  ;;  %2685 = vmatprep.subr.bf16.mxu0 %v3251_v0 }
 0x5d0   : > { %v1321_v7 = vpop.permute.xlu1 %1320  ;;  %v1922_v25 = vpop.permute.xlu0 %1921 }
 0x5d1   : > { %2931 = vpow2.f32 %v1229_v6  ;;  %v1326_v19 = vsel %vm869_vm1, %v1321_v7, 0 }
 0x5d4   : > { %v1314_v10 = vpop.permute.xlu1 %1313 }
 0x5d8   : > { %v1466_v45 = vpop.permute.xlu1 %1465 }
 0x5d9   : > { %2676 = vmatmul.mubr.msk.bf16.vlgmr.msra.gmra.mxu0 %vm869_vm1, %v1466_v45 }
 0x5da   : > { %2687 = vmatprep.mubr.msk.bf16.mxu0 %vm3252_vm0, %v3251_v0  ;;  %v3675_v12 = vpop.eup %2929 }
 0x5dc   : > { %v1625_v11 = vpop.permute.xlu1 %1624 }
 0x5dd   : > { %v1630_v13 = vsel %vm869_vm1, %v1625_v11, 0 }
 0x5de   : > { %v3678_v15 = vpop.eup %2931  ;;  %2686 = vmatpush3.bf16.xpose.msra.mxu0 %v1630_v13 }
 0x5df   : > { %v1237_v17 = vpack.c.bf16 %v3678_v15, %v3675_v12  ;;  %2697 = vmatprep.subr.bf16.mxu0 %v3251_v0 }
 0x5e0   : > { %v1618_v18 = vpop.permute.xlu1 %1617 }
 0x5e1   : > { %2658 = vmatmul.mubr.msk.bf16.vlgmr.msra.gmra.mxu1 %vm919_vm3, %v1237_v17 }
 0x5e2   : > { %2662 = vmatpush3.bf16.xpose.msra.mxu1 %v1326_v19  ;;  %2663 = vmatprep.mubr.msk.bf16.mxu1 %vm3252_vm0, %v3251_v0  ;;  %v2908_v19 = vld [vmem:[#allocation3] sm:$0xff]  }
 0x5e3   : > { %2667 = vmatprep.subr.bf16.mxu1 %v3251_v0 }
 0x5e4   : > { %v1777_v20 = vpop.permute.xlu1 %1776 }
 0x5e5   : > { %v1782_v21 = vsel %vm869_vm1, %v1777_v20, 0  ;;  %2688 = vmatmul.mubr.msk.bf16.vlgmr.msra.gmra.mxu0 %vm869_vm1, %v1618_v18  ;;  %v2907_v18 = vld [vmem:[#allocation3] sm:$0xff]  }
 0x5e6   : > { %2698 = vmatpush3.bf16.xpose.msra.mxu0 %v1782_v21  ;;  %2699 = vmatprep.mubr.msk.bf16.mxu0 %vm3252_vm0, %v3251_v0  ;;  %v2909_v20 = vld [vmem:[#allocation3] sm:$0xff]  }
 0x5e7   : > { %2709 = vmatprep.subr.bf16.mxu0 %v3251_v0  ;;  %v2910_v21 = vld [vmem:[#allocation3] sm:$0xff]  }
 0x5e8   : > { %v1770_v22 = vpop.permute.xlu1 %1769 }
 0x5e9   : > { %2664 = vmatmul.mubr.msk.bf16.vlgmr.msra.gmra.mxu1 %vm869_vm1, %v1314_v10 }
 0x5ea   : > { %2669 = vmatprep.mubr.msk.bf16.mxu1 %vm3252_vm0, %v3251_v0 }
 0x5ec   : > { %v1929_v23 = vpop.permute.xlu1 %1928 }
 0x5ed   : > { %v1934_v24 = vsel %vm869_vm1, %v1929_v23, 0  ;;  %2700 = vmatmul.mubr.msk.bf16.vlgmr.msra.gmra.mxu0 %vm869_vm1, %v1770_v22  ;;  %v1079_v22 = vsel %vm919_vm3, %v3630_v36, 0.0  ;;  %v1231_v23 = vsel %vm919_vm3, %v3675_v12, 0.0 }
 0x5ee   : > { %2710 = vmatpush3.bf16.xpose.msra.mxu0 %v1934_v24  ;;  %2711 = vmatprep.mubr.msk.bf16.mxu0 %vm3252_vm0, %v3251_v0  ;;  %v1234_v24 = vsel %vm919_vm3, %v3678_v15, 0.0 }
 0x5ef   : > { %2721 = vmatprep.subr.bf16.mxu0 %v3251_v0 }
 0x5f5   : > { %2712 = vmatmul.mubr.msk.bf16.vlgmr.msra.gmra.mxu0 %vm869_vm1, %v1922_v25  ;;  %v1082_v25 = vsel %vm919_vm3, %v3632_v37, 0.0 }
 0x5f6   : > { %2737 = vmatprep.mubr.msk.bf16.mxu0 %vm3252_vm0, %v3251_v0 }
 0x699   : > { %v1514_v26 = vpop.f32.mrf.mxu0 }
 0x69a   : > { %v3706_v27 = vsel %vm859_vm2, %v1514_v26, -1e+30 }
 0x69b   : > { %v2677_v28 = vpop.f32.mrf.mxu0  ;;  %v1523_v29 = vsel %vm919_vm3, %v3706_v27, -inf }
 0x69c   : > { %1524 = vmax.xlane.f32.xlu0 %v1523_v29 }
 0x69d   : > { %v1517_v30 = vpop.f32.mrf.mxu0 }
 0x69e   : > { %v3712_v31 = vsel %vm859_vm2, %v1517_v30, -1e+30 }
 0x69f   : > { %v2678_v32 = vpop.f32.mrf.mxu0  ;;  %v1526_v33 = vsel %vm919_vm3, %v3712_v31, -inf }
 0x6a0   : > { %1527 = vmax.xlane.f32.xlu1 %v1526_v33 }
 0x6a1   : > { %v3716_v34 = vpop.f32.mrf.mxu1 }
 0x6a3   : > { %v2659_v35 = vpop.f32.mrf.mxu1 }
 0x6a5   : > { %v3718_v38 = vpop.f32.mrf.mxu1  ;;  %v1666_v39 = vpop.f32.mrf.mxu0 }
 0x6a6   : > { %v3722_v40 = vsel %vm859_vm2, %v1666_v39, -1e+30 }
 0x6a7   : > { %v2660_v41 = vpop.f32.mrf.mxu1  ;;  %v2689_v42 = vpop.f32.mrf.mxu0  ;;  %v1675_v44 = vsel %vm919_vm3, %v3722_v40, -inf }
 0x6a8   : > { %1676 = vmax.xlane.f32.xlu0 %v1675_v44 }
 0x6a9   : > { %v1362_v47 = vpop.f32.mrf.mxu1  ;;  %v1669_v48 = vpop.f32.mrf.mxu0 }
 0x6aa   : > { %v3728_v49 = vsel %vm859_vm2, %v1669_v48, -1e+30  ;;  %v3752_v3 = vsel %vm859_vm2, %v1362_v47, -1e+30 }
 0x6ab   : > { %v2665_v50 = vpop.f32.mrf.mxu1  ;;  %v2690_v51 = vpop.f32.mrf.mxu0  ;;  %v1678_v52 = vsel %vm919_vm3, %v3728_v49, -inf  ;;  %v1371_v6 = vsel %vm919_vm3, %v3752_v3, -inf }
 0x6ac   : > { %1679 = vmax.xlane.f32.xlu1 %v1678_v52 }
 0x6ad   : > { %v1365_v53 = vpop.f32.mrf.mxu1  ;;  %v1818_v54 = vpop.f32.mrf.mxu0 }
 0x6ae   : > { %v3734_v55 = vsel %vm859_vm2, %v1818_v54, -1e+30  ;;  %v3740_v60 = vsel %vm859_vm2, %v1365_v53, -1e+30 }
 0x6af   : > { %v2666_v57 = vpop.f32.mrf.mxu1  ;;  %v2701_v58 = vpop.f32.mrf.mxu0  ;;  %v1827_v59 = vsel %vm919_vm3, %v3734_v55, -inf  ;;  %v1374_v1 = vsel %vm919_vm3, %v3740_v60, -inf }
 0x6b0   : > { %1828 = vmax.xlane.f32.xlu0 %v1827_v59 }
 0x6b1   : > { %v1821_v61 = vpop.f32.mrf.mxu0 }
 0x6b2   : > { %v3744_v62 = vsel %vm859_vm2, %v1821_v61, -1e+30 }
 0x6b3   : > { %v2702_v63 = vpop.f32.mrf.mxu0  ;;  %v1830_v2 = vsel %vm919_vm3, %v3744_v62, -inf }
 0x6b4   : > { %1375 = vmax.xlane.f32.xlu0 %v1374_v1  ;;  %1831 = vmax.xlane.f32.xlu1 %v1830_v2 }
 0x6b5   : > { %v1970_v4 = vpop.f32.mrf.mxu0 }
 0x6b6   : > { %v3758_v7 = vsel %vm859_vm2, %v1970_v4, -1e+30 }
 0x6b7   : > { %v2713_v5 = vpop.f32.mrf.mxu0  ;;  %v1979_v11 = vsel %vm919_vm3, %v3758_v7, -inf }
 0x6b8   : > { %1372 = vmax.xlane.f32.xlu1 %v1371_v6 }
 0x6b9   : > { %v1973_v10 = vpop.f32.mrf.mxu0 }
 0x6ba   : > { %v3764_v13 = vsel %vm859_vm2, %v1973_v10, -1e+30 }
 0x6bb   : > { %v2714_v45 = vpop.f32.mrf.mxu0  ;;  %v1982_v17 = vsel %vm919_vm3, %v3764_v13, -inf }
 0x6bc   : > { %1980 = vmax.xlane.f32.xlu1 %v1979_v11 }
 0x6c0   : > { %1983 = vmax.xlane.f32.xlu1 %v1982_v17 }
 0x6ca   : > { %1397 = vrot.lane.b32.xlu0 %v2907_v18, %s3255_s11  ;;  %s2486_s11 = sshll.u32 %s3233_s16, 8  ;;  %s3268_s16 = smov [#allocation16]  }
 0x6ce   : > { %1701 = vrot.lane.b32.xlu0 %v2908_v19, %s3258_s3  ;;  %s3864_s3 = scalar_lea.hbm %s3923_s10, %s2486_s11 }
 0x6d1   : > { %1549 = vrot.lane.b32.xlu1 %v2909_v20, %s3256_s30 }
 0x6d2   : > { %1853 = vrot.lane.b32.xlu0 %v2910_v21, %s3259_s12  ;;  %s2194_s12 = scalar_lea.sflag [#allocation7], %s3515_s2 }
 0x6d5   : > { %2005 = vrot.lane.b32.xlu1 %v2911_v56, %s3257_s25 }
 0x6f1   : > { %1080 = vadd.xlane.f32.xlu0 %v1079_v22 }
 0x6f5   : > { %1232 = vadd.xlane.f32.xlu0 %v1231_v23  ;;  %v932_v23 = vsel %vm919_vm3, %v3603_v8, 0.0 }
 0x6f9   : > { %1235 = vadd.xlane.f32.xlu0 %v1234_v24  ;;  %1083 = vadd.xlane.f32.xlu1 %v1082_v25 }
 0x725   : > { %v1525_v26 = vpop.xlane.xlu0 %1524 }
 0x726   : > { %v1529_v28 = vsub.f32 %v3706_v27, %v1525_v26 }
 0x728   : > { %v1531_v29 = vmul.f32 1.442695, %v1529_v28  ;;  %v935_v28 = vsel %vm919_vm3, %v3605_v9, 0.0 }
 0x729   : > { %v1528_v30 = vpop.xlane.xlu1 %1527 }
 0x72a   : > { %2933 = vpow2.f32 %v1531_v29  ;;  %v1530_v36 = vsub.f32 %v3712_v31, %v1528_v30 }
 0x72c   : > { %v1533_v32 = vmul.f32 1.442695, %v1530_v36 }
 0x72e   : > { %2935 = vpow2.f32 %v1533_v32 }
 0x731   : > { %v1677_v12 = vpop.xlane.xlu0 %1676 }
 0x732   : > { %v1681_v33 = vsub.f32 %v3722_v40, %v1677_v12  ;;  %v3260_v12 = vmov 0  }
 0x733   : > { %860 = vst [vmem:[#allocation4] sm:$0xf] %v3260_v12  ;;  %861 = vst [vmem:[#allocation4 + $0x4] sm:$0xf] %v3260_v12  ;;  %v2915_v12 = vld [vmem:[#allocation14 + $0x20] sm:$0xff]  }
 0x734   : > { %v1683_v35 = vmul.f32 1.442695, %v1681_v33 }
 0x735   : > { %v1680_v15 = vpop.xlane.xlu1 %1679 }
 0x736   : > { %2937 = vpow2.f32 %v1683_v35  ;;  %v1682_v37 = vsub.f32 %v3728_v49, %v1680_v15 }
 0x737   : > { %v3785_v39 = vpop.eup %2933 }
 0x738   : > { %v1685_v41 = vmul.f32 1.442695, %v1682_v37  ;;  %v1535_v27 = vsel %vm919_vm3, %v3785_v39, 0.0 }
 0x739   : > { %v1829_v42 = vpop.xlane.xlu0 %1828  ;;  %1536 = vadd.xlane.f32.xlu1 %v1535_v27 }
 0x73a   : > { %2939 = vpow2.f32 %v1685_v41  ;;  %v1833_v31 = vsub.f32 %v3734_v55, %v1829_v42 }
 0x73b   : > { %v3790_v44 = vpop.eup %2935 }
 0x73c   : > { %v1835_v47 = vmul.f32 1.442695, %v1833_v31  ;;  %v1538_v40 = vsel %vm919_vm3, %v3790_v44, 0.0  ;;  %v1541_v25 = vpack.c.bf16 %v3790_v44, %v3785_v39 }
 0x73d   : > { %1539 = vadd.xlane.f32.xlu0 %v1538_v40  ;;  %v1376_v48 = vpop.xlane.xlu0 %1375  ;;  %v1832_v49 = vpop.xlane.xlu1 %1831 }
 0x73e   : > { %2941 = vpow2.f32 %v1835_v47  ;;  %v1378_v50 = vsub.f32 %v3740_v60, %v1376_v48  ;;  %v1834_v51 = vsub.f32 %v3744_v62, %v1832_v49 }
 0x740   : > { %v1837_v52 = vmul.f32 1.442695, %v1834_v51  ;;  %v1381_v53 = vmul.f32 1.442695, %v1378_v50 }
 0x741   : > { %v1398_v54 = vpop.permute.xlu0 %1397  ;;  %v1373_v57 = vpop.xlane.xlu1 %1372 }
 0x742   : > { %v1377_v55 = vsub.f32 %v3752_v3, %v1373_v57  ;;  %2668 = vmatpush3.bf16.msra.mxu1 %v1398_v54  ;;  %2943 = vpow2.f32 %v1837_v52 }
 0x743   : > { %v2938_v58 = vpop.eup %2937  ;;  %2679 = vmatprep.subr.bf16.mxu1 %v3251_v0  ;;  %2945 = vpow2.f32 %v1381_v53 }
 0x744   : > { %v1379_v59 = vmul.f32 1.442695, %v1377_v55  ;;  %v1687_v61 = vsel %vm919_vm3, %v2938_v58, 0.0 }
 0x745   : > { %v1981_v63 = vpop.xlane.xlu1 %1980  ;;  %1688 = vadd.xlane.f32.xlu1 %v1687_v61  ;;  %v1702_v26 = vpop.permute.xlu0 %1701 }
 0x746   : > { %2947 = vpow2.f32 %v1379_v59  ;;  %v1985_v60 = vsub.f32 %v3758_v7, %v1981_v63 }
 0x747   : > { %v2940_v62 = vpop.eup %2939 }
 0x748   : > { %v1987_v1 = vmul.f32 1.442695, %v1985_v60  ;;  %v1690_v2 = vsel %vm919_vm3, %v2940_v62, 0.0  ;;  %v1693_v8 = vpack.c.bf16 %v2940_v62, %v2938_v58 }
 0x749   : > { %1691 = vadd.xlane.f32.xlu0 %v1690_v2  ;;  %v1984_v3 = vpop.xlane.xlu1 %1983  ;;  %v1854_v29 = vpop.permute.xlu0 %1853 }
 0x74a   : > { %2949 = vpow2.f32 %v1987_v1  ;;  %v1986_v4 = vsub.f32 %v3764_v13, %v1984_v3 }
 0x74b   : > { %v2942_v5 = vpop.eup %2941 }
 0x74c   : > { %v1989_v6 = vmul.f32 1.442695, %v1986_v4  ;;  %v1839_v10 = vsel %vm919_vm3, %v2942_v5, 0.0 }
 0x74d   : > { %1840 = vadd.xlane.f32.xlu1 %v1839_v10  ;;  %v1550_v21 = vpop.permute.xlu1 %1549 }
 0x74e   : > { %2951 = vpow2.f32 %v1989_v6 }
 0x74f   : > { %v2944_v45 = vpop.eup %2943 }
 0x750   : > { %v1842_v11 = vsel %vm919_vm3, %v2944_v45, 0.0  ;;  %v2946_v17 = vpop.eup %2945  ;;  %v1845_v30 = vpack.c.bf16 %v2944_v45, %v2942_v5 }
 0x751   : > { %1843 = vadd.xlane.f32.xlu0 %v1842_v11  ;;  %v1386_v20 = vsel %vm919_vm3, %v2946_v17, 0.0  ;;  %v2006_v36 = vpop.permute.xlu1 %2005 }
 0x753   : > { %v2948_v7 = vpop.eup %2947 }
 0x754   : > { %v1383_v18 = vsel %vm919_vm3, %v2948_v7, 0.0  ;;  %v1389_v19 = vpack.c.bf16 %v2946_v17, %v2948_v7 }
 0x755   : > { %1384 = vadd.xlane.f32.xlu1 %v1383_v18  ;;  %1387 = vadd.xlane.f32.xlu0 %v1386_v20  ;;  %v2912_v18 = vld [vmem:[#allocation14 + $0x38] sm:$0xff]  }
 0x756   : > { %2670 = vmatmul.mubr.msk.bf16.vlgmr.msra.gmra.mxu1 %vm919_vm3, %v1389_v19  ;;  %2722 = vmatpush3.bf16.msra.mxu0 %v2912_v18 }
 0x757   : > { %v2950_v13 = vpop.eup %2949  ;;  %2680 = vmatpush3.bf16.msra.mxu1 %v1550_v21  ;;  %2681 = vmatprep.mubr.msk.bf16.mxu1 %vm3252_vm0, %v3251_v0 }
 0x758   : > { %v1991_v56 = vsel %vm919_vm3, %v2950_v13, 0.0  ;;  %2691 = vmatprep.subr.bf16.mxu1 %v3251_v0  ;;  %2723 = vmatprep.subr.bf16.mxu0 %v3251_v0 }
 0x759   : > { %1992 = vadd.xlane.f32.xlu1 %v1991_v56 }
 0x75b   : > { %v2952_v22 = vpop.eup %2951 }
 0x75c   : > { %v1994_v24 = vsel %vm919_vm3, %v2952_v22, 0.0  ;;  %v1997_v9 = vpack.c.bf16 %v2952_v22, %v2950_v13  ;;  %v2913_v22 = vld [vmem:[#allocation14 + $0x30] sm:$0xff]  }
 0x75d   : > { %933 = vadd.xlane.f32.xlu1 %v932_v23  ;;  %1995 = vadd.xlane.f32.xlu0 %v1994_v24 }
 0x75e   : > { %2682 = vmatmul.mubr.msk.bf16.vlgmr.msra.gmra.mxu1 %vm919_vm3, %v1541_v25  ;;  %2724 = vmatpush3.bf16.msra.mxu0 %v2913_v22 }
 0x75f   : > { %2692 = vmatpush3.bf16.msra.mxu1 %v1702_v26  ;;  %2693 = vmatprep.mubr.msk.bf16.mxu1 %vm3252_vm0, %v3251_v0 }
 0x760   : > { %2703 = vmatprep.subr.bf16.mxu1 %v3251_v0  ;;  %2725 = vmatprep.subr.bf16.mxu0 %v3251_v0 }
 0x761   : > { %936 = vadd.xlane.f32.xlu0 %v935_v28 }
 0x766   : > { %2694 = vmatmul.mubr.msk.bf16.vlgmr.msra.gmra.mxu1 %vm919_vm3, %v1693_v8  ;;  %v2914_v8 = vld [vmem:[#allocation14 + $0x28] sm:$0xff]  }
 0x767   : > { %2704 = vmatpush3.bf16.msra.mxu1 %v1854_v29  ;;  %2705 = vmatprep.mubr.msk.bf16.mxu1 %vm3252_vm0, %v3251_v0 }
 0x768   : > { %2715 = vmatprep.subr.bf16.mxu1 %v3251_v0  ;;  %2726 = vmatpush3.bf16.msra.mxu0 %v2914_v8 }
 0x769   : > { %2727 = vmatprep.subr.bf16.mxu0 %v3251_v0 }
 0x76c   : > { %2728 = vmatpush3.bf16.msra.mxu0 %v2915_v12 }
 0x76d   : > { %2729 = vmatprep.subr.bf16.mxu0 %v3251_v0 }
 0x76e   : > { %2706 = vmatmul.mubr.msk.bf16.vlgmr.msra.gmra.mxu1 %vm919_vm3, %v1845_v30 }
 0x76f   : > { %2716 = vmatpush3.bf16.msra.mxu1 %v2006_v36  ;;  %2717 = vmatprep.mubr.msk.bf16.mxu1 %vm3252_vm0, %v3251_v0 }
 0x776   : > { %2718 = vmatmul.mubr.msk.bf16.vlgmr.msra.gmra.mxu1 %vm919_vm3, %v1997_v9 }
 0x77a   : > { %v1081_v32 = vpop.xlane.xlu0 %1080 }
 0x77b   : > { %2953 = vrcp.f32 %v1081_v32 }
 0x77e   : > { %v1233_v33 = vpop.xlane.xlu0 %1232 }
 0x77f   : > { %2955 = vrcp.f32 %v1233_v33 }
 0x782   : > { %v1236_v35 = vpop.xlane.xlu0 %1235  ;;  %v1084_v15 = vpop.xlane.xlu1 %1083 }
 0x783   : > { %2957 = vrcp.f32 %v1236_v35 }
 0x784   : > { %2959 = vrcp.f32 %v1084_v15 }
 0x788   : > { %v2954_v37 = vpop.eup %2953 }
 0x789   : > { %v1142_v39 = vmul.f32 %v2954_v37, %v3645_v43 }
 0x78b   : > { %v2472_v41 = vpack.c.bf16 %v1142_v39, %v1142_v39 }
 0x78c   : > { %v2956_v27 = vpop.eup %2955 }
 0x78d   : > { %1150 = vrot.lane.b32.xlu1 %v2472_v41, %s3261_s4  ;;  %v1294_v42 = vmul.f32 %v2956_v27, %v3716_v34  ;;  %v2916_v41 = vld [vmem:[#allocation14 + $0x18] sm:$0xff]  }
 0x78e   : > { %2730 = vmatpush3.bf16.msra.mxu0 %v2916_v41 }
 0x78f   : > { %v2474_v31 = vpack.c.bf16 %v1294_v42, %v1294_v42  ;;  %2731 = vmatprep.subr.bf16.mxu0 %v3251_v0 }
 0x790   : > { %v2958_v44 = vpop.eup %2957 }
 0x791   : > { %v2960_v47 = vpop.eup %2959  ;;  %1302 = vrot.lane.b32.xlu1 %v2474_v31, %s3262_s13  ;;  %v1295_v40 = vmul.f32 %v2958_v44, %v3718_v38 }
 0x792   : > { %v1143_v48 = vmul.f32 %v2960_v47, %v3647_v46 }
 0x793   : > { %v2475_v49 = vpack.c.bf16 %v1295_v40, %v1295_v40  ;;  %v2917_v40 = vld [vmem:[#allocation14 + $0x10] sm:$0xff]  }
 0x794   : > { %v2473_v50 = vpack.c.bf16 %v1143_v48, %v1143_v48  ;;  %2732 = vmatpush3.bf16.msra.mxu0 %v2917_v40 }
 0x795   : > { %1304 = vrot.lane.b32.xlu1 %v2475_v49, %s3262_s13  ;;  %2733 = vmatprep.subr.bf16.mxu0 %v3251_v0 }
 0x796   : > { %1152 = vrot.lane.b32.xlu0 %v2473_v50, %s3261_s4  ;;  %s3145_s4 = scalar_lea.vmem %s3859_s28, 256 }
 0x797   : > { %p3146_p4 = scmp.ne.s32.totalorder %s3859_s28, %s3145_s4 }
 0x799   : > { %p3147_p8 = pnand %p3146_p4, %p3476_p3 }
 0x79b   : > { %p3148_p11 = pneg %p3147_p8 }
 0x7c2   : > { %v1537_v43 = vpop.xlane.xlu1 %1536 }
 0x7c6   : > { %v1540_v51 = vpop.xlane.xlu0 %1539 }
 0x7ce   : > { %v1689_v52 = vpop.xlane.xlu1 %1688 }
 0x7d2   : > { %v1692_v53 = vpop.xlane.xlu0 %1691 }
 0x7d6   : > { %v1841_v34 = vpop.xlane.xlu1 %1840 }
 0x7da   : > { %v3836_v54 = vpop.xlane.xlu0 %1843 }
 0x7de   : > { %v1385_v57 = vpop.xlane.xlu1 %1384  ;;  %v1388_v55 = vpop.xlane.xlu0 %1387 }
 0x7e2   : > { %v3838_v58 = vpop.xlane.xlu1 %1992 }
 0x7e6   : > { %v3840_v59 = vpop.xlane.xlu0 %1995  ;;  %v934_v38 = vpop.xlane.xlu1 %933 }
 0x7e7   : > { %2961 = vrcp.f32 %v934_v38 }
 0x7ea   : > { %v937_v46 = vpop.xlane.xlu0 %936 }
 0x7eb   : > { %2963 = vrcp.f32 %v937_v46 }
 0x7ec   : > { %2965 = vrcp.f32 %v1385_v57 }
 0x7ed   : > { %2967 = vrcp.f32 %v1388_v55 }
 0x7ee   : > { %2969 = vrcp.f32 %v1537_v43 }
 0x7ef   : > { %2971 = vrcp.f32 %v1540_v51 }
 0x7f0   : > { %2973 = vrcp.f32 %v1689_v52  ;;  %v2918_v52 = vld [vmem:[#allocation14 + $0x8] sm:$0xff]  }
 0x7f1   : > { %2975 = vrcp.f32 %v1692_v53  ;;  %2734 = vmatpush3.bf16.msra.mxu0 %v2918_v52 }
 0x7f2   : > { %2977 = vrcp.f32 %v1841_v34  ;;  %2735 = vmatprep.subr.bf16.mxu0 %v3251_v0 }
 0x7f3   : > { %2979 = vrcp.f32 %v3836_v54  ;;  %v2919_v54 = vld [vmem:[#allocation14] sm:$0xff]  }
 0x7f4   : > { %v2962_v61 = vpop.eup %2961  ;;  %2981 = vrcp.f32 %v3838_v58 }
 0x7f5   : > { %v993_v63 = vmul.f32 %v2962_v61, %v3617_v14  ;;  %2983 = vrcp.f32 %v3840_v59  ;;  %2736 = vmatpush3.bf16.msra.mxu0 %v2919_v54 }
 0x7f7   : > { %v2470_v62 = vpack.c.bf16 %v993_v63, %v993_v63 }
 0x7f8   : > { %v2964_v60 = vpop.eup %2963 }
 0x7f9   : > { %v994_v1 = vmul.f32 %v2964_v60, %v3619_v16  ;;  %1004 = vst.msk [vmem:[#allocation4] sm:$0xf] %vm1003_vm4, %v2470_v62  ;;  %v2966_v14 = vpop.eup %2965 }
 0x7fa   : > { %v2968_v17 = vpop.eup %2967 }
 0x7fb   : > { %v2471_v2 = vpack.c.bf16 %v994_v1, %v994_v1  ;;  %v2970_v13 = vpop.eup %2969 }
 0x7fc   : > { %v2972_v26 = vpop.eup %2971 }
 0x7fd   : > { %1005 = vst.msk [vmem:[#allocation4 + $0x4] sm:$0xf] %vm1003_vm4, %v2471_v2  ;;  %v2974_v9 = vpop.eup %2973 }
 0x7fe   : > { %v2976_v37 = vpop.eup %2975 }
 0x7ff   : > { %v1151_v3 = vpop.permute.xlu1 %1150  ;;  %v2978_v44 = vpop.eup %2977 }
 0x800   : > { %1157 = vst.msk [vmem:[#allocation4] sm:$0xf] %vm1156_vm5, %v1151_v3  ;;  %v2980_v43 = vpop.eup %2979 }
 0x801   : > { %v2982_v55 = vpop.eup %2981 }
 0x802   : > { %v2984_v61 = vpop.eup %2983 }
 0x803   : > { %v1303_v4 = vpop.permute.xlu1 %1302 }
 0x804   : > { %1309 = vst.msk [vmem:[#allocation4] sm:$0xf] %vm1308_vm6, %v1303_v4 }
 0x807   : > { %v1305_v5 = vpop.permute.xlu1 %1304 }
 0x808   : > { %v1153_v6 = vpop.permute.xlu0 %1152 }
 0x809   : > { %1158 = vst.msk [vmem:[#allocation4 + $0x4] sm:$0xf] %vm1156_vm5, %v1153_v6 }
 0x80a   : > { %1310 = vst.msk [vmem:[#allocation4 + $0x4] sm:$0xf] %vm1308_vm6, %v1305_v5 }
 0x816   : > { %v1437_v10 = vpop.f32.mrf.mxu1 }
 0x817   : > { %v1446_v16 = vmul.f32 %v2966_v14, %v1437_v10 }
 0x818   : > { %v2671_v45 = vpop.f32.mrf.mxu1 }
 0x819   : > { %v2476_v11 = vpack.c.bf16 %v1446_v16, %v1446_v16 }
 0x81a   : > { %v1440_v7 = vpop.f32.mrf.mxu1 }
 0x81b   : > { %v1447_v19 = vmul.f32 %v2968_v17, %v1440_v7  ;;  %1454 = vrot.lane.b32.xlu0 %v2476_v11, %s3263_s29  ;;  %v2449_v17 = vld [vmem:[%s3922_s9] ss:$0 sm:$0xff] }
 0x81c   : > { %v2672_v20 = vpop.f32.mrf.mxu1 }
 0x81d   : > { %v2477_v21 = vpack.c.bf16 %v1447_v19, %v1447_v19 }
 0x81e   : > { %v1589_v56 = vpop.f32.mrf.mxu1 }
 0x81f   : > { %v1598_v23 = vmul.f32 %v2970_v13, %v1589_v56  ;;  %1456 = vrot.lane.b32.xlu1 %v2477_v21, %s3263_s29  ;;  %s3149_s29 = sshll.u32 %s3268_s16, 4  ;;  %s3150_s29 = int_to_ptr.vmem [resolvable:$false] %s3149_s29 }
 0x820   : > { %v2683_v24 = vpop.f32.mrf.mxu1  ;;  %p3152_p5 = scmp.lt.s32.totalorder %s3859_s28, %s3150_s29 }
 0x821   : > { %v2478_v25 = vpack.c.bf16 %v1598_v23, %v1598_v23 }
 0x822   : > { %v1592_v28 = vpop.f32.mrf.mxu1 }
 0x823   : > { %v1599_v29 = vmul.f32 %v2972_v26, %v1592_v28  ;;  %1606 = vrot.lane.b32.xlu0 %v2478_v25, %s3264_s22 }
 0x824   : > { %v2684_v30 = vpop.f32.mrf.mxu1 }
 0x825   : > { %v2479_v36 = vpack.c.bf16 %v1599_v29, %v1599_v29 }
 0x826   : > { %v1741_v32 = vpop.f32.mrf.mxu1 }
 0x827   : > { %v1750_v33 = vmul.f32 %v2974_v9, %v1741_v32  ;;  %1608 = vrot.lane.b32.xlu1 %v2479_v36, %s3264_s22  ;;  %s3151_s22 = scalar_lea.vmem %s3150_s29, 512 }
 0x828   : > { %v2695_v35 = vpop.f32.mrf.mxu1  ;;  %p3153_p7 = scmp.lt.s32.totalorder %s3151_s22, %s3145_s4 }
 0x829   : > { %v2480_v15 = vpack.c.bf16 %v1750_v33, %v1750_v33 }
 0x82a   : > { %v1744_v39 = vpop.f32.mrf.mxu1  ;;  %p3154_p12 = por %p3153_p7, %p3152_p5 }
 0x82b   : > { %v1751_v27 = vmul.f32 %v2976_v37, %v1744_v39  ;;  %1758 = vrot.lane.b32.xlu0 %v2480_v15, %s3265_s0 }
 0x82c   : > { %v2696_v42 = vpop.f32.mrf.mxu1  ;;  %p3155_p13 = pnand %p3154_p12, %p3148_p11 }
 0x82d   : > { %v2481_v31 = vpack.c.bf16 %v1751_v27, %v1751_v27 }
 0x82e   : > { %v1893_v47 = vpop.f32.mrf.mxu1 }
 0x82f   : > { %v1902_v48 = vmul.f32 %v2978_v44, %v1893_v47  ;;  %1760 = vrot.lane.b32.xlu1 %v2481_v31, %s3265_s0 }
 0x830   : > { %v2707_v49 = vpop.f32.mrf.mxu1 }
 0x831   : > { %v2482_v50 = vpack.c.bf16 %v1902_v48, %v1902_v48 }
 0x832   : > { %v1896_v51 = vpop.f32.mrf.mxu1 }
 0x833   : > { %v1903_v53 = vmul.f32 %v2980_v43, %v1896_v51  ;;  %1910 = vrot.lane.b32.xlu0 %v2482_v50, %s3266_s8 }
 0x834   : > { %v2708_v34 = vpop.f32.mrf.mxu1 }
 0x835   : > { %v2483_v57 = vpack.c.bf16 %v1903_v53, %v1903_v53 }
 0x836   : > { %v2045_v58 = vpop.f32.mrf.mxu1 }
 0x837   : > { %v2054_v59 = vmul.f32 %v2982_v55, %v2045_v58  ;;  %1912 = vrot.lane.b32.xlu1 %v2483_v57, %s3266_s8 }
 0x838   : > { %v2719_v38 = vpop.f32.mrf.mxu1 }
 0x839   : > { %v2484_v46 = vpack.c.bf16 %v2054_v59, %v2054_v59 }
 0x83a   : > { %v2048_v63 = vpop.f32.mrf.mxu1 }
 0x83b   : > { %v2055_v60 = vmul.f32 %v2984_v61, %v2048_v63  ;;  %2062 = vrot.lane.b32.xlu0 %v2484_v46, %s3267_s19 }
 0x83c   : > { %v2720_v62 = vpop.f32.mrf.mxu1 }
 0x83d   : > { %v2485_v1 = vpack.c.bf16 %v2055_v60, %v2055_v60 }
 0x83f   : > { %2064 = vrot.lane.b32.xlu1 %v2485_v1, %s3267_s19 }
 0x88d   : > { %v1455_v2 = vpop.permute.xlu0 %1454 }
 0x88e   : > { %1461 = vst.msk [vmem:[#allocation4] sm:$0xf] %vm1460_vm7, %v1455_v2 }
 0x891   : > { %v1457_v3 = vpop.permute.xlu1 %1456 }
 0x892   : > { %1462 = vst.msk [vmem:[#allocation4 + $0x4] sm:$0xf] %vm1460_vm7, %v1457_v3 }
 0x895   : > { %v1607_v0 = vpop.permute.xlu0 %1606 }
 0x896   : > { %1613 = vst.msk [vmem:[#allocation4] sm:$0xf] %vm1612_vm8, %v1607_v0 }
 0x899   : > { %v1609_v4 = vpop.permute.xlu1 %1608 }
 0x89a   : > { %1614 = vst.msk [vmem:[#allocation4 + $0x4] sm:$0xf] %vm1612_vm8, %v1609_v4 }
 0x89d   : > { %v1759_v5 = vpop.permute.xlu0 %1758 }
 0x89e   : > { %1765 = vst.msk [vmem:[#allocation4] sm:$0xf] %vm1764_vm9, %v1759_v5 }
 0x8a1   : > { %v1761_v6 = vpop.permute.xlu1 %1760 }
 0x8a2   : > { %1766 = vst.msk [vmem:[#allocation4 + $0x4] sm:$0xf] %vm1764_vm9, %v1761_v6 }
 0x8a5   : > { %v1911_v14 = vpop.permute.xlu0 %1910 }
 0x8a6   : > { %1917 = vst.msk [vmem:[#allocation4] sm:$0xf] %vm1916_vm10, %v1911_v14 }
 0x8a9   : > { %v1913_v10 = vpop.permute.xlu1 %1912 }
 0x8aa   : > { %1918 = vst.msk [vmem:[#allocation4 + $0x4] sm:$0xf] %vm1916_vm10, %v1913_v10 }
 0x8ad   : > { %v2063_v16 = vpop.permute.xlu0 %2062 }
 0x8ae   : > { %2069 = vst.msk [vmem:[#allocation4] sm:$0xf] %vm2068_vm11, %v2063_v16 }
 0x8b1   : > { %v2065_v45 = vpop.permute.xlu1 %2064 }
 0x8b2   : > { %2070 = vst.msk [vmem:[#allocation4 + $0x4] sm:$0xf] %vm2068_vm11, %v2065_v45 }
 0x8b9   : > { %v2920_v11 = vld [vmem:[#allocation4] sm:$0xff]  }
 0x8ba   : > { %2738 = vmatmul.mubr.bf16.vlgmr.msra.gmra.mxu0 %v2920_v11 }
 0x97a   : > { %v2184_v7 = vpop.f32.mrf.mxu0 }
 0x97b   : > { %v2185_v18 = vadd.f32 %v2449_v17, %v2184_v7 }
 0x97c   : > { %v2739_v19 = vpop.f32.mrf.mxu0 }
 0x97d   : > { %2191 = vst [vmem:[%s476_s23] sm:$0xff] %v2185_v18 }
 0x97e   : > { %v2187_v20 = vpop.f32.mrf.mxu0 }
 0x97f   : > { %v2188_v21 = vadd.f32 %v2449_v17, %v2187_v20 }
 0x980   : > { %v2740_v13 = vpop.f32.mrf.mxu0 }
 0x981   : > { %2192 = vst [vmem:[%s476_s23 + $0x8] sm:$0xff] %v2188_v21 }
 0x982   : > { %3158 = shalt.err (!%p3155_p13)
}
 0x983   : > { %s3159_s0 = scalar_lea.hbm %s3864_s3, 256  ;;  %s3163_s20 = scalar_lea.hbm %s3923_s10, 512 }
 0x984   : > { %p3160_p10 = scmp.ne.s32.totalorder %s3864_s3, %s3159_s0  ;;  %p3164_p0 = scmp.lt.s32.totalorder %s3864_s3, %s3923_s10 }
 0x985   : > { %p3165_p9 = scmp.lt.s32.totalorder %s3163_s20, %s3159_s0 }
 0x986   : > { %p3161_p2 = pnand %p3160_p10, %p3476_p3 }
 0x987   : > { %p3166_p1 = por %p3165_p9, %p3164_p0 }
 0x988   : > { %p3162_p6 = pneg %p3161_p2 }
 0x98a   : > { %p3167_p4 = pnand %p3166_p1, %p3162_p6 }
 0x98c   : > { %3170 = shalt.err (!%p3167_p4)
}
 0x98d   : > { %s3269_s23 = smov 128  }
 0x98e   : > { %2761 = dma.vmem_to_hbm [thread:$0]  (%p3476_p3), %s3859_s28, 256, %s3864_s3, %s2194_s12, %s3269_s23, %s3269_s23, %s3262_s13  }
 0x98f PF: > { %s3972_s11 = sld [smem:[#allocation23_spill]]  ;;  %p3975_p11 = scmp.ge.s32.totalorder %s3241_s18, 2 }
 0x990   : > { %s3973_s30 = sld [smem:[#allocation24_spill]] }
 0x995   : > { %s2224_s25 = sand.u32 1, %s3972_s11  }
 0x996   : > { %p3974_p8 = scmp.ne.s32.totalorder %s3973_s30, 0  ;;  %s2225_s4 = scalar_lea.sflag [#allocation7], %s2224_s25 }
 0x998   : > { %p2784_p5 = pnand %p3975_p11, %p3974_p8 }
 0x99a   : > { %p2785_p7 = pneg %p2784_p5 }
 0x99c   : > { %3216 = dma.done.wait (%p2785_p7), %s2225_s4, 256  }
 0x99d   : > { %3218 = vsyncadd (%p2785_p7), %s2225_s4, 4294967040  ;;  %s29_s18 = sadd.s32 1, %s3241_s18   ;;  %s3976_s24 = sld [smem:[#allocation25_spill]] }
 0x99e   : > { %p26_p12 = scmp.ge.s32.totalorder %s29_s18, 4   ;;  %s3977_s13 = smov %s3225_s14 }
 0x99f   : > { %s3978_s14 = smov %s3229_s15  ;;  %s3979_s15 = smov %s3489_s21 }
 0x9a0   : > { %s3980_s16 = smov %s3237_s17  ;;  %28 = sbr.rel (!%p26_p12) target bundleno = 15 (0xf), region = 131 }
 0x9a3   : > { %s3981_s17 = smov %s3976_s24 }
 0x9a5   :  { %2230 = vsyncpa [#allocation6], 1 }
 0x9a6   :  { %2232 = vsyncpa [#allocation6 + $0x1], 1 }
 0x9a7   :  { %2233 = vsyncpa [#allocation9], 1 }
 0x9a8   :  { %2235 = vsyncpa [#allocation9 + $0x1], 1 }
 0x9a9   :  { %2236 = vsyncpa [#allocation12], 1 }
 0x9aa   :  { %2237 = vsyncpa [#allocation15], 1 }
 0x9ab   :  { %2238 = vsyncpa [#allocation7], 1 }
 0x9ac   :  { %2240 = vsyncpa [#allocation7 + $0x1], 1 }

// kernel: tpu_custom_call.1
= control target key start
LH: loop header
LB: loop body
LE: loop exit
PB: predicated region body
PF: predicated region fallthrough
CT: control target
= control target key end

     0   :  { %s3930_s0 = inlined_call_operand.hbm [shape: bf16[2,16,128], index: 0, kind: input, shape index: {}]   ;;  %s3931_s1 = inlined_call_operand.hbm [shape: bf16[2,16,128], index: 1, kind: input, shape index: {}]   ;;  %s3932_s2 = inlined_call_operand.hbm [shape: bf16[128,128], index: 2, kind: input, shape index: {}]   ;;  %s3933_s3 = inlined_call_operand.hbm [shape: bf16[128,128], index: 3, kind: input, shape index: {}]   ;;  %s3934_s4 = inlined_call_operand.hbm [shape: bf16[128,128], index: 4, kind: input, shape index: {}]   ;;  %s3935_s5 = inlined_call_operand.vmem [shape: f32[1,128], index: 5, kind: input, shape index: {}]   ;;  %s3936_s6 = inlined_call_operand.vmem [shape: f32[1,128], index: 6, kind: input, shape index: {}]   ;;  %s3937_s7 = inlined_call_operand.vmem [shape: f32[1,128], index: 7, kind: input, shape index: {}]   ;;  %s3938_s8 = inlined_call_operand.hbm [shape: bf16[128,128], index: 8, kind: input, shape index: {}]   ;;  %s3939_s9 = inlined_call_operand.vmem [shape: f32[1,128], index: 9, kind: input, shape index: {}]   ;;  %s3940_s10 = inlined_call_operand.hbm [shape: f32[2,16,128], index: 10, kind: output, shape index: {}]  }
   0x1   :  { %3949 = sst [smem:[#allocation26_spill]] %s3930_s0 }
   0x2   :  { %3950 = sst [smem:[#allocation27_spill]] %s3931_s1 }
   0x3   :  { %3951 = sst [smem:[#allocation28_spill]] %s3932_s2 }
   0x4   :  { %3952 = sst [smem:[#allocation29_spill]] %s3933_s3 }
   0x5   :  { %3953 = sst [smem:[#allocation30_spill]] %s3934_s4 }
   0x6   :  { %3954 = sst [smem:[#allocation31_spill]] %s3938_s8 }
   0x7   :  { %15 = vsyncpa [#allocation6], 0 }
   0x8   :  { %17 = vsyncpa [#allocation6 + $0x1], 0 }
   0x9   :  { %18 = vsyncpa [#allocation9], 0 }
   0xa   :  { %20 = vsyncpa [#allocation9 + $0x1], 0 }
   0xb   :  { %21 = vsyncpa [#allocation12], 0 }
   0xc   :  { %22 = vsyncpa [#allocation15], 0 }
   0xd   :  { %23 = vsyncpa [#allocation7], 0 }
   0xe   :  { %25 = vsyncpa [#allocation7 + $0x1], 0  ;;  %s3352_s13 = smov 0   ;;  %s3354_s14 = smov 0  }
   0xf   :  { %s3356_s15 = smov 0   ;;  %s3358_s16 = smov 0  }
  0x10   :  { %s3360_s17 = smov 0   ;;  %s3362_s18 = smov 0  }
  0x11 LB: > { %3955 = sst [smem:[#allocation23_spill]] %s3264_s17  ;;  %s3383_s19 = sadd.s32 4294967295, %s3268_s18   ;;  %s3268_s18 = sphi %s3362_s18, %s31_s18   ;;  %s3264_s17 = sphi %s3360_s17, %s3981_s17   ;;  %s3260_s16 = sphi %s3358_s16, %s3980_s16   ;;  %s3256_s15 = sphi %s3356_s15, %s3984_s15   ;;  %s3252_s14 = sphi %s3354_s14, %s3983_s14   ;;  %s3248_s13 = sphi %s3352_s13, %s3982_s13  }
  0x12   : > { %s2375_s20 = sadd.s32 4294967294, %s3268_s18   ;;  %p63_p0 = scmp.ne.s32.totalorder %s3252_s14, %s3248_s13 }
  0x13   : > { %p3942_p1 = scmp.eq.s32.totalorder %s3383_s19, 0  ;;  %p285_p2 = scmp.eq.s32.totalorder %s3383_s19, 1 }
  0x14   : > { %p291_p3 = scmp.eq.s32.totalorder %s2375_s20, 1  ;;  %p2376_p5 = scmp.ge.s32.totalorder %s3268_s18, 1 }
  0x15   : > { %p3392_p4 = por %p3942_p1, %p63_p0  ;;  %p298_p7 = scmp.lt.s32.totalorder %s3268_s18, 3 }
  0x16   : > { %p3397_p6 = por %p291_p3, %p63_p0  ;;  %s3270_s24 = smov [#allocation10]  }
  0x17   : > { %p3402_p8 = pnand %p2376_p5, %p298_p7  ;;  %s310_s25 = sshll.u32 %s3270_s24, 4  ;;  %s311_s25 = int_to_ptr.vmem [resolvable:$true] %s310_s25 }
  0x18   : > { %s3957_s22 = scalar_select %p3397_p6, 1, 0 }
  0x19   : > { %p2791_p9 = pneg %p3402_p8  ;;  %s3271_s27 = smov [#allocation11]  }
  0x1a   : > { %3958 = sst [smem:[#allocation24_spill]] %s3957_s22  ;;  %s323_s28 = sshll.u32 %s3271_s27, 4  ;;  %s324_s28 = int_to_ptr.vmem [resolvable:$true] %s323_s28 }
  0x1b   : > { %p3411_p11 = pnand %p2791_p9, %p3942_p1  ;;  %s3272_s29 = smov [#allocation13]  }
  0x1c   : > { %s336_s30 = sshll.u32 %s3272_s29, 4  ;;  %s3023_s11 = scalar_lea.vmem %s311_s25, 1024  ;;  %s337_s30 = int_to_ptr.vmem [resolvable:$true] %s336_s30 }
  0x1d   : > { %p3014_p12 = pneg %p3411_p11  ;;  %p3024_p13 = scmp.ne.s32.totalorder %s311_s25, %s3023_s11 }
  0x1e   : > { %p3031_p5 = scmp.lt.s32.totalorder %s311_s25, %s311_s25  ;;  %p3032_p7 = scmp.lt.s32.totalorder %s3023_s11, %s3023_s11 }
  0x1f   : > { %p3026_p0 = pnand %p3024_p13, %p3014_p12 }
  0x20   : > { %p3033_p9 = por %p3032_p7, %p3031_p5 }
  0x21   : > { %p3027_p3 = pneg %p3026_p0 }
  0x23   : > { %p3034_p10 = pnand %p3033_p9, %p3027_p3 }
  0x25   : > { %3037 = shalt.err (!%p3034_p10)
}
  0x26   : > { %s3943_s12 = smov 64   ;;  %s3945_s20 = smov 4  }
  0x27   : > { %s3961_s2 = sld [smem:[#allocation28_spill]]  ;;  %s3049_s29 = scalar_lea.vmem %s324_s28, 1024 }
  0x28   : > { %p3050_p13 = scmp.ne.s32.totalorder %s324_s28, %s3049_s29  ;;  %p3057_p3 = scmp.lt.s32.totalorder %s324_s28, %s324_s28 }
  0x29   : > { %p3058_p10 = scmp.lt.s32.totalorder %s3049_s29, %s3049_s29 }
  0x2a   : > { %p3052_p0 = pnand %p3050_p13, %p3014_p12 }
  0x2b   : > { %p3059_p7 = por %p3058_p10, %p3057_p3 }
  0x2c   : > { %p3053_p5 = pneg %p3052_p0 }
  0x2d   : > { %2794 = dma.hbm_to_vmem [thread:$0]  (!%p3411_p11), %s3961_s2, 1024, %s311_s25, [#allocation9], %s3943_s12, %s3943_s12, %s3945_s20  }
  0x2e   : > { %p3060_p9 = pnand %p3059_p7, %p3053_p5 }
  0x30   : > { %3063 = shalt.err (!%p3060_p9)
}
  0x31   : > { %s3962_s3 = sld [smem:[#allocation29_spill]]  ;;  %s3075_s25 = scalar_lea.vmem %s337_s30, 1024 }
  0x32   : > { %p3076_p1 = scmp.ne.s32.totalorder %s337_s30, %s3075_s25  ;;  %p3083_p3 = scmp.lt.s32.totalorder %s337_s30, %s337_s30 }
  0x33   : > { %p3084_p5 = scmp.lt.s32.totalorder %s3075_s25, %s3075_s25 }
  0x34   : > { %p3078_p13 = pnand %p3076_p1, %p3014_p12 }
  0x35   : > { %p3085_p10 = por %p3084_p5, %p3083_p3 }
  0x36   : > { %p3079_p0 = pneg %p3078_p13 }
  0x37   : > { %2797 = dma.hbm_to_vmem [thread:$0]  (!%p3411_p11), %s3962_s3, 1024, %s324_s28, [#allocation12], %s3943_s12, %s3943_s12, %s3945_s20  }
  0x38   : > { %p3086_p7 = pnand %p3085_p10, %p3079_p0 }
  0x3a   : > { %3089 = shalt.err (!%p3086_p7)
}
  0x3b   : > { %s3963_s4 = sld [smem:[#allocation30_spill]]  ;;  %s3275_s28 = smov [#allocation14]  }
  0x3c   : > { %s358_s27 = sshll.u32 %s3275_s28, 4  ;;  %s359_s27 = int_to_ptr.vmem [resolvable:$true] %s358_s27 }
  0x3d   : > { %s3101_s29 = scalar_lea.vmem %s359_s27, 1024  ;;  %p3109_p0 = scmp.lt.s32.totalorder %s359_s27, %s359_s27 }
  0x3e   : > { %p3102_p1 = scmp.ne.s32.totalorder %s359_s27, %s3101_s29  ;;  %p3110_p3 = scmp.lt.s32.totalorder %s3101_s29, %s3101_s29 }
  0x40   : > { %p3104_p9 = pnand %p3102_p1, %p3014_p12  ;;  %p3111_p5 = por %p3110_p3, %p3109_p0 }
  0x41   : > { %2800 = dma.hbm_to_vmem [thread:$0]  (!%p3411_p11), %s3963_s4, 1024, %s337_s30, [#allocation12], %s3943_s12, %s3943_s12, %s3945_s20  }
  0x42   : > { %p3105_p13 = pneg %p3104_p9 }
  0x44   : > { %p3112_p10 = pnand %p3111_p5, %p3105_p13 }
  0x46   : > { %3115 = shalt.err (!%p3112_p10)
}
  0x47   : > { %s3964_s8 = sld [smem:[#allocation31_spill]]  ;;  %s43_s25 = sadd.s32 1, %s3264_s17 }
  0x48   : > { %s50_s26 = sadd.s32 1, %s3256_s15  ;;  %p45_p12 = scmp.ge.s32.totalorder %s43_s25, 2 }
  0x49   : > { %p57_p7 = scmp.ne.s32.totalorder %s3256_s15, %s3252_s14  ;;  %p58_p1 = scmp.eq.s32.totalorder %s3268_s18, 0 }
  0x4a   : > { %p2819_p9 = scmp.lt.s32.totalorder %s3268_s18, 2  ;;  %s3986_s25 = smov (%p45_p12, %s43_s25), 0 }
  0x4b   : > { %3965 = sst [smem:[#allocation25_spill]] %s3986_s25  ;;  %p59_p13 = por %p58_p1, %p57_p7 }
  0x4c   : > { %p3471_p0 = por %p285_p2, %p57_p7  ;;  %s47_s24 = ssub.s32 %s3264_s17, %s3986_s25 }
  0x4d   : > { %2803 = dma.hbm_to_vmem [thread:$0]  (!%p3411_p11), %s3964_s8, 1024, %s359_s27, [#allocation15], %s3943_s12, %s3943_s12, %s3945_s20  }
  0x4e   : > { %s375_s28 = sand.u32 1, %s3256_s15   ;;  %p48_p3 = scmp.eq.s32.totalorder %s47_s24, 0 }
  0x4f   : > { %s3478_s27 = sshll.u32 %s375_s28, 3  ;;  %s2492_s29 = sshll.u32 %s3264_s17, 7 }
  0x50   : > { %s3482_s30 = scalar_select %p48_p3, %s3256_s15, %s50_s26  }
  0x51   : > { %s3967_s0 = sld [smem:[#allocation26_spill]]  ;;  %s379_s2 = scalar_lea.vmem [#allocation5], %s3478_s27 }
  0x52   : > { %s386_s3 = sshll.u32 %s379_s2, 4  ;;  %p3490_p2 = pnand %p2819_p9, %p59_p13  ;;  %s387_s3 = int_to_ptr.vmem [resolvable:$true] %s386_s3 }
  0x53   : > { %s3969_s1 = sld [smem:[#allocation27_spill]]  ;;  %s376_s26 = scalar_lea.sflag [#allocation6], %s375_s28 }
  0x54   : > { %p3118_p11 = pneg %p3490_p2  ;;  %s3129_s12 = scalar_lea.vmem %s387_s3, 128 }
  0x55   : > { %p3130_p5 = scmp.ne.s32.totalorder %s387_s3, %s3129_s12  ;;  %s3276_s2 = smov [#allocation5]  }
  0x56   : > { %s3134_s11 = sshll.u32 %s3276_s2, 4  ;;  %s3135_s11 = int_to_ptr.vmem [resolvable:$false] %s3134_s11 }
  0x57   : > { %s385_s20 = scalar_lea.hbm %s3967_s0, %s2492_s29  ;;  %p3132_p10 = pnand %p3130_p5, %p3118_p11 }
  0x58   : > { %s3136_s0 = scalar_lea.vmem %s3135_s11, 256  ;;  %p3137_p7 = scmp.lt.s32.totalorder %s387_s3, %s3135_s11 }
  0x59   : > { %s3497_s25 = scalar_lea.hbm %s3969_s1, %s2492_s29  ;;  %p3133_p12 = pneg %p3132_p10 }
  0x5a   : > { %p3138_p1 = scmp.lt.s32.totalorder %s3136_s0, %s3129_s12 }
  0x5c   : > { %p3139_p9 = por %p3138_p1, %p3137_p7 }
  0x5e   : > { %p3140_p13 = pnand %p3139_p9, %p3133_p12 }
  0x60   : > { %3143 = shalt.err (!%p3140_p13)
}
  0x61   : > { %s3970_s8 = smov 4   ;;  %s3971_s28 = smov 64  }
  0x62   : > { %2807 = dma.hbm_to_vmem [thread:$0]  (!%p3490_p2), %s385_s20, 128, %s387_s3, %s376_s26, %s3971_s28, %s3971_s28, %s3970_s8  }
  0x63   : > { %s400_s29 = scalar_lea.vmem [#allocation8], %s3478_s27  ;;  %s396_s1 = sand.u32 1, %s3268_s18  }
  0x64   : > { %s409_s24 = sshll.u32 %s400_s29, 4  ;;  %s397_s2 = scalar_lea.sflag [#allocation9], %s396_s1  ;;  %s410_s24 = int_to_ptr.vmem [resolvable:$true] %s409_s24 }
  0x65   : > { %s3157_s17 = scalar_lea.vmem %s410_s24, 128  ;;  %s3277_s0 = smov [#allocation8]  }
  0x66   : > { %p3158_p3 = scmp.ne.s32.totalorder %s410_s24, %s3157_s17  ;;  %s3162_s12 = sshll.u32 %s3277_s0, 4  ;;  %s3163_s12 = int_to_ptr.vmem [resolvable:$false] %s3162_s12 }
  0x67   : > { %s3164_s11 = scalar_lea.vmem %s3163_s12, 256  ;;  %p3165_p12 = scmp.lt.s32.totalorder %s410_s24, %s3163_s12 }
  0x68   : > { %p3160_p5 = pnand %p3158_p3, %p3118_p11  ;;  %p3166_p7 = scmp.lt.s32.totalorder %s3164_s11, %s3157_s17 }
  0x6a   : > { %p3161_p10 = pneg %p3160_p5  ;;  %p3167_p1 = por %p3166_p7, %p3165_p12 }
  0x6c   : > { %p3168_p9 = pnand %p3167_p1, %p3161_p10 }
  0x6e   : > { %3171 = shalt.err (!%p3168_p9)
}
  0x6f   : > { %2810 = dma.hbm_to_vmem [thread:$0]  (!%p3490_p2), %s3497_s25, 128, %s410_s24, %s397_s2, %s3971_s28, %s3971_s28, %s3970_s8  }
  0x70   : > { %421 = sbr.rel (%p3402_p8) target bundleno = 2427 (0x97b), region = 60  ;;  %s3523_s1 = sand.u32 (!%p3402_p8), 1, %s3252_s14  }
  0x71   : > { %s2389_s3 = sshll.u32 (!%p3402_p8), %s3523_s1, 3  ;;  %s424_s17 = scalar_lea.sflag (!%p3402_p8), [#allocation6], %s3523_s1 }
  0x72   : > { %s3527_s20 = scalar_lea.vmem (!%p3402_p8), [#allocation5], %s2389_s3 }
  0x75   : > { %3223 = dma.done.wait (%p3392_p4), %s424_s17, 128  }
  0x76   : > { %3225 = vsyncadd (%p3392_p4), %s424_s17, 4294967168  ;;  %s432_s4 = sand.u32 1, %s3383_s19   ;;  %s3534_s25 = scalar_lea.vmem [#allocation8], %s2389_s3 }
  0x77   : > { %s433_s23 = scalar_lea.sflag [#allocation9], %s432_s4 }
  0x78   : > { %3227 = dma.done.wait (%p3392_p4), %s433_s23, 128  }
  0x79   : > { %3229 = vsyncadd (%p3392_p4), %s433_s23, 4294967168  ;;  %p3972_p8 = scmp.eq.s32.totalorder %s3383_s19, 0 }
  0x7b   : > { %3231 = dma.done.wait (%p3972_p8), [#allocation9], 1024   ;;  %p3973_p2 = pmov %p3972_p8 }
  0x7d   : > { %3233 = vsyncadd (%p3973_p2), [#allocation9], 4294966272  ;;  %p3974_p11 = pmov %p3973_p2 }
  0x7e   : > { %p3975_p13 = pmov %p3973_p2 }
  0x7f   : > { %3235 = dma.done.wait (%p3974_p11), [#allocation12], 2048  }
  0x80   : > { %3237 = vsyncadd (%p3975_p13), [#allocation12], 4294965248  ;;  %p3976_p3 = pmov %p3973_p2 }
  0x81   : > { %p3977_p5 = pmov %p3973_p2 }
  0x82   : > { %3239 = dma.done.wait (%p3976_p3), [#allocation15], 1024  }
  0x83   : > { %3241 = vsyncadd (%p3977_p5), [#allocation15], 4294966272  ;;  %v3278_v0 = vmov 0.0   ;;  %vm3279_vm0 = vmmov 0   ;;  %v2897_v1 = vld [vmem:[#allocation11 + $0x38] sm:$0xff]   ;;  %v2898_v2 = vld [vmem:[#allocation11 + $0x30] sm:$0xff]   ;;  %v874_v55 = vlaneseq }
  0x84   : > { %2593 = vmatprep.subr.bf16.mxu0 %v3278_v0  ;;  %2609 = vmatprep.mubr.msk.bf16.mxu0 %vm3279_vm0, %v3278_v0  ;;  %v2899_v3 = vld [vmem:[#allocation11 + $0x28] sm:$0xff]   ;;  %v2900_v4 = vld [vmem:[#allocation11 + $0x20] sm:$0xff]   ;;  %v2901_v5 = vld [vmem:[#allocation11 + $0x18] sm:$0xff]   ;;  %vm886_vm1 = vcmask 31744   ;;  %s3280_s27 = smov 124   ;;  %vm936_vm3 = vcmask 130048  }
  0x85   : > { %2613 = vmatprep.subr.bf16.mxu1 %v3278_v0  ;;  %2629 = vmatprep.mubr.msk.bf16.mxu1 %vm3279_vm0, %v3278_v0  ;;  %v2902_v6 = vld [vmem:[#allocation11 + $0x10] sm:$0xff]   ;;  %v2915_v7 = vld [vmem:[#allocation13 + $0x38] sm:$0xff]   ;;  %v2903_v9 = vld [vmem:[#allocation11 + $0x8] sm:$0xff]   ;;  %v3611_v56 = vand.u32 127, %v874_v55  ;;  %s3281_s24 = smov 120   ;;  %s3282_s2 = smov 116  }
  0x86   : > { %2594 = vmatpush3.bf16.msra.mxu0 %v2897_v1  ;;  %2614 = vmatpush3.bf16.msra.mxu1 %v2915_v7  ;;  %v2916_v8 = vld [vmem:[#allocation13 + $0x30] sm:$0xff]   ;;  %v2917_v10 = vld [vmem:[#allocation13 + $0x28] sm:$0xff]   ;;  %v2904_v11 = vld [vmem:[#allocation11] sm:$0xff]   ;;  %s3283_s0 = smov 112   ;;  %s3284_s12 = smov 100   ;;  %vm1020_vm4 = vcmask 27648  }
  0x87   : > { %2595 = vmatprep.subr.bf16.mxu0 %v3278_v0  ;;  %2615 = vmatprep.subr.bf16.mxu1 %v3278_v0  ;;  %v2905_v12 = vld [vmem:[%s3527_s20] sm:$0xff]   ;;  %v2906_v13 = vld [vmem:[#allocation10 + $0x38] sm:$0xff]   ;;  %v2907_v14 = vld [vmem:[#allocation10 + $0x30] sm:$0xff]   ;;  %vm876_vm2 = vcmp.lt.s32.totalorder %v3611_v56, 8  ;;  %s3285_s11 = smov 108   ;;  %s3286_s3 = smov 104  }
  0x88   : > { %v2908_v15 = vld [vmem:[#allocation10 + $0x28] sm:$0xff]   ;;  %v2909_v16 = vld [vmem:[#allocation10 + $0x20] sm:$0xff]   ;;  %v2910_v17 = vld [vmem:[#allocation10 + $0x18] sm:$0xff]   ;;  %s3288_s17 = smov 4   ;;  %s3289_s20 = smov 8   ;;  %vm1173_vm5 = vcmask 60448  }
  0x89   : > { %v2911_v18 = vld [vmem:[#allocation10 + $0x10] sm:$0xff]   ;;  %v2912_v19 = vld [vmem:[#allocation10 + $0x8] sm:$0xff]   ;;  %v2913_v20 = vld [vmem:[#allocation10] sm:$0xff]   ;;  %vm1325_vm6 = vcmask 93248   ;;  %s3290_s4 = smov 12   ;;  %s3291_s23 = smov 16  }
  0x8a   : > { %2596 = vmatpush3.bf16.msra.mxu0 %v2898_v2  ;;  %2616 = vmatpush3.bf16.msra.mxu1 %v2916_v8  ;;  %v2914_v21 = vld [vmem:[%s3534_s25] sm:$0xff]   ;;  %v2918_v22 = vld [vmem:[#allocation13 + $0x20] sm:$0xff]   ;;  %v2921_v25 = vld [vmem:[#allocation13 + $0x8] sm:$0xff]   ;;  %s3292_s25 = smov 20   ;;  %s3293_s19 = smov 24   ;;  %vm1477_vm7 = vcmask 126048  }
  0x8b   : > { %2597 = vmatprep.subr.bf16.mxu0 %v3278_v0  ;;  %2617 = vmatprep.subr.bf16.mxu1 %v3278_v0  ;;  %v2919_v23 = vld [vmem:[#allocation13 + $0x18] sm:$0xff]   ;;  %v2920_v24 = vld [vmem:[#allocation13 + $0x10] sm:$0xff]   ;;  %v2922_v26 = vld [vmem:[#allocation13] sm:$0xff]   ;;  %s3294_s21 = smov 28   ;;  %vm1629_vm8 = vcmask 158848   ;;  %vm1781_vm9 = vcmask 191648  }
  0x8c   : > { %v2396_v28 = vld [vmem:[%s3936_s6] ss:$0 sm:$0xff]  ;;  %vm1933_vm10 = vcmask 224448   ;;  %vm2085_vm11 = vcmask 257248  }
  0x8d   : > { %v2419_v39 = vld [vmem:[%s3935_s5] ss:$0 sm:$0xff] }
  0x8e   : > { %2598 = vmatpush3.bf16.msra.mxu0 %v2899_v3  ;;  %2618 = vmatpush3.bf16.msra.mxu1 %v2917_v10  ;;  %v2406_v46 = vld [vmem:[%s3937_s7] ss:$0 sm:$0xff] }
  0x8f   : > { %2599 = vmatprep.subr.bf16.mxu0 %v3278_v0  ;;  %2619 = vmatprep.subr.bf16.mxu1 %v3278_v0 }
  0x92   : > { %2600 = vmatpush3.bf16.msra.mxu0 %v2900_v4  ;;  %2620 = vmatpush3.bf16.msra.mxu1 %v2918_v22 }
  0x93   : > { %2601 = vmatprep.subr.bf16.mxu0 %v3278_v0  ;;  %2621 = vmatprep.subr.bf16.mxu1 %v3278_v0 }
  0x96   : > { %2602 = vmatpush3.bf16.msra.mxu0 %v2901_v5  ;;  %2622 = vmatpush3.bf16.msra.mxu1 %v2919_v23 }
  0x97   : > { %2603 = vmatprep.subr.bf16.mxu0 %v3278_v0  ;;  %2623 = vmatprep.subr.bf16.mxu1 %v3278_v0 }
  0x9a   : > { %2604 = vmatpush3.bf16.msra.mxu0 %v2902_v6  ;;  %2624 = vmatpush3.bf16.msra.mxu1 %v2920_v24 }
  0x9b   : > { %2605 = vmatprep.subr.bf16.mxu0 %v3278_v0  ;;  %2625 = vmatprep.subr.bf16.mxu1 %v3278_v0 }
  0x9e   : > { %2606 = vmatpush3.bf16.msra.mxu0 %v2903_v9  ;;  %2626 = vmatpush3.bf16.msra.mxu1 %v2921_v25 }
  0x9f   : > { %2607 = vmatprep.subr.bf16.mxu0 %v3278_v0  ;;  %2627 = vmatprep.subr.bf16.mxu1 %v3278_v0 }
  0xa2   : > { %2608 = vmatpush3.bf16.msra.mxu0 %v2904_v11  ;;  %2628 = vmatpush3.bf16.msra.mxu1 %v2922_v26 }
  0xa3   : > { %2633 = vmatprep.subr.bf16.mxu0 %v3278_v0  ;;  %2653 = vmatprep.subr.bf16.mxu1 %v3278_v0 }
  0xa5   : > { %2610 = vmatmul.mubr.bf16.vlgmr.msra.gmra.mxu0 %v2905_v12  ;;  %2630 = vmatmul.mubr.bf16.vlgmr.msra.gmra.mxu1 %v2905_v12 }
  0xa6   : > { %2634 = vmatpush3.bf16.msra.mxu0 %v2906_v13  ;;  %2649 = vmatprep.mubr.msk.bf16.mxu0 %vm3279_vm0, %v3278_v0 }
  0xa7   : > { %2635 = vmatprep.subr.bf16.mxu0 %v3278_v0  ;;  %2655 = vmatprep.mubr.msk.bf16.mxu1 %vm3279_vm0, %v3278_v0 }
  0xaa   : > { %2636 = vmatpush3.bf16.msra.mxu0 %v2907_v14 }
  0xab   : > { %2637 = vmatprep.subr.bf16.mxu0 %v3278_v0 }
  0xae   : > { %2638 = vmatpush3.bf16.msra.mxu0 %v2908_v15 }
  0xaf   : > { %2639 = vmatprep.subr.bf16.mxu0 %v3278_v0 }
  0xb2   : > { %2640 = vmatpush3.bf16.msra.mxu0 %v2909_v16 }
  0xb3   : > { %2641 = vmatprep.subr.bf16.mxu0 %v3278_v0 }
  0xb6   : > { %2642 = vmatpush3.bf16.msra.mxu0 %v2910_v17 }
  0xb7   : > { %2643 = vmatprep.subr.bf16.mxu0 %v3278_v0 }
  0xba   : > { %2644 = vmatpush3.bf16.msra.mxu0 %v2911_v18 }
  0xbb   : > { %2645 = vmatprep.subr.bf16.mxu0 %v3278_v0 }
  0xbe   : > { %2646 = vmatpush3.bf16.msra.mxu0 %v2912_v19 }
  0xbf   : > { %2647 = vmatprep.subr.bf16.mxu0 %v3278_v0 }
  0xc2   : > { %2648 = vmatpush3.bf16.msra.mxu0 %v2913_v20 }
  0xc3   : > { %2701 = vmatprep.subr.bf16.mxu0 %v3278_v0 }
  0xc5   : > { %2650 = vmatmul.mubr.bf16.vlgmr.msra.gmra.mxu0 %v2914_v21 }
  0xc6   : > { %2703 = vmatprep.mubr.msk.bf16.mxu0 %vm3279_vm0, %v3278_v0 }
 0x165   : > { %v614_v27 = vpop.f32.mrf.mxu0  ;;  %v726_v47 = vpop.f32.mrf.mxu1 }
 0x166   : > { %v615_v31 = vadd.f32 %v2396_v28, %v614_v27  ;;  %v727_v49 = vadd.f32 %v2406_v46, %v726_v47 }
 0x167   : > { %v2611_v29 = vpop.f32.mrf.mxu0  ;;  %v2631_v48 = vpop.f32.mrf.mxu1 }
 0x169   : > { %v617_v30 = vpop.f32.mrf.mxu0  ;;  %v729_v50 = vpop.f32.mrf.mxu1 }
 0x16a   : > { %v618_v32 = vadd.f32 %v2396_v28, %v617_v30  ;;  %v730_v51 = vadd.f32 %v2406_v46, %v729_v50 }
 0x16b   : > { %v2612_v33 = vpop.f32.mrf.mxu0  ;;  %v2632_v52 = vpop.f32.mrf.mxu1 }
 0x16c   : > { %v2518_v34 = vpack.c.bf16 %v618_v32, %v615_v31  ;;  %v2523_v53 = vpack.c.bf16 %v730_v51, %v727_v49 }
 0x16e   : > { %2519 = vst [vmem:[#allocation2] sm:$0xff] %v2518_v34   ;;  %2524 = vst [vmem:[#allocation3] sm:$0xff] %v2523_v53  }
 0x175   : > { %v2923_v35 = vld [vmem:[#allocation2] sm:$0xff]   ;;  %v2925_v54 = vld [vmem:[#allocation3] sm:$0xff]  }
 0x176   : > { %v2924_v36 = vld [vmem:[#allocation2] sm:$0xff]   ;;  %1033 = vrot.lane.b32.xlu1 %v2923_v35, %s3280_s27  ;;  %v2926_v26 = vld [vmem:[#allocation3] sm:$0xff]  }
 0x177   : > { %v891_v37 = vsel %vm886_vm1, %v2924_v36, 0  ;;  %v2927_v27 = vld [vmem:[#allocation3] sm:$0xff]   ;;  %v2928_v28 = vld [vmem:[#allocation2] sm:$0xff]  }
 0x178   : > { %2654 = vmatpush3.bf16.xpose.msra.mxu1 %v891_v37  ;;  %v2938_v56 = vld [vmem:[#allocation3] sm:$0xff]  }
 0x179   : > { %2659 = vmatprep.subr.bf16.mxu1 %v3278_v0 }
 0x185   : > { %v866_v38 = vpop.f32.mrf.mxu0 }
 0x186   : > { %v867_v42 = vadd.f32 %v2419_v39, %v866_v38 }
 0x187   : > { %v2651_v40 = vpop.f32.mrf.mxu0 }
 0x189   : > { %v869_v41 = vpop.f32.mrf.mxu0 }
 0x18a   : > { %v870_v43 = vadd.f32 %v2419_v39, %v869_v41 }
 0x18b   : > { %v2652_v44 = vpop.f32.mrf.mxu0 }
 0x18c   : > { %v3599_v45 = vpack.c.bf16 %v870_v43, %v867_v42 }
 0x18e   : > { %1026 = vrot.lane.b32.xlu1 %v3599_v45, %s3280_s27  ;;  %2656 = vmatmul.mubr.msk.bf16.vlgmr.msra.gmra.mxu1 %vm886_vm1, %v3599_v45 }
 0x18f   : > { %2661 = vmatprep.mubr.msk.bf16.mxu1 %vm3279_vm0, %v3278_v0  ;;  %2660 = vmatpush3.bf16.msra.mxu1 %v2925_v54 }
 0x190   : > { %2665 = vmatprep.subr.bf16.mxu1 %v3278_v0 }
 0x1e8   : > { %v1034_v10 = vpop.permute.xlu1 %1033 }
 0x1e9   : > { %v1039_v12 = vsel %vm886_vm1, %v1034_v10, 0 }
 0x200   : > { %v1027_v13 = vpop.permute.xlu1 %1026 }
 0x24e   : > { %v927_v57 = vpop.f32.mrf.mxu1 }
 0x24f   : > { %v934_v58 = vsel %vm876_vm2, %v927_v57, -1e+30  ;;  %v2929_v57 = vld [vmem:[#allocation2] sm:$0xff]  }
 0x250   : > { %v2657_v59 = vpop.f32.mrf.mxu1  ;;  %v937_v60 = vsel %vm936_vm3, %v934_v58, -inf }
 0x251   : > { %938 = vmax.xlane.f32.xlu0 %v937_v60  ;;  %v2931_v59 = vld [vmem:[#allocation2] sm:$0xff]  }
 0x252   : > { %v930_v61 = vpop.f32.mrf.mxu1  ;;  %v2932_v60 = vld [vmem:[#allocation2] sm:$0xff]  }
 0x253   : > { %v935_v62 = vsel %vm876_vm2, %v930_v61, -1e+30  ;;  %v2933_v61 = vld [vmem:[#allocation2] sm:$0xff]  }
 0x254   : > { %v2658_v63 = vpop.f32.mrf.mxu1  ;;  %v940_v1 = vsel %vm936_vm3, %v935_v62, -inf }
 0x255   : > { %941 = vmax.xlane.f32.xlu0 %v940_v1 }
 0x2da   : > { %v939_v2 = vpop.xlane.xlu0 %938 }
 0x2db   : > { %v943_v3 = vsub.f32 %v934_v58, %v939_v2  ;;  %v2930_v58 = vld [vmem:[#allocation2] sm:$0xff]  }
 0x2dd   : > { %v945_v4 = vmul.f32 1.442695, %v943_v3 }
 0x2de   : > { %v942_v5 = vpop.xlane.xlu0 %941 }
 0x2df   : > { %v944_v6 = vsub.f32 %v935_v62, %v942_v5  ;;  %2948 = vpow2.f32 %v945_v4 }
 0x2e1   : > { %v947_v7 = vmul.f32 1.442695, %v944_v6 }
 0x2e3   : > { %2950 = vpow2.f32 %v947_v7 }
 0x2ec   : > { %v3620_v8 = vpop.eup %2948 }
 0x2f0   : > { %v3622_v9 = vpop.eup %2950 }
 0x2f1   : > { %v955_v11 = vpack.c.bf16 %v3622_v9, %v3620_v8 }
 0x2f3   : > { %2662 = vmatmul.mubr.msk.bf16.vlgmr.msra.gmra.mxu1 %vm936_vm3, %v955_v11 }
 0x2f4   : > { %2666 = vmatpush3.bf16.xpose.msra.mxu1 %v1039_v12  ;;  %2667 = vmatprep.mubr.msk.bf16.mxu1 %vm3279_vm0, %v3278_v0 }
 0x2f5   : > { %2671 = vmatprep.subr.bf16.mxu1 %v3278_v0 }
 0x2fb   : > { %2668 = vmatmul.mubr.msk.bf16.vlgmr.msra.gmra.mxu1 %vm886_vm1, %v1027_v13 }
 0x2fc   : > { %2673 = vmatprep.mubr.msk.bf16.mxu1 %vm3279_vm0, %v3278_v0 }
 0x3b3   : > { %v3634_v14 = vpop.f32.mrf.mxu1 }
 0x3b5   : > { %v2663_v15 = vpop.f32.mrf.mxu1 }
 0x3b7   : > { %v3636_v16 = vpop.f32.mrf.mxu1 }
 0x3b9   : > { %v2664_v17 = vpop.f32.mrf.mxu1 }
 0x3bb   : > { %v1075_v18 = vpop.f32.mrf.mxu1 }
 0x3bc   : > { %v1082_v19 = vsel %vm876_vm2, %v1075_v18, -1e+30 }
 0x3bd   : > { %v2669_v20 = vpop.f32.mrf.mxu1  ;;  %v1084_v21 = vsel %vm936_vm3, %v1082_v19, -inf }
 0x3be   : > { %1085 = vmax.xlane.f32.xlu0 %v1084_v21 }
 0x3bf   : > { %v1078_v22 = vpop.f32.mrf.mxu1 }
 0x3c0   : > { %v1083_v23 = vsel %vm876_vm2, %v1078_v22, -1e+30 }
 0x3c1   : > { %v2670_v24 = vpop.f32.mrf.mxu1  ;;  %v1087_v25 = vsel %vm936_vm3, %v1083_v23, -inf }
 0x3c2   : > { %1088 = vmax.xlane.f32.xlu1 %v1087_v25 }
 0x3d3   : > { %1262 = vrot.lane.b32.xlu1 %v2926_v26, %s3281_s24 }
 0x3d4   : > { %1110 = vrot.lane.b32.xlu0 %v2927_v27, %s3280_s27  ;;  %s2395_s27 = sshll.u32 %s3523_s1, 4 }
 0x3d5   : > { %s493_s28 = scalar_lea.vmem [#allocation16], %s2395_s27 }
 0x3d6   : > { %s2226_s29 = sshll.u32 %s493_s28, 4  ;;  %s3876_s29 = int_to_ptr.vmem [resolvable:$true] %s2226_s29 }
 0x3d8   : > { %1185 = vrot.lane.b32.xlu0 %v2928_v28, %s3281_s24 }
 0x3dc   : > { %1178 = vrot.lane.b32.xlu0 %v3599_v45, %s3281_s24  ;;  %s2514_s24 = sshll.u32 %s3260_s16, 8  ;;  %s3295_s16 = smov [#allocation16]  }
 0x447   : > { %v1086_v29 = vpop.xlane.xlu0 %1085 }
 0x448   : > { %v1090_v30 = vsub.f32 %v1082_v19, %v1086_v29 }
 0x44a   : > { %v1092_v31 = vmul.f32 1.442695, %v1090_v30 }
 0x44b   : > { %v1111_v32 = vpop.permute.xlu0 %1110  ;;  %v1089_v33 = vpop.xlane.xlu1 %1088 }
 0x44c   : > { %v1091_v34 = vsub.f32 %v1083_v23, %v1089_v33  ;;  %2672 = vmatpush3.bf16.msra.mxu1 %v1111_v32  ;;  %2952 = vpow2.f32 %v1092_v31 }
 0x44d   : > { %2677 = vmatprep.subr.bf16.mxu1 %v3278_v0 }
 0x44e   : > { %v1094_v35 = vmul.f32 1.442695, %v1091_v34 }
 0x44f   : > { %v1186_v38 = vpop.permute.xlu0 %1185  ;;  %v1263_v42 = vpop.permute.xlu1 %1262 }
 0x450   : > { %2954 = vpow2.f32 %v1094_v35  ;;  %v1191_v40 = vsel %vm886_vm1, %v1186_v38, 0 }
 0x453   : > { %v1179_v41 = vpop.permute.xlu0 %1178 }
 0x459   : > { %v3647_v36 = vpop.eup %2952 }
 0x45d   : > { %v3649_v37 = vpop.eup %2954 }
 0x45e   : > { %v1102_v39 = vpack.c.bf16 %v3649_v37, %v3647_v36 }
 0x460   : > { %2674 = vmatmul.mubr.msk.bf16.vlgmr.msra.gmra.mxu1 %vm936_vm3, %v1102_v39 }
 0x461   : > { %2678 = vmatpush3.bf16.xpose.msra.mxu1 %v1191_v40  ;;  %2679 = vmatprep.mubr.msk.bf16.mxu1 %vm3279_vm0, %v3278_v0 }
 0x462   : > { %2683 = vmatprep.subr.bf16.mxu1 %v3278_v0 }
 0x468   : > { %2680 = vmatmul.mubr.msk.bf16.vlgmr.msra.gmra.mxu1 %vm886_vm1, %v1179_v41 }
 0x469   : > { %2684 = vmatpush3.bf16.msra.mxu1 %v1263_v42  ;;  %2685 = vmatprep.mubr.msk.bf16.mxu1 %vm3279_vm0, %v3278_v0 }
 0x46a   : > { %2689 = vmatprep.subr.bf16.mxu1 %v3278_v0 }
 0x520   : > { %v3662_v43 = vpop.f32.mrf.mxu1 }
 0x522   : > { %v2675_v44 = vpop.f32.mrf.mxu1 }
 0x524   : > { %v3664_v46 = vpop.f32.mrf.mxu1 }
 0x526   : > { %v2676_v47 = vpop.f32.mrf.mxu1 }
 0x528   : > { %v1227_v48 = vpop.f32.mrf.mxu1 }
 0x529   : > { %v1234_v49 = vsel %vm876_vm2, %v1227_v48, -1e+30 }
 0x52a   : > { %v2681_v50 = vpop.f32.mrf.mxu1  ;;  %v1236_v51 = vsel %vm936_vm3, %v1234_v49, -inf }
 0x52b   : > { %1237 = vmax.xlane.f32.xlu0 %v1236_v51 }
 0x52c   : > { %v1230_v52 = vpop.f32.mrf.mxu1 }
 0x52d   : > { %v1235_v53 = vsel %vm876_vm2, %v1230_v52, -1e+30 }
 0x52e   : > { %v2682_v54 = vpop.f32.mrf.mxu1  ;;  %v1239_v55 = vsel %vm936_vm3, %v1235_v53, -inf }
 0x52f   : > { %1240 = vmax.xlane.f32.xlu1 %v1239_v55 }
 0x540   : > { %1337 = vrot.lane.b32.xlu1 %v2929_v57, %s3282_s2 }
 0x541   : > { %1489 = vrot.lane.b32.xlu0 %v2930_v58, %s3283_s0 }
 0x544   : > { %1330 = vrot.lane.b32.xlu1 %v3599_v45, %s3282_s2 }
 0x545   : > { %1938 = vrot.lane.b32.xlu0 %v3599_v45, %s3284_s12 }
 0x548   : > { %1482 = vrot.lane.b32.xlu1 %v3599_v45, %s3283_s0 }
 0x54c   : > { %1641 = vrot.lane.b32.xlu1 %v2931_v59, %s3285_s11 }
 0x550   : > { %1634 = vrot.lane.b32.xlu1 %v3599_v45, %s3285_s11 }
 0x554   : > { %1793 = vrot.lane.b32.xlu1 %v2932_v60, %s3286_s3 }
 0x558   : > { %1786 = vrot.lane.b32.xlu1 %v3599_v45, %s3286_s3 }
 0x55c   : > { %1945 = vrot.lane.b32.xlu1 %v2933_v61, %s3284_s12 }
 0x5b4   : > { %v1238_v62 = vpop.xlane.xlu0 %1237 }
 0x5b5   : > { %v1242_v63 = vsub.f32 %v1234_v49, %v1238_v62 }
 0x5b7   : > { %v1244_v1 = vmul.f32 1.442695, %v1242_v63 }
 0x5b8   : > { %v1490_v2 = vpop.permute.xlu0 %1489  ;;  %v1241_v3 = vpop.xlane.xlu1 %1240 }
 0x5b9   : > { %v1495_v4 = vsel %vm886_vm1, %v1490_v2, 0  ;;  %v1243_v5 = vsub.f32 %v1235_v53, %v1241_v3  ;;  %2956 = vpow2.f32 %v1244_v1 }
 0x5ba   : > { %2702 = vmatpush3.bf16.xpose.msra.mxu0 %v1495_v4 }
 0x5bb   : > { %v1246_v6 = vmul.f32 1.442695, %v1243_v5  ;;  %2713 = vmatprep.subr.bf16.mxu0 %v3278_v0 }
 0x5bc   : > { %v1338_v7 = vpop.permute.xlu1 %1337  ;;  %v1939_v25 = vpop.permute.xlu0 %1938 }
 0x5bd   : > { %2958 = vpow2.f32 %v1246_v6  ;;  %v1343_v19 = vsel %vm886_vm1, %v1338_v7, 0 }
 0x5c0   : > { %v1331_v10 = vpop.permute.xlu1 %1330 }
 0x5c4   : > { %v1483_v45 = vpop.permute.xlu1 %1482 }
 0x5c5   : > { %2704 = vmatmul.mubr.msk.bf16.vlgmr.msra.gmra.mxu0 %vm886_vm1, %v1483_v45 }
 0x5c6   : > { %2715 = vmatprep.mubr.msk.bf16.mxu0 %vm3279_vm0, %v3278_v0  ;;  %v3692_v12 = vpop.eup %2956 }
 0x5c8   : > { %v1642_v11 = vpop.permute.xlu1 %1641 }
 0x5c9   : > { %v1647_v13 = vsel %vm886_vm1, %v1642_v11, 0 }
 0x5ca   : > { %v3695_v15 = vpop.eup %2958  ;;  %2714 = vmatpush3.bf16.xpose.msra.mxu0 %v1647_v13 }
 0x5cb   : > { %v1254_v17 = vpack.c.bf16 %v3695_v15, %v3692_v12  ;;  %2725 = vmatprep.subr.bf16.mxu0 %v3278_v0 }
 0x5cc   : > { %v1635_v18 = vpop.permute.xlu1 %1634 }
 0x5cd   : > { %2686 = vmatmul.mubr.msk.bf16.vlgmr.msra.gmra.mxu1 %vm936_vm3, %v1254_v17 }
 0x5ce   : > { %2690 = vmatpush3.bf16.xpose.msra.mxu1 %v1343_v19  ;;  %2691 = vmatprep.mubr.msk.bf16.mxu1 %vm3279_vm0, %v3278_v0  ;;  %v2935_v19 = vld [vmem:[#allocation3] sm:$0xff]  }
 0x5cf   : > { %2695 = vmatprep.subr.bf16.mxu1 %v3278_v0 }
 0x5d0   : > { %v1794_v20 = vpop.permute.xlu1 %1793 }
 0x5d1   : > { %v1799_v21 = vsel %vm886_vm1, %v1794_v20, 0  ;;  %2716 = vmatmul.mubr.msk.bf16.vlgmr.msra.gmra.mxu0 %vm886_vm1, %v1635_v18  ;;  %v2934_v18 = vld [vmem:[#allocation3] sm:$0xff]  }
 0x5d2   : > { %2726 = vmatpush3.bf16.xpose.msra.mxu0 %v1799_v21  ;;  %2727 = vmatprep.mubr.msk.bf16.mxu0 %vm3279_vm0, %v3278_v0  ;;  %v2936_v20 = vld [vmem:[#allocation3] sm:$0xff]  }
 0x5d3   : > { %2737 = vmatprep.subr.bf16.mxu0 %v3278_v0  ;;  %v2937_v21 = vld [vmem:[#allocation3] sm:$0xff]  }
 0x5d4   : > { %v1787_v22 = vpop.permute.xlu1 %1786 }
 0x5d5   : > { %2692 = vmatmul.mubr.msk.bf16.vlgmr.msra.gmra.mxu1 %vm886_vm1, %v1331_v10 }
 0x5d6   : > { %2697 = vmatprep.mubr.msk.bf16.mxu1 %vm3279_vm0, %v3278_v0 }
 0x5d8   : > { %v1946_v23 = vpop.permute.xlu1 %1945 }
 0x5d9   : > { %v1951_v24 = vsel %vm886_vm1, %v1946_v23, 0  ;;  %2728 = vmatmul.mubr.msk.bf16.vlgmr.msra.gmra.mxu0 %vm886_vm1, %v1787_v22  ;;  %v1096_v22 = vsel %vm936_vm3, %v3647_v36, 0.0  ;;  %v1248_v23 = vsel %vm936_vm3, %v3692_v12, 0.0 }
 0x5da   : > { %2738 = vmatpush3.bf16.xpose.msra.mxu0 %v1951_v24  ;;  %2739 = vmatprep.mubr.msk.bf16.mxu0 %vm3279_vm0, %v3278_v0  ;;  %v1251_v24 = vsel %vm936_vm3, %v3695_v15, 0.0 }
 0x5db   : > { %2749 = vmatprep.subr.bf16.mxu0 %v3278_v0 }
 0x5e1   : > { %2740 = vmatmul.mubr.msk.bf16.vlgmr.msra.gmra.mxu0 %vm886_vm1, %v1939_v25  ;;  %v1099_v25 = vsel %vm936_vm3, %v3649_v37, 0.0 }
 0x5e2   : > { %2765 = vmatprep.mubr.msk.bf16.mxu0 %vm3279_vm0, %v3278_v0 }
 0x685   : > { %v1531_v26 = vpop.f32.mrf.mxu0 }
 0x686   : > { %v3723_v27 = vsel %vm876_vm2, %v1531_v26, -1e+30 }
 0x687   : > { %v2705_v28 = vpop.f32.mrf.mxu0  ;;  %v1540_v29 = vsel %vm936_vm3, %v3723_v27, -inf }
 0x688   : > { %1541 = vmax.xlane.f32.xlu0 %v1540_v29 }
 0x689   : > { %v1534_v30 = vpop.f32.mrf.mxu0 }
 0x68a   : > { %v3729_v31 = vsel %vm876_vm2, %v1534_v30, -1e+30 }
 0x68b   : > { %v2706_v32 = vpop.f32.mrf.mxu0  ;;  %v1543_v33 = vsel %vm936_vm3, %v3729_v31, -inf }
 0x68c   : > { %1544 = vmax.xlane.f32.xlu1 %v1543_v33 }
 0x68d   : > { %v3733_v34 = vpop.f32.mrf.mxu1 }
 0x68f   : > { %v2687_v35 = vpop.f32.mrf.mxu1 }
 0x691   : > { %v3735_v38 = vpop.f32.mrf.mxu1  ;;  %v1683_v39 = vpop.f32.mrf.mxu0 }
 0x692   : > { %v3739_v40 = vsel %vm876_vm2, %v1683_v39, -1e+30 }
 0x693   : > { %v2688_v41 = vpop.f32.mrf.mxu1  ;;  %v2717_v42 = vpop.f32.mrf.mxu0  ;;  %v1692_v44 = vsel %vm936_vm3, %v3739_v40, -inf }
 0x694   : > { %1693 = vmax.xlane.f32.xlu0 %v1692_v44 }
 0x695   : > { %v1379_v47 = vpop.f32.mrf.mxu1  ;;  %v1686_v48 = vpop.f32.mrf.mxu0 }
 0x696   : > { %v3745_v49 = vsel %vm876_vm2, %v1686_v48, -1e+30  ;;  %v3769_v3 = vsel %vm876_vm2, %v1379_v47, -1e+30 }
 0x697   : > { %v2693_v50 = vpop.f32.mrf.mxu1  ;;  %v2718_v51 = vpop.f32.mrf.mxu0  ;;  %v1695_v52 = vsel %vm936_vm3, %v3745_v49, -inf  ;;  %v1388_v6 = vsel %vm936_vm3, %v3769_v3, -inf }
 0x698   : > { %1696 = vmax.xlane.f32.xlu1 %v1695_v52 }
 0x699   : > { %v1382_v53 = vpop.f32.mrf.mxu1  ;;  %v1835_v54 = vpop.f32.mrf.mxu0 }
 0x69a   : > { %v3751_v55 = vsel %vm876_vm2, %v1835_v54, -1e+30  ;;  %v3757_v60 = vsel %vm876_vm2, %v1382_v53, -1e+30 }
 0x69b   : > { %v2694_v57 = vpop.f32.mrf.mxu1  ;;  %v2729_v58 = vpop.f32.mrf.mxu0  ;;  %v1844_v59 = vsel %vm936_vm3, %v3751_v55, -inf  ;;  %v1391_v1 = vsel %vm936_vm3, %v3757_v60, -inf }
 0x69c   : > { %1845 = vmax.xlane.f32.xlu0 %v1844_v59 }
 0x69d   : > { %v1838_v61 = vpop.f32.mrf.mxu0 }
 0x69e   : > { %v3761_v62 = vsel %vm876_vm2, %v1838_v61, -1e+30 }
 0x69f   : > { %v2730_v63 = vpop.f32.mrf.mxu0  ;;  %v1847_v2 = vsel %vm936_vm3, %v3761_v62, -inf }
 0x6a0   : > { %1392 = vmax.xlane.f32.xlu0 %v1391_v1  ;;  %1848 = vmax.xlane.f32.xlu1 %v1847_v2 }
 0x6a1   : > { %v1987_v4 = vpop.f32.mrf.mxu0 }
 0x6a2   : > { %v3775_v7 = vsel %vm876_vm2, %v1987_v4, -1e+30 }
 0x6a3   : > { %v2741_v5 = vpop.f32.mrf.mxu0  ;;  %v1996_v11 = vsel %vm936_vm3, %v3775_v7, -inf }
 0x6a4   : > { %1389 = vmax.xlane.f32.xlu1 %v1388_v6 }
 0x6a5   : > { %v1990_v10 = vpop.f32.mrf.mxu0 }
 0x6a6   : > { %v3781_v13 = vsel %vm876_vm2, %v1990_v10, -1e+30 }
 0x6a7   : > { %v2742_v45 = vpop.f32.mrf.mxu0  ;;  %v1999_v17 = vsel %vm936_vm3, %v3781_v13, -inf }
 0x6a8   : > { %1997 = vmax.xlane.f32.xlu1 %v1996_v11 }
 0x6ac   : > { %2000 = vmax.xlane.f32.xlu1 %v1999_v17 }
 0x6b6   : > { %1414 = vrot.lane.b32.xlu0 %v2934_v18, %s3282_s2 }
 0x6ba   : > { %1718 = vrot.lane.b32.xlu0 %v2935_v19, %s3285_s11  ;;  %s2211_s11 = scalar_lea.sflag [#allocation7], %s3523_s1 }
 0x6bd   : > { %1566 = vrot.lane.b32.xlu1 %v2936_v20, %s3283_s0 }
 0x6be   : > { %1870 = vrot.lane.b32.xlu0 %v2937_v21, %s3286_s3  ;;  %s3172_s3 = scalar_lea.vmem %s3876_s29, 256 }
 0x6bf   : > { %p3173_p4 = scmp.ne.s32.totalorder %s3876_s29, %s3172_s3 }
 0x6c1   : > { %2022 = vrot.lane.b32.xlu1 %v2938_v56, %s3284_s12  ;;  %s3881_s12 = scalar_lea.hbm %s3940_s10, %s2514_s24  ;;  %p3174_p10 = pnand %p3173_p4, %p3471_p0 }
 0x6c3   : > { %p3175_p12 = pneg %p3174_p10 }
 0x6dd   : > { %1097 = vadd.xlane.f32.xlu0 %v1096_v22 }
 0x6e1   : > { %1249 = vadd.xlane.f32.xlu0 %v1248_v23  ;;  %v949_v23 = vsel %vm936_vm3, %v3620_v8, 0.0 }
 0x6e5   : > { %1252 = vadd.xlane.f32.xlu0 %v1251_v24  ;;  %1100 = vadd.xlane.f32.xlu1 %v1099_v25 }
 0x711   : > { %v1542_v26 = vpop.xlane.xlu0 %1541 }
 0x712   : > { %v1546_v28 = vsub.f32 %v3723_v27, %v1542_v26 }
 0x714   : > { %v1548_v29 = vmul.f32 1.442695, %v1546_v28  ;;  %v952_v28 = vsel %vm936_vm3, %v3622_v9, 0.0 }
 0x715   : > { %v1545_v30 = vpop.xlane.xlu1 %1544 }
 0x716   : > { %2960 = vpow2.f32 %v1548_v29  ;;  %v1547_v36 = vsub.f32 %v3729_v31, %v1545_v30 }
 0x718   : > { %v1550_v32 = vmul.f32 1.442695, %v1547_v36 }
 0x71a   : > { %2962 = vpow2.f32 %v1550_v32 }
 0x71d   : > { %v1694_v12 = vpop.xlane.xlu0 %1693 }
 0x71e   : > { %v1698_v33 = vsub.f32 %v3739_v40, %v1694_v12  ;;  %v3287_v12 = vmov 0  }
 0x71f   : > { %877 = vst [vmem:[#allocation4] sm:$0xf] %v3287_v12  ;;  %878 = vst [vmem:[#allocation4 + $0x4] sm:$0xf] %v3287_v12  ;;  %v2942_v12 = vld [vmem:[#allocation14 + $0x20] sm:$0xff]  }
 0x720   : > { %v1700_v35 = vmul.f32 1.442695, %v1698_v33 }
 0x721   : > { %v1697_v15 = vpop.xlane.xlu1 %1696 }
 0x722   : > { %2964 = vpow2.f32 %v1700_v35  ;;  %v1699_v37 = vsub.f32 %v3745_v49, %v1697_v15 }
 0x723   : > { %v3802_v39 = vpop.eup %2960 }
 0x724   : > { %v1702_v41 = vmul.f32 1.442695, %v1699_v37  ;;  %v1552_v27 = vsel %vm936_vm3, %v3802_v39, 0.0 }
 0x725   : > { %v1846_v42 = vpop.xlane.xlu0 %1845  ;;  %1553 = vadd.xlane.f32.xlu1 %v1552_v27 }
 0x726   : > { %2966 = vpow2.f32 %v1702_v41  ;;  %v1850_v31 = vsub.f32 %v3751_v55, %v1846_v42 }
 0x727   : > { %v3807_v44 = vpop.eup %2962 }
 0x728   : > { %v1852_v47 = vmul.f32 1.442695, %v1850_v31  ;;  %v1555_v40 = vsel %vm936_vm3, %v3807_v44, 0.0  ;;  %v1558_v25 = vpack.c.bf16 %v3807_v44, %v3802_v39 }
 0x729   : > { %1556 = vadd.xlane.f32.xlu0 %v1555_v40  ;;  %v1393_v48 = vpop.xlane.xlu0 %1392  ;;  %v1849_v49 = vpop.xlane.xlu1 %1848 }
 0x72a   : > { %2968 = vpow2.f32 %v1852_v47  ;;  %v1395_v50 = vsub.f32 %v3757_v60, %v1393_v48  ;;  %v1851_v51 = vsub.f32 %v3761_v62, %v1849_v49 }
 0x72c   : > { %v1854_v52 = vmul.f32 1.442695, %v1851_v51  ;;  %v1398_v53 = vmul.f32 1.442695, %v1395_v50 }
 0x72d   : > { %v1415_v54 = vpop.permute.xlu0 %1414  ;;  %v1390_v57 = vpop.xlane.xlu1 %1389 }
 0x72e   : > { %v1394_v55 = vsub.f32 %v3769_v3, %v1390_v57  ;;  %2696 = vmatpush3.bf16.msra.mxu1 %v1415_v54  ;;  %2970 = vpow2.f32 %v1854_v52 }
 0x72f   : > { %v2965_v58 = vpop.eup %2964  ;;  %2707 = vmatprep.subr.bf16.mxu1 %v3278_v0  ;;  %2972 = vpow2.f32 %v1398_v53 }
 0x730   : > { %v1396_v59 = vmul.f32 1.442695, %v1394_v55  ;;  %v1704_v61 = vsel %vm936_vm3, %v2965_v58, 0.0 }
 0x731   : > { %v1998_v63 = vpop.xlane.xlu1 %1997  ;;  %1705 = vadd.xlane.f32.xlu1 %v1704_v61  ;;  %v1719_v26 = vpop.permute.xlu0 %1718 }
 0x732   : > { %2974 = vpow2.f32 %v1396_v59  ;;  %v2002_v60 = vsub.f32 %v3775_v7, %v1998_v63 }
 0x733   : > { %v2967_v62 = vpop.eup %2966 }
 0x734   : > { %v2004_v1 = vmul.f32 1.442695, %v2002_v60  ;;  %v1707_v2 = vsel %vm936_vm3, %v2967_v62, 0.0  ;;  %v1710_v8 = vpack.c.bf16 %v2967_v62, %v2965_v58 }
 0x735   : > { %1708 = vadd.xlane.f32.xlu0 %v1707_v2  ;;  %v2001_v3 = vpop.xlane.xlu1 %2000  ;;  %v1871_v29 = vpop.permute.xlu0 %1870 }
 0x736   : > { %2976 = vpow2.f32 %v2004_v1  ;;  %v2003_v4 = vsub.f32 %v3781_v13, %v2001_v3 }
 0x737   : > { %v2969_v5 = vpop.eup %2968 }
 0x738   : > { %v2006_v6 = vmul.f32 1.442695, %v2003_v4  ;;  %v1856_v10 = vsel %vm936_vm3, %v2969_v5, 0.0 }
 0x739   : > { %1857 = vadd.xlane.f32.xlu1 %v1856_v10  ;;  %v1567_v21 = vpop.permute.xlu1 %1566 }
 0x73a   : > { %2978 = vpow2.f32 %v2006_v6 }
 0x73b   : > { %v2971_v45 = vpop.eup %2970 }
 0x73c   : > { %v1859_v11 = vsel %vm936_vm3, %v2971_v45, 0.0  ;;  %v2973_v17 = vpop.eup %2972  ;;  %v1862_v30 = vpack.c.bf16 %v2971_v45, %v2969_v5 }
 0x73d   : > { %1860 = vadd.xlane.f32.xlu0 %v1859_v11  ;;  %v1403_v20 = vsel %vm936_vm3, %v2973_v17, 0.0  ;;  %v2023_v36 = vpop.permute.xlu1 %2022 }
 0x73f   : > { %v2975_v7 = vpop.eup %2974 }
 0x740   : > { %v1400_v18 = vsel %vm936_vm3, %v2975_v7, 0.0  ;;  %v1406_v19 = vpack.c.bf16 %v2973_v17, %v2975_v7 }
 0x741   : > { %1401 = vadd.xlane.f32.xlu1 %v1400_v18  ;;  %1404 = vadd.xlane.f32.xlu0 %v1403_v20  ;;  %v2939_v18 = vld [vmem:[#allocation14 + $0x38] sm:$0xff]  }
 0x742   : > { %2698 = vmatmul.mubr.msk.bf16.vlgmr.msra.gmra.mxu1 %vm936_vm3, %v1406_v19  ;;  %2750 = vmatpush3.bf16.msra.mxu0 %v2939_v18 }
 0x743   : > { %v2977_v13 = vpop.eup %2976  ;;  %2708 = vmatpush3.bf16.msra.mxu1 %v1567_v21  ;;  %2709 = vmatprep.mubr.msk.bf16.mxu1 %vm3279_vm0, %v3278_v0 }
 0x744   : > { %v2008_v56 = vsel %vm936_vm3, %v2977_v13, 0.0  ;;  %2719 = vmatprep.subr.bf16.mxu1 %v3278_v0  ;;  %2751 = vmatprep.subr.bf16.mxu0 %v3278_v0 }
 0x745   : > { %2009 = vadd.xlane.f32.xlu1 %v2008_v56 }
 0x747   : > { %v2979_v22 = vpop.eup %2978 }
 0x748   : > { %v2011_v24 = vsel %vm936_vm3, %v2979_v22, 0.0  ;;  %v2014_v9 = vpack.c.bf16 %v2979_v22, %v2977_v13  ;;  %v2940_v22 = vld [vmem:[#allocation14 + $0x30] sm:$0xff]  }
 0x749   : > { %950 = vadd.xlane.f32.xlu1 %v949_v23  ;;  %2012 = vadd.xlane.f32.xlu0 %v2011_v24 }
 0x74a   : > { %2710 = vmatmul.mubr.msk.bf16.vlgmr.msra.gmra.mxu1 %vm936_vm3, %v1558_v25  ;;  %2752 = vmatpush3.bf16.msra.mxu0 %v2940_v22 }
 0x74b   : > { %2720 = vmatpush3.bf16.msra.mxu1 %v1719_v26  ;;  %2721 = vmatprep.mubr.msk.bf16.mxu1 %vm3279_vm0, %v3278_v0 }
 0x74c   : > { %2731 = vmatprep.subr.bf16.mxu1 %v3278_v0  ;;  %2753 = vmatprep.subr.bf16.mxu0 %v3278_v0 }
 0x74d   : > { %953 = vadd.xlane.f32.xlu0 %v952_v28 }
 0x752   : > { %2722 = vmatmul.mubr.msk.bf16.vlgmr.msra.gmra.mxu1 %vm936_vm3, %v1710_v8  ;;  %v2941_v8 = vld [vmem:[#allocation14 + $0x28] sm:$0xff]  }
 0x753   : > { %2732 = vmatpush3.bf16.msra.mxu1 %v1871_v29  ;;  %2733 = vmatprep.mubr.msk.bf16.mxu1 %vm3279_vm0, %v3278_v0 }
 0x754   : > { %2743 = vmatprep.subr.bf16.mxu1 %v3278_v0  ;;  %2754 = vmatpush3.bf16.msra.mxu0 %v2941_v8 }
 0x755   : > { %2755 = vmatprep.subr.bf16.mxu0 %v3278_v0 }
 0x758   : > { %2756 = vmatpush3.bf16.msra.mxu0 %v2942_v12 }
 0x759   : > { %2757 = vmatprep.subr.bf16.mxu0 %v3278_v0 }
 0x75a   : > { %2734 = vmatmul.mubr.msk.bf16.vlgmr.msra.gmra.mxu1 %vm936_vm3, %v1862_v30 }
 0x75b   : > { %2744 = vmatpush3.bf16.msra.mxu1 %v2023_v36  ;;  %2745 = vmatprep.mubr.msk.bf16.mxu1 %vm3279_vm0, %v3278_v0 }
 0x762   : > { %2746 = vmatmul.mubr.msk.bf16.vlgmr.msra.gmra.mxu1 %vm936_vm3, %v2014_v9 }
 0x766   : > { %v1098_v32 = vpop.xlane.xlu0 %1097 }
 0x767   : > { %2980 = vrcp.f32 %v1098_v32 }
 0x76a   : > { %v1250_v33 = vpop.xlane.xlu0 %1249 }
 0x76b   : > { %2982 = vrcp.f32 %v1250_v33 }
 0x76e   : > { %v1253_v35 = vpop.xlane.xlu0 %1252  ;;  %v1101_v15 = vpop.xlane.xlu1 %1100 }
 0x76f   : > { %2984 = vrcp.f32 %v1253_v35 }
 0x770   : > { %2986 = vrcp.f32 %v1101_v15 }
 0x774   : > { %v2981_v37 = vpop.eup %2980 }
 0x775   : > { %v1159_v39 = vmul.f32 %v2981_v37, %v3662_v43 }
 0x777   : > { %v2500_v41 = vpack.c.bf16 %v1159_v39, %v1159_v39 }
 0x778   : > { %v2983_v27 = vpop.eup %2982 }
 0x779   : > { %1167 = vrot.lane.b32.xlu1 %v2500_v41, %s3288_s17  ;;  %v1311_v42 = vmul.f32 %v2983_v27, %v3733_v34  ;;  %v2943_v41 = vld [vmem:[#allocation14 + $0x18] sm:$0xff]  }
 0x77a   : > { %2758 = vmatpush3.bf16.msra.mxu0 %v2943_v41 }
 0x77b   : > { %v2502_v31 = vpack.c.bf16 %v1311_v42, %v1311_v42  ;;  %2759 = vmatprep.subr.bf16.mxu0 %v3278_v0 }
 0x77c   : > { %v2985_v44 = vpop.eup %2984 }
 0x77d   : > { %v2987_v47 = vpop.eup %2986  ;;  %1319 = vrot.lane.b32.xlu1 %v2502_v31, %s3289_s20  ;;  %v1312_v40 = vmul.f32 %v2985_v44, %v3735_v38 }
 0x77e   : > { %v1160_v48 = vmul.f32 %v2987_v47, %v3664_v46 }
 0x77f   : > { %v2503_v49 = vpack.c.bf16 %v1312_v40, %v1312_v40  ;;  %v2944_v40 = vld [vmem:[#allocation14 + $0x10] sm:$0xff]  }
 0x780   : > { %v2501_v50 = vpack.c.bf16 %v1160_v48, %v1160_v48  ;;  %2760 = vmatpush3.bf16.msra.mxu0 %v2944_v40 }
 0x781   : > { %1321 = vrot.lane.b32.xlu1 %v2503_v49, %s3289_s20  ;;  %2761 = vmatprep.subr.bf16.mxu0 %v3278_v0 }
 0x782   : > { %1169 = vrot.lane.b32.xlu0 %v2501_v50, %s3288_s17  ;;  %s3176_s17 = sshll.u32 %s3295_s16, 4  ;;  %s3177_s17 = int_to_ptr.vmem [resolvable:$false] %s3176_s17 }
 0x783   : > { %p3179_p7 = scmp.lt.s32.totalorder %s3876_s29, %s3177_s17 }
 0x7ae   : > { %v1554_v43 = vpop.xlane.xlu1 %1553 }
 0x7b2   : > { %v1557_v51 = vpop.xlane.xlu0 %1556 }
 0x7ba   : > { %v1706_v52 = vpop.xlane.xlu1 %1705 }
 0x7be   : > { %v1709_v53 = vpop.xlane.xlu0 %1708 }
 0x7c2   : > { %v1858_v34 = vpop.xlane.xlu1 %1857 }
 0x7c6   : > { %v3853_v54 = vpop.xlane.xlu0 %1860 }
 0x7ca   : > { %v1402_v57 = vpop.xlane.xlu1 %1401  ;;  %v1405_v55 = vpop.xlane.xlu0 %1404 }
 0x7ce   : > { %v3855_v58 = vpop.xlane.xlu1 %2009 }
 0x7d2   : > { %v3857_v59 = vpop.xlane.xlu0 %2012  ;;  %v951_v38 = vpop.xlane.xlu1 %950 }
 0x7d3   : > { %2988 = vrcp.f32 %v951_v38 }
 0x7d6   : > { %v954_v46 = vpop.xlane.xlu0 %953 }
 0x7d7   : > { %2990 = vrcp.f32 %v954_v46 }
 0x7d8   : > { %2992 = vrcp.f32 %v1402_v57 }
 0x7d9   : > { %2994 = vrcp.f32 %v1405_v55 }
 0x7da   : > { %2996 = vrcp.f32 %v1554_v43 }
 0x7db   : > { %2998 = vrcp.f32 %v1557_v51 }
 0x7dc   : > { %3000 = vrcp.f32 %v1706_v52  ;;  %v2945_v52 = vld [vmem:[#allocation14 + $0x8] sm:$0xff]  }
 0x7dd   : > { %3002 = vrcp.f32 %v1709_v53  ;;  %2762 = vmatpush3.bf16.msra.mxu0 %v2945_v52 }
 0x7de   : > { %3004 = vrcp.f32 %v1858_v34  ;;  %2763 = vmatprep.subr.bf16.mxu0 %v3278_v0 }
 0x7df   : > { %3006 = vrcp.f32 %v3853_v54  ;;  %v2946_v54 = vld [vmem:[#allocation14] sm:$0xff]  }
 0x7e0   : > { %v2989_v61 = vpop.eup %2988  ;;  %3008 = vrcp.f32 %v3855_v58 }
 0x7e1   : > { %v1010_v63 = vmul.f32 %v2989_v61, %v3634_v14  ;;  %3010 = vrcp.f32 %v3857_v59  ;;  %2764 = vmatpush3.bf16.msra.mxu0 %v2946_v54 }
 0x7e3   : > { %v2498_v62 = vpack.c.bf16 %v1010_v63, %v1010_v63 }
 0x7e4   : > { %v2991_v60 = vpop.eup %2990 }
 0x7e5   : > { %v1011_v1 = vmul.f32 %v2991_v60, %v3636_v16  ;;  %1021 = vst.msk [vmem:[#allocation4] sm:$0xf] %vm1020_vm4, %v2498_v62  ;;  %v2993_v14 = vpop.eup %2992 }
 0x7e6   : > { %v2995_v17 = vpop.eup %2994 }
 0x7e7   : > { %v2499_v2 = vpack.c.bf16 %v1011_v1, %v1011_v1  ;;  %v2997_v13 = vpop.eup %2996 }
 0x7e8   : > { %v2999_v26 = vpop.eup %2998 }
 0x7e9   : > { %1022 = vst.msk [vmem:[#allocation4 + $0x4] sm:$0xf] %vm1020_vm4, %v2499_v2  ;;  %v3001_v9 = vpop.eup %3000 }
 0x7ea   : > { %v3003_v37 = vpop.eup %3002 }
 0x7eb   : > { %v1168_v3 = vpop.permute.xlu1 %1167  ;;  %v3005_v44 = vpop.eup %3004 }
 0x7ec   : > { %1174 = vst.msk [vmem:[#allocation4] sm:$0xf] %vm1173_vm5, %v1168_v3  ;;  %v3007_v43 = vpop.eup %3006 }
 0x7ed   : > { %v3009_v55 = vpop.eup %3008 }
 0x7ee   : > { %v3011_v61 = vpop.eup %3010 }
 0x7ef   : > { %v1320_v4 = vpop.permute.xlu1 %1319 }
 0x7f0   : > { %1326 = vst.msk [vmem:[#allocation4] sm:$0xf] %vm1325_vm6, %v1320_v4 }
 0x7f3   : > { %v1322_v5 = vpop.permute.xlu1 %1321 }
 0x7f4   : > { %v1170_v6 = vpop.permute.xlu0 %1169 }
 0x7f5   : > { %1175 = vst.msk [vmem:[#allocation4 + $0x4] sm:$0xf] %vm1173_vm5, %v1170_v6 }
 0x7f6   : > { %1327 = vst.msk [vmem:[#allocation4 + $0x4] sm:$0xf] %vm1325_vm6, %v1322_v5 }
 0x802   : > { %v1454_v10 = vpop.f32.mrf.mxu1 }
 0x803   : > { %v1463_v16 = vmul.f32 %v2993_v14, %v1454_v10 }
 0x804   : > { %v2699_v45 = vpop.f32.mrf.mxu1 }
 0x805   : > { %v2504_v11 = vpack.c.bf16 %v1463_v16, %v1463_v16 }
 0x806   : > { %v1457_v7 = vpop.f32.mrf.mxu1 }
 0x807   : > { %v1464_v19 = vmul.f32 %v2995_v17, %v1457_v7  ;;  %1471 = vrot.lane.b32.xlu0 %v2504_v11, %s3290_s4  ;;  %v2477_v17 = vld [vmem:[%s3939_s9] ss:$0 sm:$0xff] }
 0x808   : > { %v2700_v20 = vpop.f32.mrf.mxu1 }
 0x809   : > { %v2505_v21 = vpack.c.bf16 %v1464_v19, %v1464_v19 }
 0x80a   : > { %v1606_v56 = vpop.f32.mrf.mxu1 }
 0x80b   : > { %v1615_v23 = vmul.f32 %v2997_v13, %v1606_v56  ;;  %1473 = vrot.lane.b32.xlu1 %v2505_v21, %s3290_s4  ;;  %s3178_s4 = scalar_lea.vmem %s3177_s17, 512 }
 0x80c   : > { %v2711_v24 = vpop.f32.mrf.mxu1  ;;  %p3180_p1 = scmp.lt.s32.totalorder %s3178_s4, %s3172_s3 }
 0x80d   : > { %v2506_v25 = vpack.c.bf16 %v1615_v23, %v1615_v23 }
 0x80e   : > { %v1609_v28 = vpop.f32.mrf.mxu1  ;;  %p3181_p9 = por %p3180_p1, %p3179_p7 }
 0x80f   : > { %v1616_v29 = vmul.f32 %v2999_v26, %v1609_v28  ;;  %1623 = vrot.lane.b32.xlu0 %v2506_v25, %s3291_s23 }
 0x810   : > { %v2712_v30 = vpop.f32.mrf.mxu1  ;;  %p3182_p8 = pnand %p3181_p9, %p3175_p12 }
 0x811   : > { %v2507_v36 = vpack.c.bf16 %v1616_v29, %v1616_v29 }
 0x812   : > { %v1758_v32 = vpop.f32.mrf.mxu1 }
 0x813   : > { %v1767_v33 = vmul.f32 %v3001_v9, %v1758_v32  ;;  %1625 = vrot.lane.b32.xlu1 %v2507_v36, %s3291_s23 }
 0x814   : > { %v2723_v35 = vpop.f32.mrf.mxu1 }
 0x815   : > { %v2508_v15 = vpack.c.bf16 %v1767_v33, %v1767_v33 }
 0x816   : > { %v1761_v39 = vpop.f32.mrf.mxu1 }
 0x817   : > { %v1768_v27 = vmul.f32 %v3003_v37, %v1761_v39  ;;  %1775 = vrot.lane.b32.xlu0 %v2508_v15, %s3292_s25 }
 0x818   : > { %v2724_v42 = vpop.f32.mrf.mxu1 }
 0x819   : > { %v2509_v31 = vpack.c.bf16 %v1768_v27, %v1768_v27 }
 0x81a   : > { %v1910_v47 = vpop.f32.mrf.mxu1 }
 0x81b   : > { %v1919_v48 = vmul.f32 %v3005_v44, %v1910_v47  ;;  %1777 = vrot.lane.b32.xlu1 %v2509_v31, %s3292_s25 }
 0x81c   : > { %v2735_v49 = vpop.f32.mrf.mxu1 }
 0x81d   : > { %v2510_v50 = vpack.c.bf16 %v1919_v48, %v1919_v48 }
 0x81e   : > { %v1913_v51 = vpop.f32.mrf.mxu1 }
 0x81f   : > { %v1920_v53 = vmul.f32 %v3007_v43, %v1913_v51  ;;  %1927 = vrot.lane.b32.xlu0 %v2510_v50, %s3293_s19 }
 0x820   : > { %v2736_v34 = vpop.f32.mrf.mxu1 }
 0x821   : > { %v2511_v57 = vpack.c.bf16 %v1920_v53, %v1920_v53 }
 0x822   : > { %v2062_v58 = vpop.f32.mrf.mxu1 }
 0x823   : > { %v2071_v59 = vmul.f32 %v3009_v55, %v2062_v58  ;;  %1929 = vrot.lane.b32.xlu1 %v2511_v57, %s3293_s19 }
 0x824   : > { %v2747_v38 = vpop.f32.mrf.mxu1 }
 0x825   : > { %v2512_v46 = vpack.c.bf16 %v2071_v59, %v2071_v59 }
 0x826   : > { %v2065_v63 = vpop.f32.mrf.mxu1 }
 0x827   : > { %v2072_v60 = vmul.f32 %v3011_v61, %v2065_v63  ;;  %2079 = vrot.lane.b32.xlu0 %v2512_v46, %s3294_s21 }
 0x828   : > { %v2748_v62 = vpop.f32.mrf.mxu1 }
 0x829   : > { %v2513_v1 = vpack.c.bf16 %v2072_v60, %v2072_v60 }
 0x82b   : > { %2081 = vrot.lane.b32.xlu1 %v2513_v1, %s3294_s21 }
 0x879   : > { %v1472_v2 = vpop.permute.xlu0 %1471 }
 0x87a   : > { %1478 = vst.msk [vmem:[#allocation4] sm:$0xf] %vm1477_vm7, %v1472_v2 }
 0x87d   : > { %v1474_v3 = vpop.permute.xlu1 %1473 }
 0x87e   : > { %1479 = vst.msk [vmem:[#allocation4 + $0x4] sm:$0xf] %vm1477_vm7, %v1474_v3 }
 0x881   : > { %v1624_v0 = vpop.permute.xlu0 %1623 }
 0x882   : > { %1630 = vst.msk [vmem:[#allocation4] sm:$0xf] %vm1629_vm8, %v1624_v0 }
 0x885   : > { %v1626_v4 = vpop.permute.xlu1 %1625 }
 0x886   : > { %1631 = vst.msk [vmem:[#allocation4 + $0x4] sm:$0xf] %vm1629_vm8, %v1626_v4 }
 0x889   : > { %v1776_v5 = vpop.permute.xlu0 %1775 }
 0x88a   : > { %1782 = vst.msk [vmem:[#allocation4] sm:$0xf] %vm1781_vm9, %v1776_v5 }
 0x88d   : > { %v1778_v6 = vpop.permute.xlu1 %1777 }
 0x88e   : > { %1783 = vst.msk [vmem:[#allocation4 + $0x4] sm:$0xf] %vm1781_vm9, %v1778_v6 }
 0x891   : > { %v1928_v14 = vpop.permute.xlu0 %1927 }
 0x892   : > { %1934 = vst.msk [vmem:[#allocation4] sm:$0xf] %vm1933_vm10, %v1928_v14 }
 0x895   : > { %v1930_v10 = vpop.permute.xlu1 %1929 }
 0x896   : > { %1935 = vst.msk [vmem:[#allocation4 + $0x4] sm:$0xf] %vm1933_vm10, %v1930_v10 }
 0x899   : > { %v2080_v16 = vpop.permute.xlu0 %2079 }
 0x89a   : > { %2086 = vst.msk [vmem:[#allocation4] sm:$0xf] %vm2085_vm11, %v2080_v16 }
 0x89d   : > { %v2082_v45 = vpop.permute.xlu1 %2081 }
 0x89e   : > { %2087 = vst.msk [vmem:[#allocation4 + $0x4] sm:$0xf] %vm2085_vm11, %v2082_v45 }
 0x8a5   : > { %v2947_v11 = vld [vmem:[#allocation4] sm:$0xff]  }
 0x8a6   : > { %2766 = vmatmul.mubr.bf16.vlgmr.msra.gmra.mxu0 %v2947_v11 }
 0x966   : > { %v2201_v7 = vpop.f32.mrf.mxu0 }
 0x967   : > { %v2202_v18 = vadd.f32 %v2477_v17, %v2201_v7 }
 0x968   : > { %v2767_v19 = vpop.f32.mrf.mxu0 }
 0x969   : > { %2208 = vst [vmem:[%s493_s28] sm:$0xff] %v2202_v18 }
 0x96a   : > { %v2204_v20 = vpop.f32.mrf.mxu0 }
 0x96b   : > { %v2205_v21 = vadd.f32 %v2477_v17, %v2204_v20 }
 0x96c   : > { %v2768_v13 = vpop.f32.mrf.mxu0 }
 0x96d   : > { %2209 = vst [vmem:[%s493_s28 + $0x8] sm:$0xff] %v2205_v21 }
 0x96e   : > { %3185 = shalt.err (!%p3182_p8)
}
 0x96f   : > { %s3186_s23 = scalar_lea.hbm %s3881_s12, 256  ;;  %s3190_s21 = scalar_lea.hbm %s3940_s10, 512 }
 0x970   : > { %p3187_p2 = scmp.ne.s32.totalorder %s3881_s12, %s3186_s23  ;;  %p3191_p3 = scmp.lt.s32.totalorder %s3881_s12, %s3940_s10 }
 0x971   : > { %p3192_p5 = scmp.lt.s32.totalorder %s3190_s21, %s3186_s23 }
 0x972   : > { %p3188_p11 = pnand %p3187_p2, %p3471_p0 }
 0x973   : > { %p3193_p4 = por %p3192_p5, %p3191_p3 }
 0x974   : > { %p3189_p13 = pneg %p3188_p11 }
 0x976   : > { %p3194_p10 = pnand %p3193_p4, %p3189_p13 }
 0x978   : > { %3197 = shalt.err (!%p3194_p10)
}
 0x979   : > { %s3296_s8 = smov 128  }
 0x97a   : > { %2789 = dma.vmem_to_hbm [thread:$0]  (%p3471_p0), %s3876_s29, 256, %s3881_s12, %s2211_s11, %s3296_s8, %s3296_s8, %s3289_s20  }
 0x97b PF: > { %s2241_s24 = sand.u32 1, %s3248_s13   ;;  %p3979_p12 = scmp.ge.s32.totalorder %s3268_s18, 2 }
 0x97c   : > { %s2242_s2 = scalar_lea.sflag [#allocation7], %s2241_s24 }
 0x97d   : > { %p2812_p7 = pnand %p3979_p12, %p3397_p6 }
 0x97f   : > { %p2813_p1 = pneg %p2812_p7 }
 0x981   : > { %3243 = dma.done.wait (%p2813_p1), %s2242_s2, 256  }
 0x982   : > { %3245 = vsyncadd (%p2813_p1), %s2242_s2, 4294967040  ;;  %s31_s18 = sadd.s32 1, %s3268_s18   ;;  %s3980_s16 = sld [smem:[#allocation23_spill]] }
 0x983   : > { %p28_p9 = scmp.ge.s32.totalorder %s31_s18, 4   ;;  %s3981_s17 = sld [smem:[#allocation25_spill]] }
 0x984   : > { %s3982_s13 = smov %s3252_s14  ;;  %s3983_s14 = smov %s3256_s15 }
 0x985   : > { %s3984_s15 = smov %s3482_s30  ;;  %30 = sbr.rel (!%p28_p9) target bundleno = 17 (0x11), region = 138 }
 0x98a   :  { %2247 = vsyncpa [#allocation6], 1 }
 0x98b   :  { %2249 = vsyncpa [#allocation6 + $0x1], 1 }
 0x98c   :  { %2250 = vsyncpa [#allocation9], 1 }
 0x98d   :  { %2252 = vsyncpa [#allocation9 + $0x1], 1 }
 0x98e   :  { %2253 = vsyncpa [#allocation12], 1 }
 0x98f   :  { %2254 = vsyncpa [#allocation15], 1 }
 0x990   :  { %2255 = vsyncpa [#allocation7], 1 }
 0x991   :  { %2257 = vsyncpa [#allocation7 + $0x1], 1 }

</bundles_post_ra>
